<compile_context>
chip_gen: v5e
topology: v5e:2x2
jax: 0.10.0
libtpu: 0.0.40
codegen_flags: <defaults>
</compile_context>

<pallas_src>
import functools

import jax
import jax.numpy as jnp
from jax.experimental import pallas as pl
from jax.experimental.pallas import tpu as pltpu

# ---------------- model sizes (small, synthetic) ----------------
VOCAB = 100
VOCAB_PAD = 128        # token-embedding table padded to a lane-friendly 128 rows
MAX_POS = 16
B, S = 2, 8            # batch, sequence length
BS = B * S
D = 64                 # "bert" hidden size (embedding_dim fed to the GRU)
NH, DH = 4, 16         # attention heads, head dim (NH*DH == D)
FFN = 128              # bert feed-forward dim
N_BERT_LAYERS = 2
H = 32                 # GRU hidden_dim
N_GRU_LAYERS = 2       # bidirectional
OUT_DIM = 3

assert NH * DH == D
assert D == 2 * H      # lets GRU layer-0 and layer-1 input weights stack uniformly
assert B & (B - 1) == 0 and H & (H - 1) == 0   # bitwise tricks below need powers of 2


# ---------------- small in-kernel helper ----------------
def _ln(x, g, b, eps=1e-12):
    mu = jnp.mean(x, axis=-1, keepdims=True)
    var = jnp.mean((x - mu) ** 2, axis=-1, keepdims=True)
    return (x - mu) * jax.lax.rsqrt(var + eps) * g + b


# ---------------- the single fused forward kernel ----------------
def _fused_forward_kernel(ids_ref, mask_ref,
                          tok_ref, posadd_ref, elng_ref, elnb_ref,
                          wqkv_ref, bqkv_ref, wo_ref, bo_ref,
                          ln1g_ref, ln1b_ref, w1_ref, b1_ref,
                          w2_ref, b2_ref, ln2g_ref, ln2b_ref,
                          gwx_ref, gbx_ref, gwh_ref, gbh_ref,
                          ow_ref, ob_ref,
                          out_ref, *, scale):
    # Rows everywhere are TIME-MAJOR: row index = t*B + b.

    # ---- embedding: one-hot gather (table resident in VMEM) + pos/type + LN
    ids = ids_ref[...]                                              # (BS, 1) int32
    vocab_iota = jax.lax.broadcasted_iota(jnp.int32, (BS, VOCAB_PAD), 1)
    onehot = (vocab_iota == ids).astype(jnp.float32)                # (BS, VOCAB_PAD)
    x = jnp.dot(onehot, tok_ref[...], preferred_element_type=jnp.float32)
    x = x + posadd_ref[...]                                         # pos + token-type emb
    x = _ln(x, elng_ref[...], elnb_ref[...])                        # (BS, D)

    # ---- additive attention mask: block-diag over batch + key padding
    # column/row batch index = (index & (B-1)) in time-major layout.
    m = mask_ref[...]                                               # (1, BS) in {0,1}
    row_i = jax.lax.broadcasted_iota(jnp.int32, (BS, BS), 0)
    col_i = jax.lax.broadcasted_iota(jnp.int32, (BS, BS), 1)
    same_batch = ((row_i ^ col_i) & (B - 1)) == 0                   # (BS, BS)
    allowed = same_batch & (m > 0.5)                                # broadcast (1,BS)
    add_mask = jnp.where(allowed, 0.0, -10000.0)                    # (BS, BS)

    # ---- BERT encoder layers (all weights resident in VMEM) ----
    for l in range(N_BERT_LAYERS):
        qkv = (jnp.dot(x, wqkv_ref[l], preferred_element_type=jnp.float32)
               + bqkv_ref[l])                                       # (BS, 3D)
        ctx_heads = []
        for h in range(NH):                                         # statically unrolled
            q = qkv[:, h * DH:(h + 1) * DH]
            k = qkv[:, D + h * DH:D + (h + 1) * DH]
            v = qkv[:, 2 * D + h * DH:2 * D + (h + 1) * DH]
            # one score matmul covers BOTH batch elements; the block-diag batch
            # mask zeroes cross-batch attention exactly (exp underflows to 0).
            s = jax.lax.dot_general(q, k, (((1,), (1,)), ((), ())),
                                    preferred_element_type=jnp.float32) * scale
            s = s + add_mask
            s = s - jnp.max(s, axis=-1, keepdims=True)
            p = jnp.exp(s)
            p = p * pl.reciprocal(jnp.sum(p, axis=-1, keepdims=True), approx=True)
            ctx_heads.append(jnp.dot(p, v, preferred_element_type=jnp.float32))
        ctx = jnp.concatenate(ctx_heads, axis=1)                    # (BS, D) lane concat
        attn = (jnp.dot(ctx, wo_ref[l], preferred_element_type=jnp.float32)
                + bo_ref[l])                                        # ONE output projection
        x1 = _ln(attn + x, ln1g_ref[l], ln1b_ref[l])
        # TODO(synk): HF BERT uses exact erf-GELU; tanh approximation used here.
        ff = jax.nn.gelu(jnp.dot(x1, w1_ref[l], preferred_element_type=jnp.float32)
                         + b1_ref[l], approximate=True)
        ff = jnp.dot(ff, w2_ref[l], preferred_element_type=jnp.float32) + b2_ref[l]
        x = _ln(ff + x1, ln2g_ref[l], ln2b_ref[l])

    # ---- bidirectional GRU layers ----
    # Fused gate-major column layout: [r_f | r_b | z_f | z_b | n_f | n_b].
    col6h = jax.lax.broadcasted_iota(jnp.int32, (1, 6 * H), 1)
    fwd_cols = (col6h & H) == 0            # blocks 0,2,4 -> forward direction
    col2h = jax.lax.broadcasted_iota(jnp.int32, (1, 2 * H), 1)
    left_cols = col2h < H                  # forward half of the hidden state

    gru_in = x                             # (BS, D); D == 2H so shapes stay uniform
    h_cat = jnp.zeros((B, 2 * H), jnp.float32)
    for l in range(N_GRU_LAYERS):
        # fused input-gate projection for BOTH directions in one matmul
        gx = (jnp.dot(gru_in, gwx_ref[l], preferred_element_type=jnp.float32)
              + gbx_ref[l])                                         # (BS, 6H)
        wh = gwh_ref[l]                                             # (2H, 6H) block-diag
        bh = gbh_ref[l]                                             # (1, 6H)

        h_cat = jnp.zeros((B, 2 * H), jnp.float32)                  # [h_fwd | h_bwd]
        hcat_hist = [None] * S
        for t in range(S):                                          # fully unrolled scan
            tb = S - 1 - t
            gt = gx[t * B:(t + 1) * B, :]                           # forward inputs @ t
            gtb = gx[tb * B:(tb + 1) * B, :]                        # backward inputs @ tb
            g_in = jnp.where(fwd_cols, gt, gtb)                     # (B, 6H)
            # ONE recurrent matmul per step for both directions
            gh = jnp.dot(h_cat, wh, preferred_element_type=jnp.float32) + bh
            r = jax.nn.sigmoid(g_in[:, 0:2 * H] + gh[:, 0:2 * H])
            z = jax.nn.sigmoid(g_in[:, 2 * H:4 * H] + gh[:, 2 * H:4 * H])
            n = jnp.tanh(g_in[:, 4 * H:6 * H] + r * gh[:, 4 * H:6 * H])
            h_cat = (1.0 - z) * n + z * h_cat
            hcat_hist[t] = h_cat

        if l < N_GRU_LAYERS - 1:
            # next-layer input row t = [h_fwd after time t | h_bwd after time t];
            # the backward state for time t was produced at iteration S-1-t.
            rows = [jnp.where(left_cols, hcat_hist[t], hcat_hist[S - 1 - t])
                    for t in range(S)]
            gru_in = jnp.concatenate(rows, axis=0)                  # (BS, 2H)
        # TODO(synk): inter-layer GRU dropout and self.dropout are identity in eval mode.

    # ---- classifier (hcat == cat(hidden[-2], hidden[-1]) of last GRU layer) ----
    logits = jnp.dot(h_cat, ow_ref[...], preferred_element_type=jnp.float32) + ob_ref[...]
    out_ref[...] = logits                                           # (B, OUT_DIM)


# ---------------- wrapper: one pallas_call for the whole forward ----------------
def bert_gru_forward(fused, input_ids, attention_mask):
    # only glue: reorder the tiny (B,S) int inputs to the time-major row layout
    ids_tm = input_ids.astype(jnp.int32).T.reshape(BS, 1)           # row t*B + b
    mask_tm = attention_mask.astype(jnp.float32).T.reshape(1, BS)

    kernel = functools.partial(_fused_forward_kernel, scale=1.0 / float(DH) ** 0.5)
    return pl.pallas_call(
        kernel,
        out_shape=jax.ShapeDtypeStruct((B, OUT_DIM), jnp.float32),
    )(ids_tm, mask_tm,
      fused["tok_emb"], fused["posadd"], fused["emb_ln_g"], fused["emb_ln_b"],
      fused["wqkv"], fused["bqkv"], fused["wo"], fused["bo"],
      fused["ln1_g"], fused["ln1_b"], fused["w1"], fused["b1"],
      fused["w2"], fused["b2"], fused["ln2_g"], fused["ln2_b"],
      fused["gru_wx"], fused["gru_bx"], fused["gru_wh"], fused["gru_bh"],
      fused["out_w"], fused["out_b"])


# ---------------- deterministic PyTorch-style parameter init ----------------
def init_params(key):
    keys = iter(jax.random.split(key, 128))

    def nrm(shape, scale=0.02):
        return jax.random.normal(next(keys), shape, jnp.float32) * scale

    p = {
        "tok_emb": nrm((VOCAB, D)),
        "pos_emb": nrm((MAX_POS, D)),
        "type_emb": nrm((2, D)),
        "emb_ln_g": jnp.ones((D,), jnp.float32),
        "emb_ln_b": jnp.zeros((D,), jnp.float32),
        "layers": [],
    }
    for _ in range(N_BERT_LAYERS):
        p["layers"].append({
            "wq": nrm((D, D)), "bq": jnp.zeros((D,), jnp.float32),
            "wk": nrm((D, D)), "bk": jnp.zeros((D,), jnp.float32),
            "wv": nrm((D, D)), "bv": jnp.zeros((D,), jnp.float32),
            "wo": nrm((D, D)), "bo": jnp.zeros((D,), jnp.float32),
            "ln1_g": jnp.ones((D,), jnp.float32), "ln1_b": jnp.zeros((D,), jnp.float32),
            "w1": nrm((D, FFN)), "b1": jnp.zeros((FFN,), jnp.float32),
            "w2": nrm((FFN, D)), "b2": jnp.zeros((D,), jnp.float32),
            "ln2_g": jnp.ones((D,), jnp.float32), "ln2_b": jnp.zeros((D,), jnp.float32),
        })

    gru = {}
    in_dims = [D, 2 * H]
    for layer in range(N_GRU_LAYERS):
        for sfx in ("", "_reverse"):
            gru[f"w_ih_l{layer}{sfx}"] = nrm((3 * H, in_dims[layer]), 0.1)
            gru[f"w_hh_l{layer}{sfx}"] = nrm((3 * H, H), 0.1)
            gru[f"b_ih_l{layer}{sfx}"] = nrm((3 * H,), 0.1)
            gru[f"b_hh_l{layer}{sfx}"] = nrm((3 * H,), 0.1)
    p["gru"] = gru
    p["out_w"] = nrm((2 * H, OUT_DIM), 0.1)
    p["out_b"] = jnp.zeros((OUT_DIM,), jnp.float32)
    return p


# ---------------- one-time fused weight layout preparation ----------------
def prepare_fused_params(p):
    """Builds all fused/transposed/stacked weight layouts ONCE (outside jit)."""
    f = {}
    # embedding: pad vocab to 128 rows; pre-add position + token-type embeddings
    f["tok_emb"] = jnp.concatenate(
        [p["tok_emb"], jnp.zeros((VOCAB_PAD - VOCAB, D), jnp.float32)], axis=0)
    # time-major rows (t*B + b) -> repeat each position row B times
    f["posadd"] = jnp.repeat(p["pos_emb"][:S] + p["type_emb"][0][None, :], B, axis=0)
    f["emb_ln_g"] = p["emb_ln_g"].reshape(1, D)
    f["emb_ln_b"] = p["emb_ln_b"].reshape(1, D)

    def stack(fn):
        return jnp.stack([fn(lp) for lp in p["layers"]], axis=0)

    f["wqkv"] = stack(lambda lp: jnp.concatenate([lp["wq"], lp["wk"], lp["wv"]], axis=1))
    f["bqkv"] = stack(lambda lp: jnp.concatenate([lp["bq"], lp["bk"], lp["bv"]]).reshape(1, 3 * D))
    f["wo"] = stack(lambda lp: lp["wo"])
    f["bo"] = stack(lambda lp: lp["bo"].reshape(1, D))
    f["ln1_g"] = stack(lambda lp: lp["ln1_g"].reshape(1, D))
    f["ln1_b"] = stack(lambda lp: lp["ln1_b"].reshape(1, D))
    f["w1"] = stack(lambda lp: lp["w1"])
    f["b1"] = stack(lambda lp: lp["b1"].reshape(1, FFN))
    f["w2"] = stack(lambda lp: lp["w2"])
    f["b2"] = stack(lambda lp: lp["b2"].reshape(1, D))
    f["ln2_g"] = stack(lambda lp: lp["ln2_g"].reshape(1, D))
    f["ln2_b"] = stack(lambda lp: lp["ln2_b"].reshape(1, D))

    # GRU: gate-major fused columns [r_f | r_b | z_f | z_b | n_f | n_b]
    def gate_major(wf, wb):
        return jnp.concatenate([wf[:, 0:H], wb[:, 0:H],
                                wf[:, H:2 * H], wb[:, H:2 * H],
                                wf[:, 2 * H:3 * H], wb[:, 2 * H:3 * H]], axis=1)

    g = p["gru"]
    wx_l, bx_l, wh_l, bh_l = [], [], [], []
    for layer in range(N_GRU_LAYERS):
        wxf = g[f"w_ih_l{layer}"].T                     # (Din, 3H), cols [r|z|n]
        wxb = g[f"w_ih_l{layer}_reverse"].T
        bxf = g[f"b_ih_l{layer}"].reshape(1, 3 * H)
        bxb = g[f"b_ih_l{layer}_reverse"].reshape(1, 3 * H)
        whf = g[f"w_hh_l{layer}"].T                     # (H, 3H)
        whb = g[f"w_hh_l{layer}_reverse"].T
        bhf = g[f"b_hh_l{layer}"].reshape(1, 3 * H)
        bhb = g[f"b_hh_l{layer}_reverse"].reshape(1, 3 * H)

        wx_l.append(gate_major(wxf, wxb))               # (Din, 6H)
        bx_l.append(gate_major(bxf, bxb))               # (1, 6H)
        Z = jnp.zeros((H, H), jnp.float32)
        top = jnp.concatenate([whf[:, 0:H], Z, whf[:, H:2 * H], Z, whf[:, 2 * H:3 * H], Z], axis=1)
        bot = jnp.concatenate([Z, whb[:, 0:H], Z, whb[:, H:2 * H], Z, whb[:, 2 * H:3 * H]], axis=1)
        wh_l.append(jnp.concatenate([top, bot], axis=0))  # (2H, 6H) block-diagonal
        bh_l.append(gate_major(bhf, bhb))               # (1, 6H)

    f["gru_wx"] = jnp.stack(wx_l)                       # (L, 64, 6H)  (Din == D == 2H)
    f["gru_bx"] = jnp.stack(bx_l)                       # (L, 1, 6H)
    f["gru_wh"] = jnp.stack(wh_l)                       # (L, 2H, 6H)
    f["gru_bh"] = jnp.stack(bh_l)                       # (L, 1, 6H)

    f["out_w"] = p["out_w"]                             # (2H, OUT_DIM)
    f["out_b"] = p["out_b"].reshape(1, OUT_DIM)
    return f


if __name__ == "__main__":
    root = jax.random.PRNGKey(0)
    k_param, k_ids = jax.random.split(root)
    params = init_params(k_param)
    fused = prepare_fused_params(params)   # built once; no weight glue per forward

    input_ids = jax.random.randint(k_ids, (B, S), 0, VOCAB, dtype=jnp.int32)
    attention_mask = jnp.ones((B, S), dtype=jnp.int32)

    fwd = jax.jit(bert_gru_forward)
    logits = fwd(fused, input_ids, attention_mask)
    jax.block_until_ready(logits)

    assert logits.shape == (B, OUT_DIM), logits.shape
    assert bool(jnp.all(jnp.isfinite(logits)))
    print("KERNEL_OK")
</pallas_src>

<mosaic_0001>
module attributes {stable_mosaic.version = 11 : i64} {
  func.func @_fused_forward_kernel(%arg0: memref<16x1xi32, #tpu.memory_space<vmem>>, %arg1: memref<1x16xf32, #tpu.memory_space<vmem>>, %arg2: memref<128x64xf32, #tpu.memory_space<vmem>>, %arg3: memref<16x64xf32, #tpu.memory_space<vmem>>, %arg4: memref<1x64xf32, #tpu.memory_space<vmem>>, %arg5: memref<1x64xf32, #tpu.memory_space<vmem>>, %arg6: memref<2x64x192xf32, #tpu.memory_space<vmem>>, %arg7: memref<2x1x192xf32, #tpu.memory_space<vmem>>, %arg8: memref<2x64x64xf32, #tpu.memory_space<vmem>>, %arg9: memref<2x1x64xf32, #tpu.memory_space<vmem>>, %arg10: memref<2x1x64xf32, #tpu.memory_space<vmem>>, %arg11: memref<2x1x64xf32, #tpu.memory_space<vmem>>, %arg12: memref<2x64x128xf32, #tpu.memory_space<vmem>>, %arg13: memref<2x1x128xf32, #tpu.memory_space<vmem>>, %arg14: memref<2x128x64xf32, #tpu.memory_space<vmem>>, %arg15: memref<2x1x64xf32, #tpu.memory_space<vmem>>, %arg16: memref<2x1x64xf32, #tpu.memory_space<vmem>>, %arg17: memref<2x1x64xf32, #tpu.memory_space<vmem>>, %arg18: memref<2x64x192xf32, #tpu.memory_space<vmem>>, %arg19: memref<2x1x192xf32, #tpu.memory_space<vmem>>, %arg20: memref<2x64x192xf32, #tpu.memory_space<vmem>>, %arg21: memref<2x1x192xf32, #tpu.memory_space<vmem>>, %arg22: memref<64x3xf32, #tpu.memory_space<vmem>>, %arg23: memref<1x3xf32, #tpu.memory_space<vmem>>, %arg24: memref<2x3xf32, #tpu.memory_space<vmem>>) attributes {dimension_semantics = [], scalar_prefetch = 0 : i64, scratch_operands = 0 : i64, tpu.core_type = #tpu.core_type<tc>} {
    %c0 = arith.constant 0 : index
    %c0_0 = arith.constant 0 : index
    %0 = vector.load %arg0[%c0, %c0_0] : memref<16x1xi32, #tpu.memory_space<vmem>>, vector<16x1xi32>
    %1 = tpu.iota {dimensions = array<i32: 1>} : vector<16x128xi32>
    %2 = vector.broadcast %0 : vector<16x1xi32> to vector<16x128xi32>
    %3 = arith.cmpi eq, %1, %2 : vector<16x128xi32>
    %4 = arith.extui %3 : vector<16x128xi1> to vector<16x128xi32>
    %5 = arith.sitofp %4 : vector<16x128xi32> to vector<16x128xf32>
    %c0_1 = arith.constant 0 : index
    %c0_2 = arith.constant 0 : index
    %6 = vector.load %arg2[%c0_1, %c0_2] : memref<128x64xf32, #tpu.memory_space<vmem>>, vector<128x64xf32>
    %cst = arith.constant dense<0.000000e+00> : vector<16x64xf32>
    %7 = tpu.matmul %5, %6, %cst {dimension_numbers = #tpu.dot_dimension_numbers<[1], [0], [0], [1], [0, 0, 1, 1], [], []>} : vector<16x128xf32>, vector<128x64xf32>, vector<16x64xf32> -> vector<16x64xf32>
    %c0_3 = arith.constant 0 : index
    %c0_4 = arith.constant 0 : index
    %8 = vector.load %arg3[%c0_3, %c0_4] : memref<16x64xf32, #tpu.memory_space<vmem>>, vector<16x64xf32>
    %9 = arith.addf %7, %8 : vector<16x64xf32>
    %c0_5 = arith.constant 0 : index
    %c0_6 = arith.constant 0 : index
    %10 = vector.load %arg4[%c0_5, %c0_6] : memref<1x64xf32, #tpu.memory_space<vmem>>, vector<1x64xf32>
    %c0_7 = arith.constant 0 : index
    %c0_8 = arith.constant 0 : index
    %11 = vector.load %arg5[%c0_7, %c0_8] : memref<1x64xf32, #tpu.memory_space<vmem>>, vector<1x64xf32>
    %cst_9 = arith.constant dense<0.000000e+00> : vector<16xf32>
    %12 = vector.multi_reduction <add>, %9, %cst_9 [1] : vector<16x64xf32> to vector<16xf32>
    %13 = vector.shape_cast %12 : vector<16xf32> to vector<16x1xf32>
    %cst_10 = arith.constant 6.400000e+01 : f32
    %14 = vector.broadcast %cst_10 : f32 to vector<16x1xf32>
    %15 = arith.divf %13, %14 : vector<16x1xf32>
    %16 = vector.broadcast %15 : vector<16x1xf32> to vector<16x64xf32>
    %17 = arith.subf %9, %16 : vector<16x64xf32>
    %18 = arith.mulf %17, %17 : vector<16x64xf32>
    %cst_11 = arith.constant dense<0.000000e+00> : vector<16xf32>
    %19 = vector.multi_reduction <add>, %18, %cst_11 [1] : vector<16x64xf32> to vector<16xf32>
    %20 = vector.shape_cast %19 : vector<16xf32> to vector<16x1xf32>
    %cst_12 = arith.constant 6.400000e+01 : f32
    %21 = vector.broadcast %cst_12 : f32 to vector<16x1xf32>
    %22 = arith.divf %20, %21 : vector<16x1xf32>
    %23 = vector.broadcast %15 : vector<16x1xf32> to vector<16x64xf32>
    %24 = arith.subf %9, %23 : vector<16x64xf32>
    %cst_13 = arith.constant 9.99999996E-13 : f32
    %25 = vector.broadcast %cst_13 : f32 to vector<16x1xf32>
    %26 = arith.addf %22, %25 : vector<16x1xf32>
    %27 = math.rsqrt %26 : vector<16x1xf32>
    %28 = vector.broadcast %27 : vector<16x1xf32> to vector<16x64xf32>
    %29 = arith.mulf %24, %28 : vector<16x64xf32>
    %30 = vector.broadcast %10 : vector<1x64xf32> to vector<16x64xf32>
    %31 = arith.mulf %29, %30 : vector<16x64xf32>
    %32 = vector.broadcast %11 : vector<1x64xf32> to vector<16x64xf32>
    %33 = arith.addf %31, %32 : vector<16x64xf32>
    %c0_14 = arith.constant 0 : index
    %c0_15 = arith.constant 0 : index
    %34 = vector.load %arg1[%c0_14, %c0_15] : memref<1x16xf32, #tpu.memory_space<vmem>>, vector<1x16xf32>
    %35 = tpu.iota {dimensions = array<i32: 0>} : vector<16x16xi32>
    %36 = tpu.iota {dimensions = array<i32: 1>} : vector<16x16xi32>
    %37 = arith.xori %35, %36 : vector<16x16xi32>
    %c1_i32 = arith.constant 1 : i32
    %38 = vector.broadcast %c1_i32 : i32 to vector<16x16xi32>
    %39 = arith.andi %37, %38 : vector<16x16xi32>
    %c0_i32 = arith.constant 0 : i32
    %40 = vector.broadcast %c0_i32 : i32 to vector<16x16xi32>
    %41 = arith.cmpi eq, %39, %40 : vector<16x16xi32>
    %cst_16 = arith.constant 5.000000e-01 : f32
    %42 = vector.broadcast %cst_16 : f32 to vector<1x16xf32>
    %43 = arith.cmpf ogt, %34, %42 : vector<1x16xf32>
    %44 = vector.broadcast %43 : vector<1x16xi1> to vector<16x16xi1>
    %45 = arith.andi %41, %44 : vector<16x16xi1>
    %cst_17 = arith.constant 0.000000e+00 : f32
    %cst_18 = arith.constant -1.000000e+04 : f32
    %46 = vector.broadcast %cst_17 : f32 to vector<16x16xf32>
    %47 = vector.broadcast %cst_18 : f32 to vector<16x16xf32>
    %48 = arith.select %45, %46, %47 : vector<16x16xi1>, vector<16x16xf32>
    %c0_19 = arith.constant 0 : index
    %c0_20 = arith.constant 0 : index
    %c0_21 = arith.constant 0 : index
    %49 = vector.load %arg6[%c0_19, %c0_20, %c0_21] : memref<2x64x192xf32, #tpu.memory_space<vmem>>, vector<1x64x192xf32>
    %50 = vector.shape_cast %49 : vector<1x64x192xf32> to vector<64x192xf32>
    %cst_22 = arith.constant dense<0.000000e+00> : vector<16x192xf32>
    %51 = tpu.matmul %33, %50, %cst_22 {dimension_numbers = #tpu.dot_dimension_numbers<[1], [0], [0], [1], [0, 0, 1, 1], [], []>} : vector<16x64xf32>, vector<64x192xf32>, vector<16x192xf32> -> vector<16x192xf32>
    %c0_23 = arith.constant 0 : index
    %c0_24 = arith.constant 0 : index
    %c0_25 = arith.constant 0 : index
    %52 = vector.load %arg7[%c0_23, %c0_24, %c0_25] : memref<2x1x192xf32, #tpu.memory_space<vmem>>, vector<1x1x192xf32>
    %53 = vector.shape_cast %52 : vector<1x1x192xf32> to vector<1x192xf32>
    %54 = vector.broadcast %53 : vector<1x192xf32> to vector<16x192xf32>
    %55 = arith.addf %51, %54 : vector<16x192xf32>
    %56 = vector.extract_strided_slice %55 {offsets = [0, 0], sizes = [16, 16], strides = [1, 1]} : vector<16x192xf32> to vector<16x16xf32>
    %57 = vector.extract_strided_slice %55 {offsets = [0, 64], sizes = [16, 16], strides = [1, 1]} : vector<16x192xf32> to vector<16x16xf32>
    %58 = vector.extract_strided_slice %55 {offsets = [0, 128], sizes = [16, 16], strides = [1, 1]} : vector<16x192xf32> to vector<16x16xf32>
    %cst_26 = arith.constant dense<0.000000e+00> : vector<16x16xf32>
    %59 = tpu.matmul %56, %57, %cst_26 {dimension_numbers = #tpu.dot_dimension_numbers<[1], [1], [0], [0], [0, 0, 1, 0], [], []>} : vector<16x16xf32>, vector<16x16xf32>, vector<16x16xf32> -> vector<16x16xf32>
    %cst_27 = arith.constant 2.500000e-01 : f32
    %60 = vector.broadcast %cst_27 : f32 to vector<16x16xf32>
    %61 = arith.mulf %59, %60 : vector<16x16xf32>
    %62 = arith.addf %61, %48 : vector<16x16xf32>
    %cst_28 = arith.constant dense<0xFF800000> : vector<16xf32>
    %63 = vector.multi_reduction <maximumf>, %62, %cst_28 [1] : vector<16x16xf32> to vector<16xf32>
    %64 = vector.shape_cast %63 : vector<16xf32> to vector<16x1xf32>
    %65 = vector.broadcast %64 : vector<16x1xf32> to vector<16x16xf32>
    %66 = arith.subf %62, %65 : vector<16x16xf32>
    %67 = math.exp %66 : vector<16x16xf32>
    %cst_29 = arith.constant dense<0.000000e+00> : vector<16xf32>
    %68 = vector.multi_reduction <add>, %67, %cst_29 [1] : vector<16x16xf32> to vector<16xf32>
    %69 = vector.shape_cast %68 : vector<16xf32> to vector<16x1xf32>
    %70 = tpu.reciprocal %69 {approx = true} : vector<16x1xf32> -> vector<16x1xf32>
    %71 = vector.broadcast %70 : vector<16x1xf32> to vector<16x16xf32>
    %72 = arith.mulf %67, %71 : vector<16x16xf32>
    %cst_30 = arith.constant dense<0.000000e+00> : vector<16x16xf32>
    %73 = tpu.matmul %72, %58, %cst_30 {dimension_numbers = #tpu.dot_dimension_numbers<[1], [0], [0], [1], [0, 0, 1, 1], [], []>} : vector<16x16xf32>, vector<16x16xf32>, vector<16x16xf32> -> vector<16x16xf32>
    %74 = vector.extract_strided_slice %55 {offsets = [0, 16], sizes = [16, 16], strides = [1, 1]} : vector<16x192xf32> to vector<16x16xf32>
    %75 = vector.extract_strided_slice %55 {offsets = [0, 80], sizes = [16, 16], strides = [1, 1]} : vector<16x192xf32> to vector<16x16xf32>
    %76 = vector.extract_strided_slice %55 {offsets = [0, 144], sizes = [16, 16], strides = [1, 1]} : vector<16x192xf32> to vector<16x16xf32>
    %cst_31 = arith.constant dense<0.000000e+00> : vector<16x16xf32>
    %77 = tpu.matmul %74, %75, %cst_31 {dimension_numbers = #tpu.dot_dimension_numbers<[1], [1], [0], [0], [0, 0, 1, 0], [], []>} : vector<16x16xf32>, vector<16x16xf32>, vector<16x16xf32> -> vector<16x16xf32>
    %cst_32 = arith.constant 2.500000e-01 : f32
    %78 = vector.broadcast %cst_32 : f32 to vector<16x16xf32>
    %79 = arith.mulf %77, %78 : vector<16x16xf32>
    %80 = arith.addf %79, %48 : vector<16x16xf32>
    %cst_33 = arith.constant dense<0xFF800000> : vector<16xf32>
    %81 = vector.multi_reduction <maximumf>, %80, %cst_33 [1] : vector<16x16xf32> to vector<16xf32>
    %82 = vector.shape_cast %81 : vector<16xf32> to vector<16x1xf32>
    %83 = vector.broadcast %82 : vector<16x1xf32> to vector<16x16xf32>
    %84 = arith.subf %80, %83 : vector<16x16xf32>
    %85 = math.exp %84 : vector<16x16xf32>
    %cst_34 = arith.constant dense<0.000000e+00> : vector<16xf32>
    %86 = vector.multi_reduction <add>, %85, %cst_34 [1] : vector<16x16xf32> to vector<16xf32>
    %87 = vector.shape_cast %86 : vector<16xf32> to vector<16x1xf32>
    %88 = tpu.reciprocal %87 {approx = true} : vector<16x1xf32> -> vector<16x1xf32>
    %89 = vector.broadcast %88 : vector<16x1xf32> to vector<16x16xf32>
    %90 = arith.mulf %85, %89 : vector<16x16xf32>
    %cst_35 = arith.constant dense<0.000000e+00> : vector<16x16xf32>
    %91 = tpu.matmul %90, %76, %cst_35 {dimension_numbers = #tpu.dot_dimension_numbers<[1], [0], [0], [1], [0, 0, 1, 1], [], []>} : vector<16x16xf32>, vector<16x16xf32>, vector<16x16xf32> -> vector<16x16xf32>
    %92 = vector.extract_strided_slice %55 {offsets = [0, 32], sizes = [16, 16], strides = [1, 1]} : vector<16x192xf32> to vector<16x16xf32>
    %93 = vector.extract_strided_slice %55 {offsets = [0, 96], sizes = [16, 16], strides = [1, 1]} : vector<16x192xf32> to vector<16x16xf32>
    %94 = vector.extract_strided_slice %55 {offsets = [0, 160], sizes = [16, 16], strides = [1, 1]} : vector<16x192xf32> to vector<16x16xf32>
    %cst_36 = arith.constant dense<0.000000e+00> : vector<16x16xf32>
    %95 = tpu.matmul %92, %93, %cst_36 {dimension_numbers = #tpu.dot_dimension_numbers<[1], [1], [0], [0], [0, 0, 1, 0], [], []>} : vector<16x16xf32>, vector<16x16xf32>, vector<16x16xf32> -> vector<16x16xf32>
    %cst_37 = arith.constant 2.500000e-01 : f32
    %96 = vector.broadcast %cst_37 : f32 to vector<16x16xf32>
    %97 = arith.mulf %95, %96 : vector<16x16xf32>
    %98 = arith.addf %97, %48 : vector<16x16xf32>
    %cst_38 = arith.constant dense<0xFF800000> : vector<16xf32>
    %99 = vector.multi_reduction <maximumf>, %98, %cst_38 [1] : vector<16x16xf32> to vector<16xf32>
    %100 = vector.shape_cast %99 : vector<16xf32> to vector<16x1xf32>
    %101 = vector.broadcast %100 : vector<16x1xf32> to vector<16x16xf32>
    %102 = arith.subf %98, %101 : vector<16x16xf32>
    %103 = math.exp %102 : vector<16x16xf32>
    %cst_39 = arith.constant dense<0.000000e+00> : vector<16xf32>
    %104 = vector.multi_reduction <add>, %103, %cst_39 [1] : vector<16x16xf32> to vector<16xf32>
    %105 = vector.shape_cast %104 : vector<16xf32> to vector<16x1xf32>
    %106 = tpu.reciprocal %105 {approx = true} : vector<16x1xf32> -> vector<16x1xf32>
    %107 = vector.broadcast %106 : vector<16x1xf32> to vector<16x16xf32>
    %108 = arith.mulf %103, %107 : vector<16x16xf32>
    %cst_40 = arith.constant dense<0.000000e+00> : vector<16x16xf32>
    %109 = tpu.matmul %108, %94, %cst_40 {dimension_numbers = #tpu.dot_dimension_numbers<[1], [0], [0], [1], [0, 0, 1, 1], [], []>} : vector<16x16xf32>, vector<16x16xf32>, vector<16x16xf32> -> vector<16x16xf32>
    %110 = vector.extract_strided_slice %55 {offsets = [0, 48], sizes = [16, 16], strides = [1, 1]} : vector<16x192xf32> to vector<16x16xf32>
    %111 = vector.extract_strided_slice %55 {offsets = [0, 112], sizes = [16, 16], strides = [1, 1]} : vector<16x192xf32> to vector<16x16xf32>
    %112 = vector.extract_strided_slice %55 {offsets = [0, 176], sizes = [16, 16], strides = [1, 1]} : vector<16x192xf32> to vector<16x16xf32>
    %cst_41 = arith.constant dense<0.000000e+00> : vector<16x16xf32>
    %113 = tpu.matmul %110, %111, %cst_41 {dimension_numbers = #tpu.dot_dimension_numbers<[1], [1], [0], [0], [0, 0, 1, 0], [], []>} : vector<16x16xf32>, vector<16x16xf32>, vector<16x16xf32> -> vector<16x16xf32>
    %cst_42 = arith.constant 2.500000e-01 : f32
    %114 = vector.broadcast %cst_42 : f32 to vector<16x16xf32>
    %115 = arith.mulf %113, %114 : vector<16x16xf32>
    %116 = arith.addf %115, %48 : vector<16x16xf32>
    %cst_43 = arith.constant dense<0xFF800000> : vector<16xf32>
    %117 = vector.multi_reduction <maximumf>, %116, %cst_43 [1] : vector<16x16xf32> to vector<16xf32>
    %118 = vector.shape_cast %117 : vector<16xf32> to vector<16x1xf32>
    %119 = vector.broadcast %118 : vector<16x1xf32> to vector<16x16xf32>
    %120 = arith.subf %116, %119 : vector<16x16xf32>
    %121 = math.exp %120 : vector<16x16xf32>
    %cst_44 = arith.constant dense<0.000000e+00> : vector<16xf32>
    %122 = vector.multi_reduction <add>, %121, %cst_44 [1] : vector<16x16xf32> to vector<16xf32>
    %123 = vector.shape_cast %122 : vector<16xf32> to vector<16x1xf32>
    %124 = tpu.reciprocal %123 {approx = true} : vector<16x1xf32> -> vector<16x1xf32>
    %125 = vector.broadcast %124 : vector<16x1xf32> to vector<16x16xf32>
    %126 = arith.mulf %121, %125 : vector<16x16xf32>
    %cst_45 = arith.constant dense<0.000000e+00> : vector<16x16xf32>
    %127 = tpu.matmul %126, %112, %cst_45 {dimension_numbers = #tpu.dot_dimension_numbers<[1], [0], [0], [1], [0, 0, 1, 1], [], []>} : vector<16x16xf32>, vector<16x16xf32>, vector<16x16xf32> -> vector<16x16xf32>
    %128 = tpu.concatenate %73, %91, %109, %127 in 1 : vector<16x16xf32>, vector<16x16xf32>, vector<16x16xf32>, vector<16x16xf32> -> vector<16x64xf32>
    %c0_46 = arith.constant 0 : index
    %c0_47 = arith.constant 0 : index
    %c0_48 = arith.constant 0 : index
    %129 = vector.load %arg8[%c0_46, %c0_47, %c0_48] : memref<2x64x64xf32, #tpu.memory_space<vmem>>, vector<1x64x64xf32>
    %130 = vector.shape_cast %129 : vector<1x64x64xf32> to vector<64x64xf32>
    %cst_49 = arith.constant dense<0.000000e+00> : vector<16x64xf32>
    %131 = tpu.matmul %128, %130, %cst_49 {dimension_numbers = #tpu.dot_dimension_numbers<[1], [0], [0], [1], [0, 0, 1, 1], [], []>} : vector<16x64xf32>, vector<64x64xf32>, vector<16x64xf32> -> vector<16x64xf32>
    %c0_50 = arith.constant 0 : index
    %c0_51 = arith.constant 0 : index
    %c0_52 = arith.constant 0 : index
    %132 = vector.load %arg9[%c0_50, %c0_51, %c0_52] : memref<2x1x64xf32, #tpu.memory_space<vmem>>, vector<1x1x64xf32>
    %133 = vector.shape_cast %132 : vector<1x1x64xf32> to vector<1x64xf32>
    %134 = vector.broadcast %133 : vector<1x64xf32> to vector<16x64xf32>
    %135 = arith.addf %131, %134 : vector<16x64xf32>
    %136 = arith.addf %135, %33 : vector<16x64xf32>
    %c0_53 = arith.constant 0 : index
    %c0_54 = arith.constant 0 : index
    %c0_55 = arith.constant 0 : index
    %137 = vector.load %arg10[%c0_53, %c0_54, %c0_55] : memref<2x1x64xf32, #tpu.memory_space<vmem>>, vector<1x1x64xf32>
    %138 = vector.shape_cast %137 : vector<1x1x64xf32> to vector<1x64xf32>
    %c0_56 = arith.constant 0 : index
    %c0_57 = arith.constant 0 : index
    %c0_58 = arith.constant 0 : index
    %139 = vector.load %arg11[%c0_56, %c0_57, %c0_58] : memref<2x1x64xf32, #tpu.memory_space<vmem>>, vector<1x1x64xf32>
    %140 = vector.shape_cast %139 : vector<1x1x64xf32> to vector<1x64xf32>
    %cst_59 = arith.constant dense<0.000000e+00> : vector<16xf32>
    %141 = vector.multi_reduction <add>, %136, %cst_59 [1] : vector<16x64xf32> to vector<16xf32>
    %142 = vector.shape_cast %141 : vector<16xf32> to vector<16x1xf32>
    %cst_60 = arith.constant 6.400000e+01 : f32
    %143 = vector.broadcast %cst_60 : f32 to vector<16x1xf32>
    %144 = arith.divf %142, %143 : vector<16x1xf32>
    %145 = vector.broadcast %144 : vector<16x1xf32> to vector<16x64xf32>
    %146 = arith.subf %136, %145 : vector<16x64xf32>
    %147 = arith.mulf %146, %146 : vector<16x64xf32>
    %cst_61 = arith.constant dense<0.000000e+00> : vector<16xf32>
    %148 = vector.multi_reduction <add>, %147, %cst_61 [1] : vector<16x64xf32> to vector<16xf32>
    %149 = vector.shape_cast %148 : vector<16xf32> to vector<16x1xf32>
    %cst_62 = arith.constant 6.400000e+01 : f32
    %150 = vector.broadcast %cst_62 : f32 to vector<16x1xf32>
    %151 = arith.divf %149, %150 : vector<16x1xf32>
    %152 = vector.broadcast %144 : vector<16x1xf32> to vector<16x64xf32>
    %153 = arith.subf %136, %152 : vector<16x64xf32>
    %cst_63 = arith.constant 9.99999996E-13 : f32
    %154 = vector.broadcast %cst_63 : f32 to vector<16x1xf32>
    %155 = arith.addf %151, %154 : vector<16x1xf32>
    %156 = math.rsqrt %155 : vector<16x1xf32>
    %157 = vector.broadcast %156 : vector<16x1xf32> to vector<16x64xf32>
    %158 = arith.mulf %153, %157 : vector<16x64xf32>
    %159 = vector.broadcast %138 : vector<1x64xf32> to vector<16x64xf32>
    %160 = arith.mulf %158, %159 : vector<16x64xf32>
    %161 = vector.broadcast %140 : vector<1x64xf32> to vector<16x64xf32>
    %162 = arith.addf %160, %161 : vector<16x64xf32>
    %c0_64 = arith.constant 0 : index
    %c0_65 = arith.constant 0 : index
    %c0_66 = arith.constant 0 : index
    %163 = vector.load %arg12[%c0_64, %c0_65, %c0_66] : memref<2x64x128xf32, #tpu.memory_space<vmem>>, vector<1x64x128xf32>
    %164 = vector.shape_cast %163 : vector<1x64x128xf32> to vector<64x128xf32>
    %cst_67 = arith.constant dense<0.000000e+00> : vector<16x128xf32>
    %165 = tpu.matmul %162, %164, %cst_67 {dimension_numbers = #tpu.dot_dimension_numbers<[1], [0], [0], [1], [0, 0, 1, 1], [], []>} : vector<16x64xf32>, vector<64x128xf32>, vector<16x128xf32> -> vector<16x128xf32>
    %c0_68 = arith.constant 0 : index
    %c0_69 = arith.constant 0 : index
    %c0_70 = arith.constant 0 : index
    %166 = vector.load %arg13[%c0_68, %c0_69, %c0_70] : memref<2x1x128xf32, #tpu.memory_space<vmem>>, vector<1x1x128xf32>
    %167 = vector.shape_cast %166 : vector<1x1x128xf32> to vector<1x128xf32>
    %168 = vector.broadcast %167 : vector<1x128xf32> to vector<16x128xf32>
    %169 = arith.addf %165, %168 : vector<16x128xf32>
    %170 = arith.mulf %169, %169 : vector<16x128xf32>
    %171 = arith.mulf %169, %170 : vector<16x128xf32>
    %cst_71 = arith.constant 4.471500e-02 : f32
    %172 = vector.broadcast %cst_71 : f32 to vector<16x128xf32>
    %173 = arith.mulf %172, %171 : vector<16x128xf32>
    %174 = arith.addf %169, %173 : vector<16x128xf32>
    %cst_72 = arith.constant 0.797884583 : f32
    %175 = vector.broadcast %cst_72 : f32 to vector<16x128xf32>
    %176 = arith.mulf %175, %174 : vector<16x128xf32>
    %177 = math.tanh %176 : vector<16x128xf32>
    %cst_73 = arith.constant 1.000000e+00 : f32
    %178 = vector.broadcast %cst_73 : f32 to vector<16x128xf32>
    %179 = arith.addf %178, %177 : vector<16x128xf32>
    %cst_74 = arith.constant 5.000000e-01 : f32
    %180 = vector.broadcast %cst_74 : f32 to vector<16x128xf32>
    %181 = arith.mulf %180, %179 : vector<16x128xf32>
    %182 = arith.mulf %169, %181 : vector<16x128xf32>
    %c0_75 = arith.constant 0 : index
    %c0_76 = arith.constant 0 : index
    %c0_77 = arith.constant 0 : index
    %183 = vector.load %arg14[%c0_75, %c0_76, %c0_77] : memref<2x128x64xf32, #tpu.memory_space<vmem>>, vector<1x128x64xf32>
    %184 = vector.shape_cast %183 : vector<1x128x64xf32> to vector<128x64xf32>
    %cst_78 = arith.constant dense<0.000000e+00> : vector<16x64xf32>
    %185 = tpu.matmul %182, %184, %cst_78 {dimension_numbers = #tpu.dot_dimension_numbers<[1], [0], [0], [1], [0, 0, 1, 1], [], []>} : vector<16x128xf32>, vector<128x64xf32>, vector<16x64xf32> -> vector<16x64xf32>
    %c0_79 = arith.constant 0 : index
    %c0_80 = arith.constant 0 : index
    %c0_81 = arith.constant 0 : index
    %186 = vector.load %arg15[%c0_79, %c0_80, %c0_81] : memref<2x1x64xf32, #tpu.memory_space<vmem>>, vector<1x1x64xf32>
    %187 = vector.shape_cast %186 : vector<1x1x64xf32> to vector<1x64xf32>
    %188 = vector.broadcast %187 : vector<1x64xf32> to vector<16x64xf32>
    %189 = arith.addf %185, %188 : vector<16x64xf32>
    %190 = arith.addf %189, %162 : vector<16x64xf32>
    %c0_82 = arith.constant 0 : index
    %c0_83 = arith.constant 0 : index
    %c0_84 = arith.constant 0 : index
    %191 = vector.load %arg16[%c0_82, %c0_83, %c0_84] : memref<2x1x64xf32, #tpu.memory_space<vmem>>, vector<1x1x64xf32>
    %192 = vector.shape_cast %191 : vector<1x1x64xf32> to vector<1x64xf32>
    %c0_85 = arith.constant 0 : index
    %c0_86 = arith.constant 0 : index
    %c0_87 = arith.constant 0 : index
    %193 = vector.load %arg17[%c0_85, %c0_86, %c0_87] : memref<2x1x64xf32, #tpu.memory_space<vmem>>, vector<1x1x64xf32>
    %194 = vector.shape_cast %193 : vector<1x1x64xf32> to vector<1x64xf32>
    %cst_88 = arith.constant dense<0.000000e+00> : vector<16xf32>
    %195 = vector.multi_reduction <add>, %190, %cst_88 [1] : vector<16x64xf32> to vector<16xf32>
    %196 = vector.shape_cast %195 : vector<16xf32> to vector<16x1xf32>
    %cst_89 = arith.constant 6.400000e+01 : f32
    %197 = vector.broadcast %cst_89 : f32 to vector<16x1xf32>
    %198 = arith.divf %196, %197 : vector<16x1xf32>
    %199 = vector.broadcast %198 : vector<16x1xf32> to vector<16x64xf32>
    %200 = arith.subf %190, %199 : vector<16x64xf32>
    %201 = arith.mulf %200, %200 : vector<16x64xf32>
    %cst_90 = arith.constant dense<0.000000e+00> : vector<16xf32>
    %202 = vector.multi_reduction <add>, %201, %cst_90 [1] : vector<16x64xf32> to vector<16xf32>
    %203 = vector.shape_cast %202 : vector<16xf32> to vector<16x1xf32>
    %cst_91 = arith.constant 6.400000e+01 : f32
    %204 = vector.broadcast %cst_91 : f32 to vector<16x1xf32>
    %205 = arith.divf %203, %204 : vector<16x1xf32>
    %206 = vector.broadcast %198 : vector<16x1xf32> to vector<16x64xf32>
    %207 = arith.subf %190, %206 : vector<16x64xf32>
    %cst_92 = arith.constant 9.99999996E-13 : f32
    %208 = vector.broadcast %cst_92 : f32 to vector<16x1xf32>
    %209 = arith.addf %205, %208 : vector<16x1xf32>
    %210 = math.rsqrt %209 : vector<16x1xf32>
    %211 = vector.broadcast %210 : vector<16x1xf32> to vector<16x64xf32>
    %212 = arith.mulf %207, %211 : vector<16x64xf32>
    %213 = vector.broadcast %192 : vector<1x64xf32> to vector<16x64xf32>
    %214 = arith.mulf %212, %213 : vector<16x64xf32>
    %215 = vector.broadcast %194 : vector<1x64xf32> to vector<16x64xf32>
    %216 = arith.addf %214, %215 : vector<16x64xf32>
    %c1 = arith.constant 1 : index
    %c0_93 = arith.constant 0 : index
    %c0_94 = arith.constant 0 : index
    %217 = vector.load %arg6[%c1, %c0_93, %c0_94] : memref<2x64x192xf32, #tpu.memory_space<vmem>>, vector<1x64x192xf32>
    %218 = vector.shape_cast %217 : vector<1x64x192xf32> to vector<64x192xf32>
    %cst_95 = arith.constant dense<0.000000e+00> : vector<16x192xf32>
    %219 = tpu.matmul %216, %218, %cst_95 {dimension_numbers = #tpu.dot_dimension_numbers<[1], [0], [0], [1], [0, 0, 1, 1], [], []>} : vector<16x64xf32>, vector<64x192xf32>, vector<16x192xf32> -> vector<16x192xf32>
    %c1_96 = arith.constant 1 : index
    %c0_97 = arith.constant 0 : index
    %c0_98 = arith.constant 0 : index
    %220 = vector.load %arg7[%c1_96, %c0_97, %c0_98] : memref<2x1x192xf32, #tpu.memory_space<vmem>>, vector<1x1x192xf32>
    %221 = vector.shape_cast %220 : vector<1x1x192xf32> to vector<1x192xf32>
    %222 = vector.broadcast %221 : vector<1x192xf32> to vector<16x192xf32>
    %223 = arith.addf %219, %222 : vector<16x192xf32>
    %224 = vector.extract_strided_slice %223 {offsets = [0, 0], sizes = [16, 16], strides = [1, 1]} : vector<16x192xf32> to vector<16x16xf32>
    %225 = vector.extract_strided_slice %223 {offsets = [0, 64], sizes = [16, 16], strides = [1, 1]} : vector<16x192xf32> to vector<16x16xf32>
    %226 = vector.extract_strided_slice %223 {offsets = [0, 128], sizes = [16, 16], strides = [1, 1]} : vector<16x192xf32> to vector<16x16xf32>
    %cst_99 = arith.constant dense<0.000000e+00> : vector<16x16xf32>
    %227 = tpu.matmul %224, %225, %cst_99 {dimension_numbers = #tpu.dot_dimension_numbers<[1], [1], [0], [0], [0, 0, 1, 0], [], []>} : vector<16x16xf32>, vector<16x16xf32>, vector<16x16xf32> -> vector<16x16xf32>
    %cst_100 = arith.constant 2.500000e-01 : f32
    %228 = vector.broadcast %cst_100 : f32 to vector<16x16xf32>
    %229 = arith.mulf %227, %228 : vector<16x16xf32>
    %230 = arith.addf %229, %48 : vector<16x16xf32>
    %cst_101 = arith.constant dense<0xFF800000> : vector<16xf32>
    %231 = vector.multi_reduction <maximumf>, %230, %cst_101 [1] : vector<16x16xf32> to vector<16xf32>
    %232 = vector.shape_cast %231 : vector<16xf32> to vector<16x1xf32>
    %233 = vector.broadcast %232 : vector<16x1xf32> to vector<16x16xf32>
    %234 = arith.subf %230, %233 : vector<16x16xf32>
    %235 = math.exp %234 : vector<16x16xf32>
    %cst_102 = arith.constant dense<0.000000e+00> : vector<16xf32>
    %236 = vector.multi_reduction <add>, %235, %cst_102 [1] : vector<16x16xf32> to vector<16xf32>
    %237 = vector.shape_cast %236 : vector<16xf32> to vector<16x1xf32>
    %238 = tpu.reciprocal %237 {approx = true} : vector<16x1xf32> -> vector<16x1xf32>
    %239 = vector.broadcast %238 : vector<16x1xf32> to vector<16x16xf32>
    %240 = arith.mulf %235, %239 : vector<16x16xf32>
    %cst_103 = arith.constant dense<0.000000e+00> : vector<16x16xf32>
    %241 = tpu.matmul %240, %226, %cst_103 {dimension_numbers = #tpu.dot_dimension_numbers<[1], [0], [0], [1], [0, 0, 1, 1], [], []>} : vector<16x16xf32>, vector<16x16xf32>, vector<16x16xf32> -> vector<16x16xf32>
    %242 = vector.extract_strided_slice %223 {offsets = [0, 16], sizes = [16, 16], strides = [1, 1]} : vector<16x192xf32> to vector<16x16xf32>
    %243 = vector.extract_strided_slice %223 {offsets = [0, 80], sizes = [16, 16], strides = [1, 1]} : vector<16x192xf32> to vector<16x16xf32>
    %244 = vector.extract_strided_slice %223 {offsets = [0, 144], sizes = [16, 16], strides = [1, 1]} : vector<16x192xf32> to vector<16x16xf32>
    %cst_104 = arith.constant dense<0.000000e+00> : vector<16x16xf32>
    %245 = tpu.matmul %242, %243, %cst_104 {dimension_numbers = #tpu.dot_dimension_numbers<[1], [1], [0], [0], [0, 0, 1, 0], [], []>} : vector<16x16xf32>, vector<16x16xf32>, vector<16x16xf32> -> vector<16x16xf32>
    %cst_105 = arith.constant 2.500000e-01 : f32
    %246 = vector.broadcast %cst_105 : f32 to vector<16x16xf32>
    %247 = arith.mulf %245, %246 : vector<16x16xf32>
    %248 = arith.addf %247, %48 : vector<16x16xf32>
    %cst_106 = arith.constant dense<0xFF800000> : vector<16xf32>
    %249 = vector.multi_reduction <maximumf>, %248, %cst_106 [1] : vector<16x16xf32> to vector<16xf32>
    %250 = vector.shape_cast %249 : vector<16xf32> to vector<16x1xf32>
    %251 = vector.broadcast %250 : vector<16x1xf32> to vector<16x16xf32>
    %252 = arith.subf %248, %251 : vector<16x16xf32>
    %253 = math.exp %252 : vector<16x16xf32>
    %cst_107 = arith.constant dense<0.000000e+00> : vector<16xf32>
    %254 = vector.multi_reduction <add>, %253, %cst_107 [1] : vector<16x16xf32> to vector<16xf32>
    %255 = vector.shape_cast %254 : vector<16xf32> to vector<16x1xf32>
    %256 = tpu.reciprocal %255 {approx = true} : vector<16x1xf32> -> vector<16x1xf32>
    %257 = vector.broadcast %256 : vector<16x1xf32> to vector<16x16xf32>
    %258 = arith.mulf %253, %257 : vector<16x16xf32>
    %cst_108 = arith.constant dense<0.000000e+00> : vector<16x16xf32>
    %259 = tpu.matmul %258, %244, %cst_108 {dimension_numbers = #tpu.dot_dimension_numbers<[1], [0], [0], [1], [0, 0, 1, 1], [], []>} : vector<16x16xf32>, vector<16x16xf32>, vector<16x16xf32> -> vector<16x16xf32>
    %260 = vector.extract_strided_slice %223 {offsets = [0, 32], sizes = [16, 16], strides = [1, 1]} : vector<16x192xf32> to vector<16x16xf32>
    %261 = vector.extract_strided_slice %223 {offsets = [0, 96], sizes = [16, 16], strides = [1, 1]} : vector<16x192xf32> to vector<16x16xf32>
    %262 = vector.extract_strided_slice %223 {offsets = [0, 160], sizes = [16, 16], strides = [1, 1]} : vector<16x192xf32> to vector<16x16xf32>
    %cst_109 = arith.constant dense<0.000000e+00> : vector<16x16xf32>
    %263 = tpu.matmul %260, %261, %cst_109 {dimension_numbers = #tpu.dot_dimension_numbers<[1], [1], [0], [0], [0, 0, 1, 0], [], []>} : vector<16x16xf32>, vector<16x16xf32>, vector<16x16xf32> -> vector<16x16xf32>
    %cst_110 = arith.constant 2.500000e-01 : f32
    %264 = vector.broadcast %cst_110 : f32 to vector<16x16xf32>
    %265 = arith.mulf %263, %264 : vector<16x16xf32>
    %266 = arith.addf %265, %48 : vector<16x16xf32>
    %cst_111 = arith.constant dense<0xFF800000> : vector<16xf32>
    %267 = vector.multi_reduction <maximumf>, %266, %cst_111 [1] : vector<16x16xf32> to vector<16xf32>
    %268 = vector.shape_cast %267 : vector<16xf32> to vector<16x1xf32>
    %269 = vector.broadcast %268 : vector<16x1xf32> to vector<16x16xf32>
    %270 = arith.subf %266, %269 : vector<16x16xf32>
    %271 = math.exp %270 : vector<16x16xf32>
    %cst_112 = arith.constant dense<0.000000e+00> : vector<16xf32>
    %272 = vector.multi_reduction <add>, %271, %cst_112 [1] : vector<16x16xf32> to vector<16xf32>
    %273 = vector.shape_cast %272 : vector<16xf32> to vector<16x1xf32>
    %274 = tpu.reciprocal %273 {approx = true} : vector<16x1xf32> -> vector<16x1xf32>
    %275 = vector.broadcast %274 : vector<16x1xf32> to vector<16x16xf32>
    %276 = arith.mulf %271, %275 : vector<16x16xf32>
    %cst_113 = arith.constant dense<0.000000e+00> : vector<16x16xf32>
    %277 = tpu.matmul %276, %262, %cst_113 {dimension_numbers = #tpu.dot_dimension_numbers<[1], [0], [0], [1], [0, 0, 1, 1], [], []>} : vector<16x16xf32>, vector<16x16xf32>, vector<16x16xf32> -> vector<16x16xf32>
    %278 = vector.extract_strided_slice %223 {offsets = [0, 48], sizes = [16, 16], strides = [1, 1]} : vector<16x192xf32> to vector<16x16xf32>
    %279 = vector.extract_strided_slice %223 {offsets = [0, 112], sizes = [16, 16], strides = [1, 1]} : vector<16x192xf32> to vector<16x16xf32>
    %280 = vector.extract_strided_slice %223 {offsets = [0, 176], sizes = [16, 16], strides = [1, 1]} : vector<16x192xf32> to vector<16x16xf32>
    %cst_114 = arith.constant dense<0.000000e+00> : vector<16x16xf32>
    %281 = tpu.matmul %278, %279, %cst_114 {dimension_numbers = #tpu.dot_dimension_numbers<[1], [1], [0], [0], [0, 0, 1, 0], [], []>} : vector<16x16xf32>, vector<16x16xf32>, vector<16x16xf32> -> vector<16x16xf32>
    %cst_115 = arith.constant 2.500000e-01 : f32
    %282 = vector.broadcast %cst_115 : f32 to vector<16x16xf32>
    %283 = arith.mulf %281, %282 : vector<16x16xf32>
    %284 = arith.addf %283, %48 : vector<16x16xf32>
    %cst_116 = arith.constant dense<0xFF800000> : vector<16xf32>
    %285 = vector.multi_reduction <maximumf>, %284, %cst_116 [1] : vector<16x16xf32> to vector<16xf32>
    %286 = vector.shape_cast %285 : vector<16xf32> to vector<16x1xf32>
    %287 = vector.broadcast %286 : vector<16x1xf32> to vector<16x16xf32>
    %288 = arith.subf %284, %287 : vector<16x16xf32>
    %289 = math.exp %288 : vector<16x16xf32>
    %cst_117 = arith.constant dense<0.000000e+00> : vector<16xf32>
    %290 = vector.multi_reduction <add>, %289, %cst_117 [1] : vector<16x16xf32> to vector<16xf32>
    %291 = vector.shape_cast %290 : vector<16xf32> to vector<16x1xf32>
    %292 = tpu.reciprocal %291 {approx = true} : vector<16x1xf32> -> vector<16x1xf32>
    %293 = vector.broadcast %292 : vector<16x1xf32> to vector<16x16xf32>
    %294 = arith.mulf %289, %293 : vector<16x16xf32>
    %cst_118 = arith.constant dense<0.000000e+00> : vector<16x16xf32>
    %295 = tpu.matmul %294, %280, %cst_118 {dimension_numbers = #tpu.dot_dimension_numbers<[1], [0], [0], [1], [0, 0, 1, 1], [], []>} : vector<16x16xf32>, vector<16x16xf32>, vector<16x16xf32> -> vector<16x16xf32>
    %296 = tpu.concatenate %241, %259, %277, %295 in 1 : vector<16x16xf32>, vector<16x16xf32>, vector<16x16xf32>, vector<16x16xf32> -> vector<16x64xf32>
    %c1_119 = arith.constant 1 : index
    %c0_120 = arith.constant 0 : index
    %c0_121 = arith.constant 0 : index
    %297 = vector.load %arg8[%c1_119, %c0_120, %c0_121] : memref<2x64x64xf32, #tpu.memory_space<vmem>>, vector<1x64x64xf32>
    %298 = vector.shape_cast %297 : vector<1x64x64xf32> to vector<64x64xf32>
    %cst_122 = arith.constant dense<0.000000e+00> : vector<16x64xf32>
    %299 = tpu.matmul %296, %298, %cst_122 {dimension_numbers = #tpu.dot_dimension_numbers<[1], [0], [0], [1], [0, 0, 1, 1], [], []>} : vector<16x64xf32>, vector<64x64xf32>, vector<16x64xf32> -> vector<16x64xf32>
    %c1_123 = arith.constant 1 : index
    %c0_124 = arith.constant 0 : index
    %c0_125 = arith.constant 0 : index
    %300 = vector.load %arg9[%c1_123, %c0_124, %c0_125] : memref<2x1x64xf32, #tpu.memory_space<vmem>>, vector<1x1x64xf32>
    %301 = vector.shape_cast %300 : vector<1x1x64xf32> to vector<1x64xf32>
    %302 = vector.broadcast %301 : vector<1x64xf32> to vector<16x64xf32>
    %303 = arith.addf %299, %302 : vector<16x64xf32>
    %304 = arith.addf %303, %216 : vector<16x64xf32>
    %c1_126 = arith.constant 1 : index
    %c0_127 = arith.constant 0 : index
    %c0_128 = arith.constant 0 : index
    %305 = vector.load %arg10[%c1_126, %c0_127, %c0_128] : memref<2x1x64xf32, #tpu.memory_space<vmem>>, vector<1x1x64xf32>
    %306 = vector.shape_cast %305 : vector<1x1x64xf32> to vector<1x64xf32>
    %c1_129 = arith.constant 1 : index
    %c0_130 = arith.constant 0 : index
    %c0_131 = arith.constant 0 : index
    %307 = vector.load %arg11[%c1_129, %c0_130, %c0_131] : memref<2x1x64xf32, #tpu.memory_space<vmem>>, vector<1x1x64xf32>
    %308 = vector.shape_cast %307 : vector<1x1x64xf32> to vector<1x64xf32>
    %cst_132 = arith.constant dense<0.000000e+00> : vector<16xf32>
    %309 = vector.multi_reduction <add>, %304, %cst_132 [1] : vector<16x64xf32> to vector<16xf32>
    %310 = vector.shape_cast %309 : vector<16xf32> to vector<16x1xf32>
    %cst_133 = arith.constant 6.400000e+01 : f32
    %311 = vector.broadcast %cst_133 : f32 to vector<16x1xf32>
    %312 = arith.divf %310, %311 : vector<16x1xf32>
    %313 = vector.broadcast %312 : vector<16x1xf32> to vector<16x64xf32>
    %314 = arith.subf %304, %313 : vector<16x64xf32>
    %315 = arith.mulf %314, %314 : vector<16x64xf32>
    %cst_134 = arith.constant dense<0.000000e+00> : vector<16xf32>
    %316 = vector.multi_reduction <add>, %315, %cst_134 [1] : vector<16x64xf32> to vector<16xf32>
    %317 = vector.shape_cast %316 : vector<16xf32> to vector<16x1xf32>
    %cst_135 = arith.constant 6.400000e+01 : f32
    %318 = vector.broadcast %cst_135 : f32 to vector<16x1xf32>
    %319 = arith.divf %317, %318 : vector<16x1xf32>
    %320 = vector.broadcast %312 : vector<16x1xf32> to vector<16x64xf32>
    %321 = arith.subf %304, %320 : vector<16x64xf32>
    %cst_136 = arith.constant 9.99999996E-13 : f32
    %322 = vector.broadcast %cst_136 : f32 to vector<16x1xf32>
    %323 = arith.addf %319, %322 : vector<16x1xf32>
    %324 = math.rsqrt %323 : vector<16x1xf32>
    %325 = vector.broadcast %324 : vector<16x1xf32> to vector<16x64xf32>
    %326 = arith.mulf %321, %325 : vector<16x64xf32>
    %327 = vector.broadcast %306 : vector<1x64xf32> to vector<16x64xf32>
    %328 = arith.mulf %326, %327 : vector<16x64xf32>
    %329 = vector.broadcast %308 : vector<1x64xf32> to vector<16x64xf32>
    %330 = arith.addf %328, %329 : vector<16x64xf32>
    %c1_137 = arith.constant 1 : index
    %c0_138 = arith.constant 0 : index
    %c0_139 = arith.constant 0 : index
    %331 = vector.load %arg12[%c1_137, %c0_138, %c0_139] : memref<2x64x128xf32, #tpu.memory_space<vmem>>, vector<1x64x128xf32>
    %332 = vector.shape_cast %331 : vector<1x64x128xf32> to vector<64x128xf32>
    %cst_140 = arith.constant dense<0.000000e+00> : vector<16x128xf32>
    %333 = tpu.matmul %330, %332, %cst_140 {dimension_numbers = #tpu.dot_dimension_numbers<[1], [0], [0], [1], [0, 0, 1, 1], [], []>} : vector<16x64xf32>, vector<64x128xf32>, vector<16x128xf32> -> vector<16x128xf32>
    %c1_141 = arith.constant 1 : index
    %c0_142 = arith.constant 0 : index
    %c0_143 = arith.constant 0 : index
    %334 = vector.load %arg13[%c1_141, %c0_142, %c0_143] : memref<2x1x128xf32, #tpu.memory_space<vmem>>, vector<1x1x128xf32>
    %335 = vector.shape_cast %334 : vector<1x1x128xf32> to vector<1x128xf32>
    %336 = vector.broadcast %335 : vector<1x128xf32> to vector<16x128xf32>
    %337 = arith.addf %333, %336 : vector<16x128xf32>
    %338 = arith.mulf %337, %337 : vector<16x128xf32>
    %339 = arith.mulf %337, %338 : vector<16x128xf32>
    %cst_144 = arith.constant 4.471500e-02 : f32
    %340 = vector.broadcast %cst_144 : f32 to vector<16x128xf32>
    %341 = arith.mulf %340, %339 : vector<16x128xf32>
    %342 = arith.addf %337, %341 : vector<16x128xf32>
    %cst_145 = arith.constant 0.797884583 : f32
    %343 = vector.broadcast %cst_145 : f32 to vector<16x128xf32>
    %344 = arith.mulf %343, %342 : vector<16x128xf32>
    %345 = math.tanh %344 : vector<16x128xf32>
    %cst_146 = arith.constant 1.000000e+00 : f32
    %346 = vector.broadcast %cst_146 : f32 to vector<16x128xf32>
    %347 = arith.addf %346, %345 : vector<16x128xf32>
    %cst_147 = arith.constant 5.000000e-01 : f32
    %348 = vector.broadcast %cst_147 : f32 to vector<16x128xf32>
    %349 = arith.mulf %348, %347 : vector<16x128xf32>
    %350 = arith.mulf %337, %349 : vector<16x128xf32>
    %c1_148 = arith.constant 1 : index
    %c0_149 = arith.constant 0 : index
    %c0_150 = arith.constant 0 : index
    %351 = vector.load %arg14[%c1_148, %c0_149, %c0_150] : memref<2x128x64xf32, #tpu.memory_space<vmem>>, vector<1x128x64xf32>
    %352 = vector.shape_cast %351 : vector<1x128x64xf32> to vector<128x64xf32>
    %cst_151 = arith.constant dense<0.000000e+00> : vector<16x64xf32>
    %353 = tpu.matmul %350, %352, %cst_151 {dimension_numbers = #tpu.dot_dimension_numbers<[1], [0], [0], [1], [0, 0, 1, 1], [], []>} : vector<16x128xf32>, vector<128x64xf32>, vector<16x64xf32> -> vector<16x64xf32>
    %c1_152 = arith.constant 1 : index
    %c0_153 = arith.constant 0 : index
    %c0_154 = arith.constant 0 : index
    %354 = vector.load %arg15[%c1_152, %c0_153, %c0_154] : memref<2x1x64xf32, #tpu.memory_space<vmem>>, vector<1x1x64xf32>
    %355 = vector.shape_cast %354 : vector<1x1x64xf32> to vector<1x64xf32>
    %356 = vector.broadcast %355 : vector<1x64xf32> to vector<16x64xf32>
    %357 = arith.addf %353, %356 : vector<16x64xf32>
    %358 = arith.addf %357, %330 : vector<16x64xf32>
    %c1_155 = arith.constant 1 : index
    %c0_156 = arith.constant 0 : index
    %c0_157 = arith.constant 0 : index
    %359 = vector.load %arg16[%c1_155, %c0_156, %c0_157] : memref<2x1x64xf32, #tpu.memory_space<vmem>>, vector<1x1x64xf32>
    %360 = vector.shape_cast %359 : vector<1x1x64xf32> to vector<1x64xf32>
    %c1_158 = arith.constant 1 : index
    %c0_159 = arith.constant 0 : index
    %c0_160 = arith.constant 0 : index
    %361 = vector.load %arg17[%c1_158, %c0_159, %c0_160] : memref<2x1x64xf32, #tpu.memory_space<vmem>>, vector<1x1x64xf32>
    %362 = vector.shape_cast %361 : vector<1x1x64xf32> to vector<1x64xf32>
    %cst_161 = arith.constant dense<0.000000e+00> : vector<16xf32>
    %363 = vector.multi_reduction <add>, %358, %cst_161 [1] : vector<16x64xf32> to vector<16xf32>
    %364 = vector.shape_cast %363 : vector<16xf32> to vector<16x1xf32>
    %cst_162 = arith.constant 6.400000e+01 : f32
    %365 = vector.broadcast %cst_162 : f32 to vector<16x1xf32>
    %366 = arith.divf %364, %365 : vector<16x1xf32>
    %367 = vector.broadcast %366 : vector<16x1xf32> to vector<16x64xf32>
    %368 = arith.subf %358, %367 : vector<16x64xf32>
    %369 = arith.mulf %368, %368 : vector<16x64xf32>
    %cst_163 = arith.constant dense<0.000000e+00> : vector<16xf32>
    %370 = vector.multi_reduction <add>, %369, %cst_163 [1] : vector<16x64xf32> to vector<16xf32>
    %371 = vector.shape_cast %370 : vector<16xf32> to vector<16x1xf32>
    %cst_164 = arith.constant 6.400000e+01 : f32
    %372 = vector.broadcast %cst_164 : f32 to vector<16x1xf32>
    %373 = arith.divf %371, %372 : vector<16x1xf32>
    %374 = vector.broadcast %366 : vector<16x1xf32> to vector<16x64xf32>
    %375 = arith.subf %358, %374 : vector<16x64xf32>
    %cst_165 = arith.constant 9.99999996E-13 : f32
    %376 = vector.broadcast %cst_165 : f32 to vector<16x1xf32>
    %377 = arith.addf %373, %376 : vector<16x1xf32>
    %378 = math.rsqrt %377 : vector<16x1xf32>
    %379 = vector.broadcast %378 : vector<16x1xf32> to vector<16x64xf32>
    %380 = arith.mulf %375, %379 : vector<16x64xf32>
    %381 = vector.broadcast %360 : vector<1x64xf32> to vector<16x64xf32>
    %382 = arith.mulf %380, %381 : vector<16x64xf32>
    %383 = vector.broadcast %362 : vector<1x64xf32> to vector<16x64xf32>
    %384 = arith.addf %382, %383 : vector<16x64xf32>
    %385 = tpu.iota {dimensions = array<i32: 1>} : vector<1x192xi32>
    %c32_i32 = arith.constant 32 : i32
    %386 = vector.broadcast %c32_i32 : i32 to vector<1x192xi32>
    %387 = arith.andi %385, %386 : vector<1x192xi32>
    %c0_i32_166 = arith.constant 0 : i32
    %388 = vector.broadcast %c0_i32_166 : i32 to vector<1x192xi32>
    %389 = arith.cmpi eq, %387, %388 : vector<1x192xi32>
    %390 = tpu.iota {dimensions = array<i32: 1>} : vector<1x64xi32>
    %c32_i32_167 = arith.constant 32 : i32
    %391 = vector.broadcast %c32_i32_167 : i32 to vector<1x64xi32>
    %392 = arith.cmpi slt, %390, %391 : vector<1x64xi32>
    %c0_168 = arith.constant 0 : index
    %c0_169 = arith.constant 0 : index
    %c0_170 = arith.constant 0 : index
    %393 = vector.load %arg18[%c0_168, %c0_169, %c0_170] : memref<2x64x192xf32, #tpu.memory_space<vmem>>, vector<1x64x192xf32>
    %394 = vector.shape_cast %393 : vector<1x64x192xf32> to vector<64x192xf32>
    %cst_171 = arith.constant dense<0.000000e+00> : vector<16x192xf32>
    %395 = tpu.matmul %384, %394, %cst_171 {dimension_numbers = #tpu.dot_dimension_numbers<[1], [0], [0], [1], [0, 0, 1, 1], [], []>} : vector<16x64xf32>, vector<64x192xf32>, vector<16x192xf32> -> vector<16x192xf32>
    %c0_172 = arith.constant 0 : index
    %c0_173 = arith.constant 0 : index
    %c0_174 = arith.constant 0 : index
    %396 = vector.load %arg19[%c0_172, %c0_173, %c0_174] : memref<2x1x192xf32, #tpu.memory_space<vmem>>, vector<1x1x192xf32>
    %397 = vector.shape_cast %396 : vector<1x1x192xf32> to vector<1x192xf32>
    %398 = vector.broadcast %397 : vector<1x192xf32> to vector<16x192xf32>
    %399 = arith.addf %395, %398 : vector<16x192xf32>
    %c0_175 = arith.constant 0 : index
    %c0_176 = arith.constant 0 : index
    %c0_177 = arith.constant 0 : index
    %400 = vector.load %arg20[%c0_175, %c0_176, %c0_177] : memref<2x64x192xf32, #tpu.memory_space<vmem>>, vector<1x64x192xf32>
    %401 = vector.shape_cast %400 : vector<1x64x192xf32> to vector<64x192xf32>
    %c0_178 = arith.constant 0 : index
    %c0_179 = arith.constant 0 : index
    %c0_180 = arith.constant 0 : index
    %402 = vector.load %arg21[%c0_178, %c0_179, %c0_180] : memref<2x1x192xf32, #tpu.memory_space<vmem>>, vector<1x1x192xf32>
    %403 = vector.shape_cast %402 : vector<1x1x192xf32> to vector<1x192xf32>
    %cst_181 = arith.constant 0.000000e+00 : f32
    %404 = vector.broadcast %cst_181 : f32 to vector<2x64xf32>
    %405 = vector.extract_strided_slice %399 {offsets = [0, 0], sizes = [2, 192], strides = [1, 1]} : vector<16x192xf32> to vector<2x192xf32>
    %406 = vector.extract_strided_slice %399 {offsets = [14, 0], sizes = [2, 192], strides = [1, 1]} : vector<16x192xf32> to vector<2x192xf32>
    %407 = vector.shape_cast %389 : vector<1x192xi1> to vector<1x192xi1>
    %408 = vector.broadcast %407 : vector<1x192xi1> to vector<2x192xi1>
    %409 = arith.select %408, %405, %406 : vector<2x192xi1>, vector<2x192xf32>
    %cst_182 = arith.constant dense<0.000000e+00> : vector<2x192xf32>
    %410 = tpu.matmul %404, %401, %cst_182 {dimension_numbers = #tpu.dot_dimension_numbers<[1], [0], [0], [1], [0, 0, 1, 1], [], []>} : vector<2x64xf32>, vector<64x192xf32>, vector<2x192xf32> -> vector<2x192xf32>
    %411 = vector.broadcast %403 : vector<1x192xf32> to vector<2x192xf32>
    %412 = arith.addf %410, %411 : vector<2x192xf32>
    %413 = vector.extract_strided_slice %409 {offsets = [0, 0], sizes = [2, 64], strides = [1, 1]} : vector<2x192xf32> to vector<2x64xf32>
    %414 = vector.extract_strided_slice %412 {offsets = [0, 0], sizes = [2, 64], strides = [1, 1]} : vector<2x192xf32> to vector<2x64xf32>
    %415 = arith.addf %413, %414 : vector<2x64xf32>
    %416 = arith.negf %415 : vector<2x64xf32>
    %417 = math.exp %416 : vector<2x64xf32>
    %cst_183 = arith.constant 1.000000e+00 : f32
    %418 = vector.broadcast %cst_183 : f32 to vector<2x64xf32>
    %419 = arith.addf %418, %417 : vector<2x64xf32>
    %420 = arith.divf %418, %419 : vector<2x64xf32>
    %421 = vector.extract_strided_slice %409 {offsets = [0, 64], sizes = [2, 64], strides = [1, 1]} : vector<2x192xf32> to vector<2x64xf32>
    %422 = vector.extract_strided_slice %412 {offsets = [0, 64], sizes = [2, 64], strides = [1, 1]} : vector<2x192xf32> to vector<2x64xf32>
    %423 = arith.addf %421, %422 : vector<2x64xf32>
    %424 = arith.negf %423 : vector<2x64xf32>
    %425 = math.exp %424 : vector<2x64xf32>
    %cst_184 = arith.constant 1.000000e+00 : f32
    %426 = vector.broadcast %cst_184 : f32 to vector<2x64xf32>
    %427 = arith.addf %426, %425 : vector<2x64xf32>
    %428 = arith.divf %426, %427 : vector<2x64xf32>
    %429 = vector.extract_strided_slice %409 {offsets = [0, 128], sizes = [2, 64], strides = [1, 1]} : vector<2x192xf32> to vector<2x64xf32>
    %430 = vector.extract_strided_slice %412 {offsets = [0, 128], sizes = [2, 64], strides = [1, 1]} : vector<2x192xf32> to vector<2x64xf32>
    %431 = arith.mulf %420, %430 : vector<2x64xf32>
    %432 = arith.addf %429, %431 : vector<2x64xf32>
    %433 = math.tanh %432 : vector<2x64xf32>
    %cst_185 = arith.constant 1.000000e+00 : f32
    %434 = vector.broadcast %cst_185 : f32 to vector<2x64xf32>
    %435 = arith.subf %434, %428 : vector<2x64xf32>
    %436 = arith.mulf %435, %433 : vector<2x64xf32>
    %437 = arith.mulf %428, %404 : vector<2x64xf32>
    %438 = arith.addf %436, %437 : vector<2x64xf32>
    %439 = vector.extract_strided_slice %399 {offsets = [2, 0], sizes = [2, 192], strides = [1, 1]} : vector<16x192xf32> to vector<2x192xf32>
    %440 = vector.extract_strided_slice %399 {offsets = [12, 0], sizes = [2, 192], strides = [1, 1]} : vector<16x192xf32> to vector<2x192xf32>
    %441 = vector.shape_cast %389 : vector<1x192xi1> to vector<1x192xi1>
    %442 = vector.broadcast %441 : vector<1x192xi1> to vector<2x192xi1>
    %443 = arith.select %442, %439, %440 : vector<2x192xi1>, vector<2x192xf32>
    %cst_186 = arith.constant dense<0.000000e+00> : vector<2x192xf32>
    %444 = tpu.matmul %438, %401, %cst_186 {dimension_numbers = #tpu.dot_dimension_numbers<[1], [0], [0], [1], [0, 0, 1, 1], [], []>} : vector<2x64xf32>, vector<64x192xf32>, vector<2x192xf32> -> vector<2x192xf32>
    %445 = vector.broadcast %403 : vector<1x192xf32> to vector<2x192xf32>
    %446 = arith.addf %444, %445 : vector<2x192xf32>
    %447 = vector.extract_strided_slice %443 {offsets = [0, 0], sizes = [2, 64], strides = [1, 1]} : vector<2x192xf32> to vector<2x64xf32>
    %448 = vector.extract_strided_slice %446 {offsets = [0, 0], sizes = [2, 64], strides = [1, 1]} : vector<2x192xf32> to vector<2x64xf32>
    %449 = arith.addf %447, %448 : vector<2x64xf32>
    %450 = arith.negf %449 : vector<2x64xf32>
    %451 = math.exp %450 : vector<2x64xf32>
    %cst_187 = arith.constant 1.000000e+00 : f32
    %452 = vector.broadcast %cst_187 : f32 to vector<2x64xf32>
    %453 = arith.addf %452, %451 : vector<2x64xf32>
    %454 = arith.divf %452, %453 : vector<2x64xf32>
    %455 = vector.extract_strided_slice %443 {offsets = [0, 64], sizes = [2, 64], strides = [1, 1]} : vector<2x192xf32> to vector<2x64xf32>
    %456 = vector.extract_strided_slice %446 {offsets = [0, 64], sizes = [2, 64], strides = [1, 1]} : vector<2x192xf32> to vector<2x64xf32>
    %457 = arith.addf %455, %456 : vector<2x64xf32>
    %458 = arith.negf %457 : vector<2x64xf32>
    %459 = math.exp %458 : vector<2x64xf32>
    %cst_188 = arith.constant 1.000000e+00 : f32
    %460 = vector.broadcast %cst_188 : f32 to vector<2x64xf32>
    %461 = arith.addf %460, %459 : vector<2x64xf32>
    %462 = arith.divf %460, %461 : vector<2x64xf32>
    %463 = vector.extract_strided_slice %443 {offsets = [0, 128], sizes = [2, 64], strides = [1, 1]} : vector<2x192xf32> to vector<2x64xf32>
    %464 = vector.extract_strided_slice %446 {offsets = [0, 128], sizes = [2, 64], strides = [1, 1]} : vector<2x192xf32> to vector<2x64xf32>
    %465 = arith.mulf %454, %464 : vector<2x64xf32>
    %466 = arith.addf %463, %465 : vector<2x64xf32>
    %467 = math.tanh %466 : vector<2x64xf32>
    %cst_189 = arith.constant 1.000000e+00 : f32
    %468 = vector.broadcast %cst_189 : f32 to vector<2x64xf32>
    %469 = arith.subf %468, %462 : vector<2x64xf32>
    %470 = arith.mulf %469, %467 : vector<2x64xf32>
    %471 = arith.mulf %462, %438 : vector<2x64xf32>
    %472 = arith.addf %470, %471 : vector<2x64xf32>
    %473 = vector.extract_strided_slice %399 {offsets = [4, 0], sizes = [2, 192], strides = [1, 1]} : vector<16x192xf32> to vector<2x192xf32>
    %474 = vector.extract_strided_slice %399 {offsets = [10, 0], sizes = [2, 192], strides = [1, 1]} : vector<16x192xf32> to vector<2x192xf32>
    %475 = vector.shape_cast %389 : vector<1x192xi1> to vector<1x192xi1>
    %476 = vector.broadcast %475 : vector<1x192xi1> to vector<2x192xi1>
    %477 = arith.select %476, %473, %474 : vector<2x192xi1>, vector<2x192xf32>
    %cst_190 = arith.constant dense<0.000000e+00> : vector<2x192xf32>
    %478 = tpu.matmul %472, %401, %cst_190 {dimension_numbers = #tpu.dot_dimension_numbers<[1], [0], [0], [1], [0, 0, 1, 1], [], []>} : vector<2x64xf32>, vector<64x192xf32>, vector<2x192xf32> -> vector<2x192xf32>
    %479 = vector.broadcast %403 : vector<1x192xf32> to vector<2x192xf32>
    %480 = arith.addf %478, %479 : vector<2x192xf32>
    %481 = vector.extract_strided_slice %477 {offsets = [0, 0], sizes = [2, 64], strides = [1, 1]} : vector<2x192xf32> to vector<2x64xf32>
    %482 = vector.extract_strided_slice %480 {offsets = [0, 0], sizes = [2, 64], strides = [1, 1]} : vector<2x192xf32> to vector<2x64xf32>
    %483 = arith.addf %481, %482 : vector<2x64xf32>
    %484 = arith.negf %483 : vector<2x64xf32>
    %485 = math.exp %484 : vector<2x64xf32>
    %cst_191 = arith.constant 1.000000e+00 : f32
    %486 = vector.broadcast %cst_191 : f32 to vector<2x64xf32>
    %487 = arith.addf %486, %485 : vector<2x64xf32>
    %488 = arith.divf %486, %487 : vector<2x64xf32>
    %489 = vector.extract_strided_slice %477 {offsets = [0, 64], sizes = [2, 64], strides = [1, 1]} : vector<2x192xf32> to vector<2x64xf32>
    %490 = vector.extract_strided_slice %480 {offsets = [0, 64], sizes = [2, 64], strides = [1, 1]} : vector<2x192xf32> to vector<2x64xf32>
    %491 = arith.addf %489, %490 : vector<2x64xf32>
    %492 = arith.negf %491 : vector<2x64xf32>
    %493 = math.exp %492 : vector<2x64xf32>
    %cst_192 = arith.constant 1.000000e+00 : f32
    %494 = vector.broadcast %cst_192 : f32 to vector<2x64xf32>
    %495 = arith.addf %494, %493 : vector<2x64xf32>
    %496 = arith.divf %494, %495 : vector<2x64xf32>
    %497 = vector.extract_strided_slice %477 {offsets = [0, 128], sizes = [2, 64], strides = [1, 1]} : vector<2x192xf32> to vector<2x64xf32>
    %498 = vector.extract_strided_slice %480 {offsets = [0, 128], sizes = [2, 64], strides = [1, 1]} : vector<2x192xf32> to vector<2x64xf32>
    %499 = arith.mulf %488, %498 : vector<2x64xf32>
    %500 = arith.addf %497, %499 : vector<2x64xf32>
    %501 = math.tanh %500 : vector<2x64xf32>
    %cst_193 = arith.constant 1.000000e+00 : f32
    %502 = vector.broadcast %cst_193 : f32 to vector<2x64xf32>
    %503 = arith.subf %502, %496 : vector<2x64xf32>
    %504 = arith.mulf %503, %501 : vector<2x64xf32>
    %505 = arith.mulf %496, %472 : vector<2x64xf32>
    %506 = arith.addf %504, %505 : vector<2x64xf32>
    %507 = vector.extract_strided_slice %399 {offsets = [6, 0], sizes = [2, 192], strides = [1, 1]} : vector<16x192xf32> to vector<2x192xf32>
    %508 = vector.extract_strided_slice %399 {offsets = [8, 0], sizes = [2, 192], strides = [1, 1]} : vector<16x192xf32> to vector<2x192xf32>
    %509 = vector.shape_cast %389 : vector<1x192xi1> to vector<1x192xi1>
    %510 = vector.broadcast %509 : vector<1x192xi1> to vector<2x192xi1>
    %511 = arith.select %510, %507, %508 : vector<2x192xi1>, vector<2x192xf32>
    %cst_194 = arith.constant dense<0.000000e+00> : vector<2x192xf32>
    %512 = tpu.matmul %506, %401, %cst_194 {dimension_numbers = #tpu.dot_dimension_numbers<[1], [0], [0], [1], [0, 0, 1, 1], [], []>} : vector<2x64xf32>, vector<64x192xf32>, vector<2x192xf32> -> vector<2x192xf32>
    %513 = vector.broadcast %403 : vector<1x192xf32> to vector<2x192xf32>
    %514 = arith.addf %512, %513 : vector<2x192xf32>
    %515 = vector.extract_strided_slice %511 {offsets = [0, 0], sizes = [2, 64], strides = [1, 1]} : vector<2x192xf32> to vector<2x64xf32>
    %516 = vector.extract_strided_slice %514 {offsets = [0, 0], sizes = [2, 64], strides = [1, 1]} : vector<2x192xf32> to vector<2x64xf32>
    %517 = arith.addf %515, %516 : vector<2x64xf32>
    %518 = arith.negf %517 : vector<2x64xf32>
    %519 = math.exp %518 : vector<2x64xf32>
    %cst_195 = arith.constant 1.000000e+00 : f32
    %520 = vector.broadcast %cst_195 : f32 to vector<2x64xf32>
    %521 = arith.addf %520, %519 : vector<2x64xf32>
    %522 = arith.divf %520, %521 : vector<2x64xf32>
    %523 = vector.extract_strided_slice %511 {offsets = [0, 64], sizes = [2, 64], strides = [1, 1]} : vector<2x192xf32> to vector<2x64xf32>
    %524 = vector.extract_strided_slice %514 {offsets = [0, 64], sizes = [2, 64], strides = [1, 1]} : vector<2x192xf32> to vector<2x64xf32>
    %525 = arith.addf %523, %524 : vector<2x64xf32>
    %526 = arith.negf %525 : vector<2x64xf32>
    %527 = math.exp %526 : vector<2x64xf32>
    %cst_196 = arith.constant 1.000000e+00 : f32
    %528 = vector.broadcast %cst_196 : f32 to vector<2x64xf32>
    %529 = arith.addf %528, %527 : vector<2x64xf32>
    %530 = arith.divf %528, %529 : vector<2x64xf32>
    %531 = vector.extract_strided_slice %511 {offsets = [0, 128], sizes = [2, 64], strides = [1, 1]} : vector<2x192xf32> to vector<2x64xf32>
    %532 = vector.extract_strided_slice %514 {offsets = [0, 128], sizes = [2, 64], strides = [1, 1]} : vector<2x192xf32> to vector<2x64xf32>
    %533 = arith.mulf %522, %532 : vector<2x64xf32>
    %534 = arith.addf %531, %533 : vector<2x64xf32>
    %535 = math.tanh %534 : vector<2x64xf32>
    %cst_197 = arith.constant 1.000000e+00 : f32
    %536 = vector.broadcast %cst_197 : f32 to vector<2x64xf32>
    %537 = arith.subf %536, %530 : vector<2x64xf32>
    %538 = arith.mulf %537, %535 : vector<2x64xf32>
    %539 = arith.mulf %530, %506 : vector<2x64xf32>
    %540 = arith.addf %538, %539 : vector<2x64xf32>
    %541 = vector.extract_strided_slice %399 {offsets = [8, 0], sizes = [2, 192], strides = [1, 1]} : vector<16x192xf32> to vector<2x192xf32>
    %542 = vector.extract_strided_slice %399 {offsets = [6, 0], sizes = [2, 192], strides = [1, 1]} : vector<16x192xf32> to vector<2x192xf32>
    %543 = vector.shape_cast %389 : vector<1x192xi1> to vector<1x192xi1>
    %544 = vector.broadcast %543 : vector<1x192xi1> to vector<2x192xi1>
    %545 = arith.select %544, %541, %542 : vector<2x192xi1>, vector<2x192xf32>
    %cst_198 = arith.constant dense<0.000000e+00> : vector<2x192xf32>
    %546 = tpu.matmul %540, %401, %cst_198 {dimension_numbers = #tpu.dot_dimension_numbers<[1], [0], [0], [1], [0, 0, 1, 1], [], []>} : vector<2x64xf32>, vector<64x192xf32>, vector<2x192xf32> -> vector<2x192xf32>
    %547 = vector.broadcast %403 : vector<1x192xf32> to vector<2x192xf32>
    %548 = arith.addf %546, %547 : vector<2x192xf32>
    %549 = vector.extract_strided_slice %545 {offsets = [0, 0], sizes = [2, 64], strides = [1, 1]} : vector<2x192xf32> to vector<2x64xf32>
    %550 = vector.extract_strided_slice %548 {offsets = [0, 0], sizes = [2, 64], strides = [1, 1]} : vector<2x192xf32> to vector<2x64xf32>
    %551 = arith.addf %549, %550 : vector<2x64xf32>
    %552 = arith.negf %551 : vector<2x64xf32>
    %553 = math.exp %552 : vector<2x64xf32>
    %cst_199 = arith.constant 1.000000e+00 : f32
    %554 = vector.broadcast %cst_199 : f32 to vector<2x64xf32>
    %555 = arith.addf %554, %553 : vector<2x64xf32>
    %556 = arith.divf %554, %555 : vector<2x64xf32>
    %557 = vector.extract_strided_slice %545 {offsets = [0, 64], sizes = [2, 64], strides = [1, 1]} : vector<2x192xf32> to vector<2x64xf32>
    %558 = vector.extract_strided_slice %548 {offsets = [0, 64], sizes = [2, 64], strides = [1, 1]} : vector<2x192xf32> to vector<2x64xf32>
    %559 = arith.addf %557, %558 : vector<2x64xf32>
    %560 = arith.negf %559 : vector<2x64xf32>
    %561 = math.exp %560 : vector<2x64xf32>
    %cst_200 = arith.constant 1.000000e+00 : f32
    %562 = vector.broadcast %cst_200 : f32 to vector<2x64xf32>
    %563 = arith.addf %562, %561 : vector<2x64xf32>
    %564 = arith.divf %562, %563 : vector<2x64xf32>
    %565 = vector.extract_strided_slice %545 {offsets = [0, 128], sizes = [2, 64], strides = [1, 1]} : vector<2x192xf32> to vector<2x64xf32>
    %566 = vector.extract_strided_slice %548 {offsets = [0, 128], sizes = [2, 64], strides = [1, 1]} : vector<2x192xf32> to vector<2x64xf32>
    %567 = arith.mulf %556, %566 : vector<2x64xf32>
    %568 = arith.addf %565, %567 : vector<2x64xf32>
    %569 = math.tanh %568 : vector<2x64xf32>
    %cst_201 = arith.constant 1.000000e+00 : f32
    %570 = vector.broadcast %cst_201 : f32 to vector<2x64xf32>
    %571 = arith.subf %570, %564 : vector<2x64xf32>
    %572 = arith.mulf %571, %569 : vector<2x64xf32>
    %573 = arith.mulf %564, %540 : vector<2x64xf32>
    %574 = arith.addf %572, %573 : vector<2x64xf32>
    %575 = vector.extract_strided_slice %399 {offsets = [10, 0], sizes = [2, 192], strides = [1, 1]} : vector<16x192xf32> to vector<2x192xf32>
    %576 = vector.extract_strided_slice %399 {offsets = [4, 0], sizes = [2, 192], strides = [1, 1]} : vector<16x192xf32> to vector<2x192xf32>
    %577 = vector.shape_cast %389 : vector<1x192xi1> to vector<1x192xi1>
    %578 = vector.broadcast %577 : vector<1x192xi1> to vector<2x192xi1>
    %579 = arith.select %578, %575, %576 : vector<2x192xi1>, vector<2x192xf32>
    %cst_202 = arith.constant dense<0.000000e+00> : vector<2x192xf32>
    %580 = tpu.matmul %574, %401, %cst_202 {dimension_numbers = #tpu.dot_dimension_numbers<[1], [0], [0], [1], [0, 0, 1, 1], [], []>} : vector<2x64xf32>, vector<64x192xf32>, vector<2x192xf32> -> vector<2x192xf32>
    %581 = vector.broadcast %403 : vector<1x192xf32> to vector<2x192xf32>
    %582 = arith.addf %580, %581 : vector<2x192xf32>
    %583 = vector.extract_strided_slice %579 {offsets = [0, 0], sizes = [2, 64], strides = [1, 1]} : vector<2x192xf32> to vector<2x64xf32>
    %584 = vector.extract_strided_slice %582 {offsets = [0, 0], sizes = [2, 64], strides = [1, 1]} : vector<2x192xf32> to vector<2x64xf32>
    %585 = arith.addf %583, %584 : vector<2x64xf32>
    %586 = arith.negf %585 : vector<2x64xf32>
    %587 = math.exp %586 : vector<2x64xf32>
    %cst_203 = arith.constant 1.000000e+00 : f32
    %588 = vector.broadcast %cst_203 : f32 to vector<2x64xf32>
    %589 = arith.addf %588, %587 : vector<2x64xf32>
    %590 = arith.divf %588, %589 : vector<2x64xf32>
    %591 = vector.extract_strided_slice %579 {offsets = [0, 64], sizes = [2, 64], strides = [1, 1]} : vector<2x192xf32> to vector<2x64xf32>
    %592 = vector.extract_strided_slice %582 {offsets = [0, 64], sizes = [2, 64], strides = [1, 1]} : vector<2x192xf32> to vector<2x64xf32>
    %593 = arith.addf %591, %592 : vector<2x64xf32>
    %594 = arith.negf %593 : vector<2x64xf32>
    %595 = math.exp %594 : vector<2x64xf32>
    %cst_204 = arith.constant 1.000000e+00 : f32
    %596 = vector.broadcast %cst_204 : f32 to vector<2x64xf32>
    %597 = arith.addf %596, %595 : vector<2x64xf32>
    %598 = arith.divf %596, %597 : vector<2x64xf32>
    %599 = vector.extract_strided_slice %579 {offsets = [0, 128], sizes = [2, 64], strides = [1, 1]} : vector<2x192xf32> to vector<2x64xf32>
    %600 = vector.extract_strided_slice %582 {offsets = [0, 128], sizes = [2, 64], strides = [1, 1]} : vector<2x192xf32> to vector<2x64xf32>
    %601 = arith.mulf %590, %600 : vector<2x64xf32>
    %602 = arith.addf %599, %601 : vector<2x64xf32>
    %603 = math.tanh %602 : vector<2x64xf32>
    %cst_205 = arith.constant 1.000000e+00 : f32
    %604 = vector.broadcast %cst_205 : f32 to vector<2x64xf32>
    %605 = arith.subf %604, %598 : vector<2x64xf32>
    %606 = arith.mulf %605, %603 : vector<2x64xf32>
    %607 = arith.mulf %598, %574 : vector<2x64xf32>
    %608 = arith.addf %606, %607 : vector<2x64xf32>
    %609 = vector.extract_strided_slice %399 {offsets = [12, 0], sizes = [2, 192], strides = [1, 1]} : vector<16x192xf32> to vector<2x192xf32>
    %610 = vector.extract_strided_slice %399 {offsets = [2, 0], sizes = [2, 192], strides = [1, 1]} : vector<16x192xf32> to vector<2x192xf32>
    %611 = vector.shape_cast %389 : vector<1x192xi1> to vector<1x192xi1>
    %612 = vector.broadcast %611 : vector<1x192xi1> to vector<2x192xi1>
    %613 = arith.select %612, %609, %610 : vector<2x192xi1>, vector<2x192xf32>
    %cst_206 = arith.constant dense<0.000000e+00> : vector<2x192xf32>
    %614 = tpu.matmul %608, %401, %cst_206 {dimension_numbers = #tpu.dot_dimension_numbers<[1], [0], [0], [1], [0, 0, 1, 1], [], []>} : vector<2x64xf32>, vector<64x192xf32>, vector<2x192xf32> -> vector<2x192xf32>
    %615 = vector.broadcast %403 : vector<1x192xf32> to vector<2x192xf32>
    %616 = arith.addf %614, %615 : vector<2x192xf32>
    %617 = vector.extract_strided_slice %613 {offsets = [0, 0], sizes = [2, 64], strides = [1, 1]} : vector<2x192xf32> to vector<2x64xf32>
    %618 = vector.extract_strided_slice %616 {offsets = [0, 0], sizes = [2, 64], strides = [1, 1]} : vector<2x192xf32> to vector<2x64xf32>
    %619 = arith.addf %617, %618 : vector<2x64xf32>
    %620 = arith.negf %619 : vector<2x64xf32>
    %621 = math.exp %620 : vector<2x64xf32>
    %cst_207 = arith.constant 1.000000e+00 : f32
    %622 = vector.broadcast %cst_207 : f32 to vector<2x64xf32>
    %623 = arith.addf %622, %621 : vector<2x64xf32>
    %624 = arith.divf %622, %623 : vector<2x64xf32>
    %625 = vector.extract_strided_slice %613 {offsets = [0, 64], sizes = [2, 64], strides = [1, 1]} : vector<2x192xf32> to vector<2x64xf32>
    %626 = vector.extract_strided_slice %616 {offsets = [0, 64], sizes = [2, 64], strides = [1, 1]} : vector<2x192xf32> to vector<2x64xf32>
    %627 = arith.addf %625, %626 : vector<2x64xf32>
    %628 = arith.negf %627 : vector<2x64xf32>
    %629 = math.exp %628 : vector<2x64xf32>
    %cst_208 = arith.constant 1.000000e+00 : f32
    %630 = vector.broadcast %cst_208 : f32 to vector<2x64xf32>
    %631 = arith.addf %630, %629 : vector<2x64xf32>
    %632 = arith.divf %630, %631 : vector<2x64xf32>
    %633 = vector.extract_strided_slice %613 {offsets = [0, 128], sizes = [2, 64], strides = [1, 1]} : vector<2x192xf32> to vector<2x64xf32>
    %634 = vector.extract_strided_slice %616 {offsets = [0, 128], sizes = [2, 64], strides = [1, 1]} : vector<2x192xf32> to vector<2x64xf32>
    %635 = arith.mulf %624, %634 : vector<2x64xf32>
    %636 = arith.addf %633, %635 : vector<2x64xf32>
    %637 = math.tanh %636 : vector<2x64xf32>
    %cst_209 = arith.constant 1.000000e+00 : f32
    %638 = vector.broadcast %cst_209 : f32 to vector<2x64xf32>
    %639 = arith.subf %638, %632 : vector<2x64xf32>
    %640 = arith.mulf %639, %637 : vector<2x64xf32>
    %641 = arith.mulf %632, %608 : vector<2x64xf32>
    %642 = arith.addf %640, %641 : vector<2x64xf32>
    %643 = vector.extract_strided_slice %399 {offsets = [14, 0], sizes = [2, 192], strides = [1, 1]} : vector<16x192xf32> to vector<2x192xf32>
    %644 = vector.extract_strided_slice %399 {offsets = [0, 0], sizes = [2, 192], strides = [1, 1]} : vector<16x192xf32> to vector<2x192xf32>
    %645 = vector.shape_cast %389 : vector<1x192xi1> to vector<1x192xi1>
    %646 = vector.broadcast %645 : vector<1x192xi1> to vector<2x192xi1>
    %647 = arith.select %646, %643, %644 : vector<2x192xi1>, vector<2x192xf32>
    %cst_210 = arith.constant dense<0.000000e+00> : vector<2x192xf32>
    %648 = tpu.matmul %642, %401, %cst_210 {dimension_numbers = #tpu.dot_dimension_numbers<[1], [0], [0], [1], [0, 0, 1, 1], [], []>} : vector<2x64xf32>, vector<64x192xf32>, vector<2x192xf32> -> vector<2x192xf32>
    %649 = vector.broadcast %403 : vector<1x192xf32> to vector<2x192xf32>
    %650 = arith.addf %648, %649 : vector<2x192xf32>
    %651 = vector.extract_strided_slice %647 {offsets = [0, 0], sizes = [2, 64], strides = [1, 1]} : vector<2x192xf32> to vector<2x64xf32>
    %652 = vector.extract_strided_slice %650 {offsets = [0, 0], sizes = [2, 64], strides = [1, 1]} : vector<2x192xf32> to vector<2x64xf32>
    %653 = arith.addf %651, %652 : vector<2x64xf32>
    %654 = arith.negf %653 : vector<2x64xf32>
    %655 = math.exp %654 : vector<2x64xf32>
    %cst_211 = arith.constant 1.000000e+00 : f32
    %656 = vector.broadcast %cst_211 : f32 to vector<2x64xf32>
    %657 = arith.addf %656, %655 : vector<2x64xf32>
    %658 = arith.divf %656, %657 : vector<2x64xf32>
    %659 = vector.extract_strided_slice %647 {offsets = [0, 64], sizes = [2, 64], strides = [1, 1]} : vector<2x192xf32> to vector<2x64xf32>
    %660 = vector.extract_strided_slice %650 {offsets = [0, 64], sizes = [2, 64], strides = [1, 1]} : vector<2x192xf32> to vector<2x64xf32>
    %661 = arith.addf %659, %660 : vector<2x64xf32>
    %662 = arith.negf %661 : vector<2x64xf32>
    %663 = math.exp %662 : vector<2x64xf32>
    %cst_212 = arith.constant 1.000000e+00 : f32
    %664 = vector.broadcast %cst_212 : f32 to vector<2x64xf32>
    %665 = arith.addf %664, %663 : vector<2x64xf32>
    %666 = arith.divf %664, %665 : vector<2x64xf32>
    %667 = vector.extract_strided_slice %647 {offsets = [0, 128], sizes = [2, 64], strides = [1, 1]} : vector<2x192xf32> to vector<2x64xf32>
    %668 = vector.extract_strided_slice %650 {offsets = [0, 128], sizes = [2, 64], strides = [1, 1]} : vector<2x192xf32> to vector<2x64xf32>
    %669 = arith.mulf %658, %668 : vector<2x64xf32>
    %670 = arith.addf %667, %669 : vector<2x64xf32>
    %671 = math.tanh %670 : vector<2x64xf32>
    %cst_213 = arith.constant 1.000000e+00 : f32
    %672 = vector.broadcast %cst_213 : f32 to vector<2x64xf32>
    %673 = arith.subf %672, %666 : vector<2x64xf32>
    %674 = arith.mulf %673, %671 : vector<2x64xf32>
    %675 = arith.mulf %666, %642 : vector<2x64xf32>
    %676 = arith.addf %674, %675 : vector<2x64xf32>
    %677 = vector.shape_cast %392 : vector<1x64xi1> to vector<1x64xi1>
    %678 = vector.broadcast %677 : vector<1x64xi1> to vector<2x64xi1>
    %679 = arith.select %678, %438, %676 : vector<2x64xi1>, vector<2x64xf32>
    %680 = vector.shape_cast %392 : vector<1x64xi1> to vector<1x64xi1>
    %681 = vector.broadcast %680 : vector<1x64xi1> to vector<2x64xi1>
    %682 = arith.select %681, %472, %642 : vector<2x64xi1>, vector<2x64xf32>
    %683 = vector.shape_cast %392 : vector<1x64xi1> to vector<1x64xi1>
    %684 = vector.broadcast %683 : vector<1x64xi1> to vector<2x64xi1>
    %685 = arith.select %684, %506, %608 : vector<2x64xi1>, vector<2x64xf32>
    %686 = vector.shape_cast %392 : vector<1x64xi1> to vector<1x64xi1>
    %687 = vector.broadcast %686 : vector<1x64xi1> to vector<2x64xi1>
    %688 = arith.select %687, %540, %574 : vector<2x64xi1>, vector<2x64xf32>
    %689 = vector.shape_cast %392 : vector<1x64xi1> to vector<1x64xi1>
    %690 = vector.broadcast %689 : vector<1x64xi1> to vector<2x64xi1>
    %691 = arith.select %690, %574, %540 : vector<2x64xi1>, vector<2x64xf32>
    %692 = vector.shape_cast %392 : vector<1x64xi1> to vector<1x64xi1>
    %693 = vector.broadcast %692 : vector<1x64xi1> to vector<2x64xi1>
    %694 = arith.select %693, %608, %506 : vector<2x64xi1>, vector<2x64xf32>
    %695 = vector.shape_cast %392 : vector<1x64xi1> to vector<1x64xi1>
    %696 = vector.broadcast %695 : vector<1x64xi1> to vector<2x64xi1>
    %697 = arith.select %696, %642, %472 : vector<2x64xi1>, vector<2x64xf32>
    %698 = vector.shape_cast %392 : vector<1x64xi1> to vector<1x64xi1>
    %699 = vector.broadcast %698 : vector<1x64xi1> to vector<2x64xi1>
    %700 = arith.select %699, %676, %438 : vector<2x64xi1>, vector<2x64xf32>
    %701 = tpu.concatenate %679, %682, %685, %688, %691, %694, %697, %700 in 0 : vector<2x64xf32>, vector<2x64xf32>, vector<2x64xf32>, vector<2x64xf32>, vector<2x64xf32>, vector<2x64xf32>, vector<2x64xf32>, vector<2x64xf32> -> vector<16x64xf32>
    %c1_214 = arith.constant 1 : index
    %c0_215 = arith.constant 0 : index
    %c0_216 = arith.constant 0 : index
    %702 = vector.load %arg18[%c1_214, %c0_215, %c0_216] : memref<2x64x192xf32, #tpu.memory_space<vmem>>, vector<1x64x192xf32>
    %703 = vector.shape_cast %702 : vector<1x64x192xf32> to vector<64x192xf32>
    %cst_217 = arith.constant dense<0.000000e+00> : vector<16x192xf32>
    %704 = tpu.matmul %701, %703, %cst_217 {dimension_numbers = #tpu.dot_dimension_numbers<[1], [0], [0], [1], [0, 0, 1, 1], [], []>} : vector<16x64xf32>, vector<64x192xf32>, vector<16x192xf32> -> vector<16x192xf32>
    %c1_218 = arith.constant 1 : index
    %c0_219 = arith.constant 0 : index
    %c0_220 = arith.constant 0 : index
    %705 = vector.load %arg19[%c1_218, %c0_219, %c0_220] : memref<2x1x192xf32, #tpu.memory_space<vmem>>, vector<1x1x192xf32>
    %706 = vector.shape_cast %705 : vector<1x1x192xf32> to vector<1x192xf32>
    %707 = vector.broadcast %706 : vector<1x192xf32> to vector<16x192xf32>
    %708 = arith.addf %704, %707 : vector<16x192xf32>
    %c1_221 = arith.constant 1 : index
    %c0_222 = arith.constant 0 : index
    %c0_223 = arith.constant 0 : index
    %709 = vector.load %arg20[%c1_221, %c0_222, %c0_223] : memref<2x64x192xf32, #tpu.memory_space<vmem>>, vector<1x64x192xf32>
    %710 = vector.shape_cast %709 : vector<1x64x192xf32> to vector<64x192xf32>
    %c1_224 = arith.constant 1 : index
    %c0_225 = arith.constant 0 : index
    %c0_226 = arith.constant 0 : index
    %711 = vector.load %arg21[%c1_224, %c0_225, %c0_226] : memref<2x1x192xf32, #tpu.memory_space<vmem>>, vector<1x1x192xf32>
    %712 = vector.shape_cast %711 : vector<1x1x192xf32> to vector<1x192xf32>
    %cst_227 = arith.constant 0.000000e+00 : f32
    %713 = vector.broadcast %cst_227 : f32 to vector<2x64xf32>
    %714 = vector.extract_strided_slice %708 {offsets = [0, 0], sizes = [2, 192], strides = [1, 1]} : vector<16x192xf32> to vector<2x192xf32>
    %715 = vector.extract_strided_slice %708 {offsets = [14, 0], sizes = [2, 192], strides = [1, 1]} : vector<16x192xf32> to vector<2x192xf32>
    %716 = vector.shape_cast %389 : vector<1x192xi1> to vector<1x192xi1>
    %717 = vector.broadcast %716 : vector<1x192xi1> to vector<2x192xi1>
    %718 = arith.select %717, %714, %715 : vector<2x192xi1>, vector<2x192xf32>
    %cst_228 = arith.constant dense<0.000000e+00> : vector<2x192xf32>
    %719 = tpu.matmul %713, %710, %cst_228 {dimension_numbers = #tpu.dot_dimension_numbers<[1], [0], [0], [1], [0, 0, 1, 1], [], []>} : vector<2x64xf32>, vector<64x192xf32>, vector<2x192xf32> -> vector<2x192xf32>
    %720 = vector.broadcast %712 : vector<1x192xf32> to vector<2x192xf32>
    %721 = arith.addf %719, %720 : vector<2x192xf32>
    %722 = vector.extract_strided_slice %718 {offsets = [0, 0], sizes = [2, 64], strides = [1, 1]} : vector<2x192xf32> to vector<2x64xf32>
    %723 = vector.extract_strided_slice %721 {offsets = [0, 0], sizes = [2, 64], strides = [1, 1]} : vector<2x192xf32> to vector<2x64xf32>
    %724 = arith.addf %722, %723 : vector<2x64xf32>
    %725 = arith.negf %724 : vector<2x64xf32>
    %726 = math.exp %725 : vector<2x64xf32>
    %cst_229 = arith.constant 1.000000e+00 : f32
    %727 = vector.broadcast %cst_229 : f32 to vector<2x64xf32>
    %728 = arith.addf %727, %726 : vector<2x64xf32>
    %729 = arith.divf %727, %728 : vector<2x64xf32>
    %730 = vector.extract_strided_slice %718 {offsets = [0, 64], sizes = [2, 64], strides = [1, 1]} : vector<2x192xf32> to vector<2x64xf32>
    %731 = vector.extract_strided_slice %721 {offsets = [0, 64], sizes = [2, 64], strides = [1, 1]} : vector<2x192xf32> to vector<2x64xf32>
    %732 = arith.addf %730, %731 : vector<2x64xf32>
    %733 = arith.negf %732 : vector<2x64xf32>
    %734 = math.exp %733 : vector<2x64xf32>
    %cst_230 = arith.constant 1.000000e+00 : f32
    %735 = vector.broadcast %cst_230 : f32 to vector<2x64xf32>
    %736 = arith.addf %735, %734 : vector<2x64xf32>
    %737 = arith.divf %735, %736 : vector<2x64xf32>
    %738 = vector.extract_strided_slice %718 {offsets = [0, 128], sizes = [2, 64], strides = [1, 1]} : vector<2x192xf32> to vector<2x64xf32>
    %739 = vector.extract_strided_slice %721 {offsets = [0, 128], sizes = [2, 64], strides = [1, 1]} : vector<2x192xf32> to vector<2x64xf32>
    %740 = arith.mulf %729, %739 : vector<2x64xf32>
    %741 = arith.addf %738, %740 : vector<2x64xf32>
    %742 = math.tanh %741 : vector<2x64xf32>
    %cst_231 = arith.constant 1.000000e+00 : f32
    %743 = vector.broadcast %cst_231 : f32 to vector<2x64xf32>
    %744 = arith.subf %743, %737 : vector<2x64xf32>
    %745 = arith.mulf %744, %742 : vector<2x64xf32>
    %746 = arith.mulf %737, %713 : vector<2x64xf32>
    %747 = arith.addf %745, %746 : vector<2x64xf32>
    %748 = vector.extract_strided_slice %708 {offsets = [2, 0], sizes = [2, 192], strides = [1, 1]} : vector<16x192xf32> to vector<2x192xf32>
    %749 = vector.extract_strided_slice %708 {offsets = [12, 0], sizes = [2, 192], strides = [1, 1]} : vector<16x192xf32> to vector<2x192xf32>
    %750 = vector.shape_cast %389 : vector<1x192xi1> to vector<1x192xi1>
    %751 = vector.broadcast %750 : vector<1x192xi1> to vector<2x192xi1>
    %752 = arith.select %751, %748, %749 : vector<2x192xi1>, vector<2x192xf32>
    %cst_232 = arith.constant dense<0.000000e+00> : vector<2x192xf32>
    %753 = tpu.matmul %747, %710, %cst_232 {dimension_numbers = #tpu.dot_dimension_numbers<[1], [0], [0], [1], [0, 0, 1, 1], [], []>} : vector<2x64xf32>, vector<64x192xf32>, vector<2x192xf32> -> vector<2x192xf32>
    %754 = vector.broadcast %712 : vector<1x192xf32> to vector<2x192xf32>
    %755 = arith.addf %753, %754 : vector<2x192xf32>
    %756 = vector.extract_strided_slice %752 {offsets = [0, 0], sizes = [2, 64], strides = [1, 1]} : vector<2x192xf32> to vector<2x64xf32>
    %757 = vector.extract_strided_slice %755 {offsets = [0, 0], sizes = [2, 64], strides = [1, 1]} : vector<2x192xf32> to vector<2x64xf32>
    %758 = arith.addf %756, %757 : vector<2x64xf32>
    %759 = arith.negf %758 : vector<2x64xf32>
    %760 = math.exp %759 : vector<2x64xf32>
    %cst_233 = arith.constant 1.000000e+00 : f32
    %761 = vector.broadcast %cst_233 : f32 to vector<2x64xf32>
    %762 = arith.addf %761, %760 : vector<2x64xf32>
    %763 = arith.divf %761, %762 : vector<2x64xf32>
    %764 = vector.extract_strided_slice %752 {offsets = [0, 64], sizes = [2, 64], strides = [1, 1]} : vector<2x192xf32> to vector<2x64xf32>
    %765 = vector.extract_strided_slice %755 {offsets = [0, 64], sizes = [2, 64], strides = [1, 1]} : vector<2x192xf32> to vector<2x64xf32>
    %766 = arith.addf %764, %765 : vector<2x64xf32>
    %767 = arith.negf %766 : vector<2x64xf32>
    %768 = math.exp %767 : vector<2x64xf32>
    %cst_234 = arith.constant 1.000000e+00 : f32
    %769 = vector.broadcast %cst_234 : f32 to vector<2x64xf32>
    %770 = arith.addf %769, %768 : vector<2x64xf32>
    %771 = arith.divf %769, %770 : vector<2x64xf32>
    %772 = vector.extract_strided_slice %752 {offsets = [0, 128], sizes = [2, 64], strides = [1, 1]} : vector<2x192xf32> to vector<2x64xf32>
    %773 = vector.extract_strided_slice %755 {offsets = [0, 128], sizes = [2, 64], strides = [1, 1]} : vector<2x192xf32> to vector<2x64xf32>
    %774 = arith.mulf %763, %773 : vector<2x64xf32>
    %775 = arith.addf %772, %774 : vector<2x64xf32>
    %776 = math.tanh %775 : vector<2x64xf32>
    %cst_235 = arith.constant 1.000000e+00 : f32
    %777 = vector.broadcast %cst_235 : f32 to vector<2x64xf32>
    %778 = arith.subf %777, %771 : vector<2x64xf32>
    %779 = arith.mulf %778, %776 : vector<2x64xf32>
    %780 = arith.mulf %771, %747 : vector<2x64xf32>
    %781 = arith.addf %779, %780 : vector<2x64xf32>
    %782 = vector.extract_strided_slice %708 {offsets = [4, 0], sizes = [2, 192], strides = [1, 1]} : vector<16x192xf32> to vector<2x192xf32>
    %783 = vector.extract_strided_slice %708 {offsets = [10, 0], sizes = [2, 192], strides = [1, 1]} : vector<16x192xf32> to vector<2x192xf32>
    %784 = vector.shape_cast %389 : vector<1x192xi1> to vector<1x192xi1>
    %785 = vector.broadcast %784 : vector<1x192xi1> to vector<2x192xi1>
    %786 = arith.select %785, %782, %783 : vector<2x192xi1>, vector<2x192xf32>
    %cst_236 = arith.constant dense<0.000000e+00> : vector<2x192xf32>
    %787 = tpu.matmul %781, %710, %cst_236 {dimension_numbers = #tpu.dot_dimension_numbers<[1], [0], [0], [1], [0, 0, 1, 1], [], []>} : vector<2x64xf32>, vector<64x192xf32>, vector<2x192xf32> -> vector<2x192xf32>
    %788 = vector.broadcast %712 : vector<1x192xf32> to vector<2x192xf32>
    %789 = arith.addf %787, %788 : vector<2x192xf32>
    %790 = vector.extract_strided_slice %786 {offsets = [0, 0], sizes = [2, 64], strides = [1, 1]} : vector<2x192xf32> to vector<2x64xf32>
    %791 = vector.extract_strided_slice %789 {offsets = [0, 0], sizes = [2, 64], strides = [1, 1]} : vector<2x192xf32> to vector<2x64xf32>
    %792 = arith.addf %790, %791 : vector<2x64xf32>
    %793 = arith.negf %792 : vector<2x64xf32>
    %794 = math.exp %793 : vector<2x64xf32>
    %cst_237 = arith.constant 1.000000e+00 : f32
    %795 = vector.broadcast %cst_237 : f32 to vector<2x64xf32>
    %796 = arith.addf %795, %794 : vector<2x64xf32>
    %797 = arith.divf %795, %796 : vector<2x64xf32>
    %798 = vector.extract_strided_slice %786 {offsets = [0, 64], sizes = [2, 64], strides = [1, 1]} : vector<2x192xf32> to vector<2x64xf32>
    %799 = vector.extract_strided_slice %789 {offsets = [0, 64], sizes = [2, 64], strides = [1, 1]} : vector<2x192xf32> to vector<2x64xf32>
    %800 = arith.addf %798, %799 : vector<2x64xf32>
    %801 = arith.negf %800 : vector<2x64xf32>
    %802 = math.exp %801 : vector<2x64xf32>
    %cst_238 = arith.constant 1.000000e+00 : f32
    %803 = vector.broadcast %cst_238 : f32 to vector<2x64xf32>
    %804 = arith.addf %803, %802 : vector<2x64xf32>
    %805 = arith.divf %803, %804 : vector<2x64xf32>
    %806 = vector.extract_strided_slice %786 {offsets = [0, 128], sizes = [2, 64], strides = [1, 1]} : vector<2x192xf32> to vector<2x64xf32>
    %807 = vector.extract_strided_slice %789 {offsets = [0, 128], sizes = [2, 64], strides = [1, 1]} : vector<2x192xf32> to vector<2x64xf32>
    %808 = arith.mulf %797, %807 : vector<2x64xf32>
    %809 = arith.addf %806, %808 : vector<2x64xf32>
    %810 = math.tanh %809 : vector<2x64xf32>
    %cst_239 = arith.constant 1.000000e+00 : f32
    %811 = vector.broadcast %cst_239 : f32 to vector<2x64xf32>
    %812 = arith.subf %811, %805 : vector<2x64xf32>
    %813 = arith.mulf %812, %810 : vector<2x64xf32>
    %814 = arith.mulf %805, %781 : vector<2x64xf32>
    %815 = arith.addf %813, %814 : vector<2x64xf32>
    %816 = vector.extract_strided_slice %708 {offsets = [6, 0], sizes = [2, 192], strides = [1, 1]} : vector<16x192xf32> to vector<2x192xf32>
    %817 = vector.extract_strided_slice %708 {offsets = [8, 0], sizes = [2, 192], strides = [1, 1]} : vector<16x192xf32> to vector<2x192xf32>
    %818 = vector.shape_cast %389 : vector<1x192xi1> to vector<1x192xi1>
    %819 = vector.broadcast %818 : vector<1x192xi1> to vector<2x192xi1>
    %820 = arith.select %819, %816, %817 : vector<2x192xi1>, vector<2x192xf32>
    %cst_240 = arith.constant dense<0.000000e+00> : vector<2x192xf32>
    %821 = tpu.matmul %815, %710, %cst_240 {dimension_numbers = #tpu.dot_dimension_numbers<[1], [0], [0], [1], [0, 0, 1, 1], [], []>} : vector<2x64xf32>, vector<64x192xf32>, vector<2x192xf32> -> vector<2x192xf32>
    %822 = vector.broadcast %712 : vector<1x192xf32> to vector<2x192xf32>
    %823 = arith.addf %821, %822 : vector<2x192xf32>
    %824 = vector.extract_strided_slice %820 {offsets = [0, 0], sizes = [2, 64], strides = [1, 1]} : vector<2x192xf32> to vector<2x64xf32>
    %825 = vector.extract_strided_slice %823 {offsets = [0, 0], sizes = [2, 64], strides = [1, 1]} : vector<2x192xf32> to vector<2x64xf32>
    %826 = arith.addf %824, %825 : vector<2x64xf32>
    %827 = arith.negf %826 : vector<2x64xf32>
    %828 = math.exp %827 : vector<2x64xf32>
    %cst_241 = arith.constant 1.000000e+00 : f32
    %829 = vector.broadcast %cst_241 : f32 to vector<2x64xf32>
    %830 = arith.addf %829, %828 : vector<2x64xf32>
    %831 = arith.divf %829, %830 : vector<2x64xf32>
    %832 = vector.extract_strided_slice %820 {offsets = [0, 64], sizes = [2, 64], strides = [1, 1]} : vector<2x192xf32> to vector<2x64xf32>
    %833 = vector.extract_strided_slice %823 {offsets = [0, 64], sizes = [2, 64], strides = [1, 1]} : vector<2x192xf32> to vector<2x64xf32>
    %834 = arith.addf %832, %833 : vector<2x64xf32>
    %835 = arith.negf %834 : vector<2x64xf32>
    %836 = math.exp %835 : vector<2x64xf32>
    %cst_242 = arith.constant 1.000000e+00 : f32
    %837 = vector.broadcast %cst_242 : f32 to vector<2x64xf32>
    %838 = arith.addf %837, %836 : vector<2x64xf32>
    %839 = arith.divf %837, %838 : vector<2x64xf32>
    %840 = vector.extract_strided_slice %820 {offsets = [0, 128], sizes = [2, 64], strides = [1, 1]} : vector<2x192xf32> to vector<2x64xf32>
    %841 = vector.extract_strided_slice %823 {offsets = [0, 128], sizes = [2, 64], strides = [1, 1]} : vector<2x192xf32> to vector<2x64xf32>
    %842 = arith.mulf %831, %841 : vector<2x64xf32>
    %843 = arith.addf %840, %842 : vector<2x64xf32>
    %844 = math.tanh %843 : vector<2x64xf32>
    %cst_243 = arith.constant 1.000000e+00 : f32
    %845 = vector.broadcast %cst_243 : f32 to vector<2x64xf32>
    %846 = arith.subf %845, %839 : vector<2x64xf32>
    %847 = arith.mulf %846, %844 : vector<2x64xf32>
    %848 = arith.mulf %839, %815 : vector<2x64xf32>
    %849 = arith.addf %847, %848 : vector<2x64xf32>
    %850 = vector.extract_strided_slice %708 {offsets = [8, 0], sizes = [2, 192], strides = [1, 1]} : vector<16x192xf32> to vector<2x192xf32>
    %851 = vector.extract_strided_slice %708 {offsets = [6, 0], sizes = [2, 192], strides = [1, 1]} : vector<16x192xf32> to vector<2x192xf32>
    %852 = vector.shape_cast %389 : vector<1x192xi1> to vector<1x192xi1>
    %853 = vector.broadcast %852 : vector<1x192xi1> to vector<2x192xi1>
    %854 = arith.select %853, %850, %851 : vector<2x192xi1>, vector<2x192xf32>
    %cst_244 = arith.constant dense<0.000000e+00> : vector<2x192xf32>
    %855 = tpu.matmul %849, %710, %cst_244 {dimension_numbers = #tpu.dot_dimension_numbers<[1], [0], [0], [1], [0, 0, 1, 1], [], []>} : vector<2x64xf32>, vector<64x192xf32>, vector<2x192xf32> -> vector<2x192xf32>
    %856 = vector.broadcast %712 : vector<1x192xf32> to vector<2x192xf32>
    %857 = arith.addf %855, %856 : vector<2x192xf32>
    %858 = vector.extract_strided_slice %854 {offsets = [0, 0], sizes = [2, 64], strides = [1, 1]} : vector<2x192xf32> to vector<2x64xf32>
    %859 = vector.extract_strided_slice %857 {offsets = [0, 0], sizes = [2, 64], strides = [1, 1]} : vector<2x192xf32> to vector<2x64xf32>
    %860 = arith.addf %858, %859 : vector<2x64xf32>
    %861 = arith.negf %860 : vector<2x64xf32>
    %862 = math.exp %861 : vector<2x64xf32>
    %cst_245 = arith.constant 1.000000e+00 : f32
    %863 = vector.broadcast %cst_245 : f32 to vector<2x64xf32>
    %864 = arith.addf %863, %862 : vector<2x64xf32>
    %865 = arith.divf %863, %864 : vector<2x64xf32>
    %866 = vector.extract_strided_slice %854 {offsets = [0, 64], sizes = [2, 64], strides = [1, 1]} : vector<2x192xf32> to vector<2x64xf32>
    %867 = vector.extract_strided_slice %857 {offsets = [0, 64], sizes = [2, 64], strides = [1, 1]} : vector<2x192xf32> to vector<2x64xf32>
    %868 = arith.addf %866, %867 : vector<2x64xf32>
    %869 = arith.negf %868 : vector<2x64xf32>
    %870 = math.exp %869 : vector<2x64xf32>
    %cst_246 = arith.constant 1.000000e+00 : f32
    %871 = vector.broadcast %cst_246 : f32 to vector<2x64xf32>
    %872 = arith.addf %871, %870 : vector<2x64xf32>
    %873 = arith.divf %871, %872 : vector<2x64xf32>
    %874 = vector.extract_strided_slice %854 {offsets = [0, 128], sizes = [2, 64], strides = [1, 1]} : vector<2x192xf32> to vector<2x64xf32>
    %875 = vector.extract_strided_slice %857 {offsets = [0, 128], sizes = [2, 64], strides = [1, 1]} : vector<2x192xf32> to vector<2x64xf32>
    %876 = arith.mulf %865, %875 : vector<2x64xf32>
    %877 = arith.addf %874, %876 : vector<2x64xf32>
    %878 = math.tanh %877 : vector<2x64xf32>
    %cst_247 = arith.constant 1.000000e+00 : f32
    %879 = vector.broadcast %cst_247 : f32 to vector<2x64xf32>
    %880 = arith.subf %879, %873 : vector<2x64xf32>
    %881 = arith.mulf %880, %878 : vector<2x64xf32>
    %882 = arith.mulf %873, %849 : vector<2x64xf32>
    %883 = arith.addf %881, %882 : vector<2x64xf32>
    %884 = vector.extract_strided_slice %708 {offsets = [10, 0], sizes = [2, 192], strides = [1, 1]} : vector<16x192xf32> to vector<2x192xf32>
    %885 = vector.extract_strided_slice %708 {offsets = [4, 0], sizes = [2, 192], strides = [1, 1]} : vector<16x192xf32> to vector<2x192xf32>
    %886 = vector.shape_cast %389 : vector<1x192xi1> to vector<1x192xi1>
    %887 = vector.broadcast %886 : vector<1x192xi1> to vector<2x192xi1>
    %888 = arith.select %887, %884, %885 : vector<2x192xi1>, vector<2x192xf32>
    %cst_248 = arith.constant dense<0.000000e+00> : vector<2x192xf32>
    %889 = tpu.matmul %883, %710, %cst_248 {dimension_numbers = #tpu.dot_dimension_numbers<[1], [0], [0], [1], [0, 0, 1, 1], [], []>} : vector<2x64xf32>, vector<64x192xf32>, vector<2x192xf32> -> vector<2x192xf32>
    %890 = vector.broadcast %712 : vector<1x192xf32> to vector<2x192xf32>
    %891 = arith.addf %889, %890 : vector<2x192xf32>
    %892 = vector.extract_strided_slice %888 {offsets = [0, 0], sizes = [2, 64], strides = [1, 1]} : vector<2x192xf32> to vector<2x64xf32>
    %893 = vector.extract_strided_slice %891 {offsets = [0, 0], sizes = [2, 64], strides = [1, 1]} : vector<2x192xf32> to vector<2x64xf32>
    %894 = arith.addf %892, %893 : vector<2x64xf32>
    %895 = arith.negf %894 : vector<2x64xf32>
    %896 = math.exp %895 : vector<2x64xf32>
    %cst_249 = arith.constant 1.000000e+00 : f32
    %897 = vector.broadcast %cst_249 : f32 to vector<2x64xf32>
    %898 = arith.addf %897, %896 : vector<2x64xf32>
    %899 = arith.divf %897, %898 : vector<2x64xf32>
    %900 = vector.extract_strided_slice %888 {offsets = [0, 64], sizes = [2, 64], strides = [1, 1]} : vector<2x192xf32> to vector<2x64xf32>
    %901 = vector.extract_strided_slice %891 {offsets = [0, 64], sizes = [2, 64], strides = [1, 1]} : vector<2x192xf32> to vector<2x64xf32>
    %902 = arith.addf %900, %901 : vector<2x64xf32>
    %903 = arith.negf %902 : vector<2x64xf32>
    %904 = math.exp %903 : vector<2x64xf32>
    %cst_250 = arith.constant 1.000000e+00 : f32
    %905 = vector.broadcast %cst_250 : f32 to vector<2x64xf32>
    %906 = arith.addf %905, %904 : vector<2x64xf32>
    %907 = arith.divf %905, %906 : vector<2x64xf32>
    %908 = vector.extract_strided_slice %888 {offsets = [0, 128], sizes = [2, 64], strides = [1, 1]} : vector<2x192xf32> to vector<2x64xf32>
    %909 = vector.extract_strided_slice %891 {offsets = [0, 128], sizes = [2, 64], strides = [1, 1]} : vector<2x192xf32> to vector<2x64xf32>
    %910 = arith.mulf %899, %909 : vector<2x64xf32>
    %911 = arith.addf %908, %910 : vector<2x64xf32>
    %912 = math.tanh %911 : vector<2x64xf32>
    %cst_251 = arith.constant 1.000000e+00 : f32
    %913 = vector.broadcast %cst_251 : f32 to vector<2x64xf32>
    %914 = arith.subf %913, %907 : vector<2x64xf32>
    %915 = arith.mulf %914, %912 : vector<2x64xf32>
    %916 = arith.mulf %907, %883 : vector<2x64xf32>
    %917 = arith.addf %915, %916 : vector<2x64xf32>
    %918 = vector.extract_strided_slice %708 {offsets = [12, 0], sizes = [2, 192], strides = [1, 1]} : vector<16x192xf32> to vector<2x192xf32>
    %919 = vector.extract_strided_slice %708 {offsets = [2, 0], sizes = [2, 192], strides = [1, 1]} : vector<16x192xf32> to vector<2x192xf32>
    %920 = vector.shape_cast %389 : vector<1x192xi1> to vector<1x192xi1>
    %921 = vector.broadcast %920 : vector<1x192xi1> to vector<2x192xi1>
    %922 = arith.select %921, %918, %919 : vector<2x192xi1>, vector<2x192xf32>
    %cst_252 = arith.constant dense<0.000000e+00> : vector<2x192xf32>
    %923 = tpu.matmul %917, %710, %cst_252 {dimension_numbers = #tpu.dot_dimension_numbers<[1], [0], [0], [1], [0, 0, 1, 1], [], []>} : vector<2x64xf32>, vector<64x192xf32>, vector<2x192xf32> -> vector<2x192xf32>
    %924 = vector.broadcast %712 : vector<1x192xf32> to vector<2x192xf32>
    %925 = arith.addf %923, %924 : vector<2x192xf32>
    %926 = vector.extract_strided_slice %922 {offsets = [0, 0], sizes = [2, 64], strides = [1, 1]} : vector<2x192xf32> to vector<2x64xf32>
    %927 = vector.extract_strided_slice %925 {offsets = [0, 0], sizes = [2, 64], strides = [1, 1]} : vector<2x192xf32> to vector<2x64xf32>
    %928 = arith.addf %926, %927 : vector<2x64xf32>
    %929 = arith.negf %928 : vector<2x64xf32>
    %930 = math.exp %929 : vector<2x64xf32>
    %cst_253 = arith.constant 1.000000e+00 : f32
    %931 = vector.broadcast %cst_253 : f32 to vector<2x64xf32>
    %932 = arith.addf %931, %930 : vector<2x64xf32>
    %933 = arith.divf %931, %932 : vector<2x64xf32>
    %934 = vector.extract_strided_slice %922 {offsets = [0, 64], sizes = [2, 64], strides = [1, 1]} : vector<2x192xf32> to vector<2x64xf32>
    %935 = vector.extract_strided_slice %925 {offsets = [0, 64], sizes = [2, 64], strides = [1, 1]} : vector<2x192xf32> to vector<2x64xf32>
    %936 = arith.addf %934, %935 : vector<2x64xf32>
    %937 = arith.negf %936 : vector<2x64xf32>
    %938 = math.exp %937 : vector<2x64xf32>
    %cst_254 = arith.constant 1.000000e+00 : f32
    %939 = vector.broadcast %cst_254 : f32 to vector<2x64xf32>
    %940 = arith.addf %939, %938 : vector<2x64xf32>
    %941 = arith.divf %939, %940 : vector<2x64xf32>
    %942 = vector.extract_strided_slice %922 {offsets = [0, 128], sizes = [2, 64], strides = [1, 1]} : vector<2x192xf32> to vector<2x64xf32>
    %943 = vector.extract_strided_slice %925 {offsets = [0, 128], sizes = [2, 64], strides = [1, 1]} : vector<2x192xf32> to vector<2x64xf32>
    %944 = arith.mulf %933, %943 : vector<2x64xf32>
    %945 = arith.addf %942, %944 : vector<2x64xf32>
    %946 = math.tanh %945 : vector<2x64xf32>
    %cst_255 = arith.constant 1.000000e+00 : f32
    %947 = vector.broadcast %cst_255 : f32 to vector<2x64xf32>
    %948 = arith.subf %947, %941 : vector<2x64xf32>
    %949 = arith.mulf %948, %946 : vector<2x64xf32>
    %950 = arith.mulf %941, %917 : vector<2x64xf32>
    %951 = arith.addf %949, %950 : vector<2x64xf32>
    %952 = vector.extract_strided_slice %708 {offsets = [14, 0], sizes = [2, 192], strides = [1, 1]} : vector<16x192xf32> to vector<2x192xf32>
    %953 = vector.extract_strided_slice %708 {offsets = [0, 0], sizes = [2, 192], strides = [1, 1]} : vector<16x192xf32> to vector<2x192xf32>
    %954 = vector.shape_cast %389 : vector<1x192xi1> to vector<1x192xi1>
    %955 = vector.broadcast %954 : vector<1x192xi1> to vector<2x192xi1>
    %956 = arith.select %955, %952, %953 : vector<2x192xi1>, vector<2x192xf32>
    %cst_256 = arith.constant dense<0.000000e+00> : vector<2x192xf32>
    %957 = tpu.matmul %951, %710, %cst_256 {dimension_numbers = #tpu.dot_dimension_numbers<[1], [0], [0], [1], [0, 0, 1, 1], [], []>} : vector<2x64xf32>, vector<64x192xf32>, vector<2x192xf32> -> vector<2x192xf32>
    %958 = vector.broadcast %712 : vector<1x192xf32> to vector<2x192xf32>
    %959 = arith.addf %957, %958 : vector<2x192xf32>
    %960 = vector.extract_strided_slice %956 {offsets = [0, 0], sizes = [2, 64], strides = [1, 1]} : vector<2x192xf32> to vector<2x64xf32>
    %961 = vector.extract_strided_slice %959 {offsets = [0, 0], sizes = [2, 64], strides = [1, 1]} : vector<2x192xf32> to vector<2x64xf32>
    %962 = arith.addf %960, %961 : vector<2x64xf32>
    %963 = arith.negf %962 : vector<2x64xf32>
    %964 = math.exp %963 : vector<2x64xf32>
    %cst_257 = arith.constant 1.000000e+00 : f32
    %965 = vector.broadcast %cst_257 : f32 to vector<2x64xf32>
    %966 = arith.addf %965, %964 : vector<2x64xf32>
    %967 = arith.divf %965, %966 : vector<2x64xf32>
    %968 = vector.extract_strided_slice %956 {offsets = [0, 64], sizes = [2, 64], strides = [1, 1]} : vector<2x192xf32> to vector<2x64xf32>
    %969 = vector.extract_strided_slice %959 {offsets = [0, 64], sizes = [2, 64], strides = [1, 1]} : vector<2x192xf32> to vector<2x64xf32>
    %970 = arith.addf %968, %969 : vector<2x64xf32>
    %971 = arith.negf %970 : vector<2x64xf32>
    %972 = math.exp %971 : vector<2x64xf32>
    %cst_258 = arith.constant 1.000000e+00 : f32
    %973 = vector.broadcast %cst_258 : f32 to vector<2x64xf32>
    %974 = arith.addf %973, %972 : vector<2x64xf32>
    %975 = arith.divf %973, %974 : vector<2x64xf32>
    %976 = vector.extract_strided_slice %956 {offsets = [0, 128], sizes = [2, 64], strides = [1, 1]} : vector<2x192xf32> to vector<2x64xf32>
    %977 = vector.extract_strided_slice %959 {offsets = [0, 128], sizes = [2, 64], strides = [1, 1]} : vector<2x192xf32> to vector<2x64xf32>
    %978 = arith.mulf %967, %977 : vector<2x64xf32>
    %979 = arith.addf %976, %978 : vector<2x64xf32>
    %980 = math.tanh %979 : vector<2x64xf32>
    %cst_259 = arith.constant 1.000000e+00 : f32
    %981 = vector.broadcast %cst_259 : f32 to vector<2x64xf32>
    %982 = arith.subf %981, %975 : vector<2x64xf32>
    %983 = arith.mulf %982, %980 : vector<2x64xf32>
    %984 = arith.mulf %975, %951 : vector<2x64xf32>
    %985 = arith.addf %983, %984 : vector<2x64xf32>
    %c0_260 = arith.constant 0 : index
    %c0_261 = arith.constant 0 : index
    %986 = vector.load %arg22[%c0_260, %c0_261] : memref<64x3xf32, #tpu.memory_space<vmem>>, vector<64x3xf32>
    %cst_262 = arith.constant dense<0.000000e+00> : vector<2x3xf32>
    %987 = tpu.matmul %985, %986, %cst_262 {dimension_numbers = #tpu.dot_dimension_numbers<[1], [0], [0], [1], [0, 0, 1, 1], [], []>} : vector<2x64xf32>, vector<64x3xf32>, vector<2x3xf32> -> vector<2x3xf32>
    %c0_263 = arith.constant 0 : index
    %c0_264 = arith.constant 0 : index
    %988 = vector.load %arg23[%c0_263, %c0_264] : memref<1x3xf32, #tpu.memory_space<vmem>>, vector<1x3xf32>
    %989 = vector.broadcast %988 : vector<1x3xf32> to vector<2x3xf32>
    %990 = arith.addf %987, %989 : vector<2x3xf32>
    %c0_265 = arith.constant 0 : index
    %c0_266 = arith.constant 0 : index
    %991 = vector.load %arg24[%c0_265, %c0_266] : memref<2x3xf32, #tpu.memory_space<vmem>>, vector<2x3xf32>
    tpu.vector_store %arg24[%c0_265, %c0_266], %990 {strides = array<i32>} : memref<2x3xf32, #tpu.memory_space<vmem>>, vector<2x3xf32>,
    return
  }
}

</mosaic_0001>

<bundles_post_ra>
// kernel: bert_gru_forward.1
= control target key start
LH: loop header
LB: loop body
LE: loop exit
PB: predicated region body
PF: predicated region fallthrough
CT: control target
= control target key end

     0   :  { %s5520_s0 = inlined_call_operand.vmem [shape: s32[16,1], index: 0, kind: input, shape index: {}]   ;;  %s5521_s1 = inlined_call_operand.vmem [shape: f32[1,16], index: 1, kind: input, shape index: {}]   ;;  %s5522_s2 = inlined_call_operand.vmem [shape: f32[128,64], index: 2, kind: input, shape index: {}]   ;;  %s5523_s3 = inlined_call_operand.vmem [shape: f32[16,64], index: 3, kind: input, shape index: {}]   ;;  %s5524_s4 = inlined_call_operand.vmem [shape: f32[1,64], index: 4, kind: input, shape index: {}]   ;;  %s5525_s5 = inlined_call_operand.vmem [shape: f32[1,64], index: 5, kind: input, shape index: {}]   ;;  %s5526_s6 = inlined_call_operand.vmem [shape: f32[2,64,192], index: 6, kind: input, shape index: {}]   ;;  %s5527_s7 = inlined_call_operand.vmem [shape: f32[2,1,192], index: 7, kind: input, shape index: {}]   ;;  %s5528_s8 = inlined_call_operand.vmem [shape: f32[2,64,64], index: 8, kind: input, shape index: {}]   ;;  %s5529_s9 = inlined_call_operand.vmem [shape: f32[2,1,64], index: 9, kind: input, shape index: {}]   ;;  %s5530_s10 = inlined_call_operand.vmem [shape: f32[2,1,64], index: 10, kind: input, shape index: {}]   ;;  %s5531_s11 = inlined_call_operand.vmem [shape: f32[2,1,64], index: 11, kind: input, shape index: {}]   ;;  %s5532_s12 = inlined_call_operand.hbm [shape: f32[2,64,128], index: 12, kind: input, shape index: {}]   ;;  %s5533_s13 = inlined_call_operand.vmem [shape: f32[2,1,128], index: 13, kind: input, shape index: {}]   ;;  %s5534_s14 = inlined_call_operand.vmem [shape: f32[2,128,64], index: 14, kind: input, shape index: {}]   ;;  %s5535_s15 = inlined_call_operand.vmem [shape: f32[2,1,64], index: 15, kind: input, shape index: {}]   ;;  %s5536_s16 = inlined_call_operand.vmem [shape: f32[2,1,64], index: 16, kind: input, shape index: {}]   ;;  %s5537_s17 = inlined_call_operand.vmem [shape: f32[2,1,64], index: 17, kind: input, shape index: {}]   ;;  %s5538_s18 = inlined_call_operand.hbm [shape: f32[2,64,192], index: 18, kind: input, shape index: {}]   ;;  %s5539_s19 = inlined_call_operand.vmem [shape: f32[2,1,192], index: 19, kind: input, shape index: {}]   ;;  %s5540_s20 = inlined_call_operand.hbm [shape: f32[2,64,192], index: 20, kind: input, shape index: {}]   ;;  %s5541_s21 = inlined_call_operand.vmem [shape: f32[2,1,192], index: 21, kind: input, shape index: {}]   ;;  %s5542_s22 = inlined_call_operand.vmem [shape: f32[64,3], index: 22, kind: input, shape index: {}]   ;;  %s5543_s23 = inlined_call_operand.vmem [shape: f32[1,3], index: 23, kind: input, shape index: {}]   ;;  %s5544_s24 = inlined_call_operand.hbm [shape: f32[2,3], index: 24, kind: output, shape index: {}]  }
   0x1   :  { %5555 = sst [smem:[#allocation12_spill]] %s5520_s0 }
   0x2   :  { %5556 = sst [smem:[#allocation13_spill]] %s5521_s1 }
   0x3   :  { %5557 = sst [smem:[#allocation14_spill]] %s5522_s2 }
   0x4   :  { %5558 = sst [smem:[#allocation15_spill]] %s5523_s3 }
   0x5   :  { %5559 = sst [smem:[#allocation16_spill]] %s5524_s4 }
   0x6   :  { %5560 = sst [smem:[#allocation17_spill]] %s5525_s5 }
   0x7   :  { %5561 = sst [smem:[#allocation18_spill]] %s5526_s6 }
   0x8   :  { %5562 = sst [smem:[#allocation19_spill]] %s5527_s7 }
   0x9   :  { %5563 = sst [smem:[#allocation20_spill]] %s5528_s8 }
   0xa   :  { %29 = vsyncpa [#allocation3], 0 }
   0xb   :  { %30 = vsyncpa [#allocation6], 0  ;;  %s83_s27 = sshll.u32 %s5538_s18, 4  ;;  %s84_s27 = int_to_ptr.hbm [resolvable:$true] %s83_s27 }
   0xc   :  { %31 = vsyncpa [#allocation4], 0  ;;  %s4011_s28 = smov [#allocation5]   ;;  %s60_s0 = sshll.u32 %s5532_s12, 4  ;;  %s61_s0 = int_to_ptr.hbm [resolvable:$true] %s60_s0 }
   0xd   :  { %s85_s6 = sshll.u32 %s4011_s28, 4  ;;  %s4012_s7 = smov 256   ;;  %s86_s6 = int_to_ptr.vmem [resolvable:$true] %s85_s6 }
   0xe   :  { %s4013_s30 = smov 16   ;;  %s4014_s3 = smov [#allocation2]  }
   0xf   :  { %91 = dma.hbm_to_vmem [thread:$0]  %s84_s27, 4096, %s86_s6, [#allocation6], %s4012_s7, %s4012_s7, %s4013_s30  }
  0x10   :  { %s62_s25 = sshll.u32 %s4014_s3, 4  ;;  %s4015_s8 = smov 128   ;;  %s63_s25 = int_to_ptr.vmem [resolvable:$true] %s62_s25 }
  0x11   :  { %s4016_s4 = smov 8   ;;  %s98_s5 = sshll.u32 %s5540_s20, 4  ;;  %s99_s5 = int_to_ptr.hbm [resolvable:$true] %s98_s5 }
  0x12   :  { %68 = dma.hbm_to_vmem [thread:$0]  %s61_s0, 2048, %s63_s25, [#allocation3], %s4015_s8, %s4015_s8, %s4016_s4  }
  0x13   :  { %s4017_s26 = smov [#allocation7]  }
  0x14   :  { %s100_s28 = sshll.u32 %s4017_s26, 4  ;;  %s101_s28 = int_to_ptr.vmem [resolvable:$true] %s100_s28 }
  0x15   :  { %106 = dma.hbm_to_vmem [thread:$0]  %s99_s5, 4096, %s101_s28, [#allocation6], %s4012_s7, %s4012_s7, %s4013_s30  }
  0x16   :  { %4005 = dma.done.wait [#allocation3], 2048  }
  0x17   :  { %4006 = vsyncadd [#allocation3], 4294965248 }
  0x18   :  { %4007 = dma.done.wait [#allocation6], 8192  }
  0x19   :  { %4008 = vsyncadd [#allocation6], 4294959104  ;;  %v127_v0 = vlaneseq  ;;  %v4018_v1 = vmov 0   ;;  %s5564_s27 = sld [smem:[#allocation13_spill]]  ;;  %v4019_v33 = vmov 1.0   ;;  %vm184_vm8 = vcmask 523264  }
  0x1a   :  { %3671 = vset.pattern.permute.xlu0 %v4018_v1  ;;  %s5565_s29 = sld [smem:[#allocation12_spill]]  ;;  %v4020_v43 = vmov 64.0   ;;  %s4021_s0 = smov 64  }
  0x1b   :  { %v4166_v2 = vand.u32 127, %v127_v0  ;;  %v248_v3 = vshrl.u32 %v127_v0, 7  ;;  %s5566_s3 = sld [smem:[#allocation14_spill]]  ;;  %3719 = vrcp.f32 %v4020_v43  ;;  %s4023_s7 = smov 48  }
  0x1c   :  { %s5571_s4 = sld [smem:[#allocation15_spill]]  ;;  %s4024_s25 = smov 112  }
  0x1d   :  { %v249_v4 = vadd.s32 8, %v248_v3  ;;  %v250_v5 = vxor.u32 %v248_v3, %v4166_v2  ;;  %s5572_s26 = sld [smem:[#allocation18_spill]]  ;;  %s5553_s8 = smov 80  }
  0x1e   :  { %s5573_s28 = sld [smem:[#allocation16_spill]] }
  0x1f   :  { %v251_v6 = vxor.u32 %v249_v4, %v4166_v2  ;;  %v252_v7 = vand.u32 1, %v250_v5  ;;  %v246_v8 = vld [vmem:[%s5564_s27] sm:$0x1]  ;;  %s5574_s27 = sld [smem:[#allocation17_spill]] }
  0x20   :  { %v125_v9 = vld [vmem:[%s5565_s29] sm:$0xff]  ;;  %vm256_vm0 = vcmp.gt.f32.partialorder %v246_v8, 0.5  ;;  %v126_v16 = vld [vmem:[%s5565_s29 + $0x8] sm:$0xff]  ;;  %s5575_s29 = sld [smem:[#allocation19_spill]] }
  0x21   :  { %v253_v10 = vand.u32 1, %v251_v6  ;;  %130 = vperm.xlu0 %3671, %v125_v9   ;;  %v156_v11 = vld [vmem:[%s5566_s3 + $0x78] sm:$0xff]  ;;  %v155_v12 = vld [vmem:[%s5566_s3 + $0x70] sm:$0xff]  ;;  %v257_v13 = vsel %vm256_vm0, 1, %v4018_v1  ;;  %vm254_vm1 = vcmp.eq.s32.totalorder %v252_v7, 0  ;;  %v154_v15 = vld [vmem:[%s5566_s3 + $0x68] sm:$0xff]  ;;  %v3720_v44 = vpop.eup %3719 }
  0x22   :  { %159 = vmatpush.msra.mxu0 %v156_v11  ;;  %v258_v14 = vperm.slane %v257_v13, 0  ;;  %v153_v17 = vld [vmem:[%s5566_s3 + $0x60] sm:$0xff]  ;;  %v152_v18 = vld [vmem:[%s5566_s3 + $0x58] sm:$0xff]  ;;  %v151_v21 = vld [vmem:[%s5566_s3 + $0x50] sm:$0xff]  ;;  %v192_v45 = vmul.f32 64.0, %v3720_v44  ;;  %vm196_vm9 = vweird.f32 %v3720_v44  ;;  %vm344_vm0 = vcmask 130048  }
  0x23   :  { %vm255_vm2 = vcmp.eq.s32.totalorder %v253_v10, 0  ;;  %v150_v22 = vld [vmem:[%s5566_s3 + $0x48] sm:$0xff]  ;;  %v149_v23 = vld [vmem:[%s5566_s3 + $0x40] sm:$0xff]  ;;  %v148_v24 = vld [vmem:[%s5566_s3 + $0x38] sm:$0xff]  ;;  %s5576_s5 = sld [smem:[#allocation20_spill]] }
  0x24   :  { %160 = vmatpush.msra.mxu0 %v155_v12  ;;  %vm259_vm3 = vcmp.eq.s32.totalorder %v258_v14, 1  ;;  %v147_v25 = vld [vmem:[%s5566_s3 + $0x30] sm:$0xff]  ;;  %v146_v26 = vld [vmem:[%s5566_s3 + $0x28] sm:$0xff]  ;;  %v145_v27 = vld [vmem:[%s5566_s3 + $0x20] sm:$0xff]  ;;  %v193_v46 = vsub.f32 1.0, %v192_v45 }
  0x25   :  { %vm4194_vm4 = vmand %vm254_vm1, %vm259_vm3  ;;  %v144_v28 = vld [vmem:[%s5566_s3 + $0x18] sm:$0xff]  ;;  %v143_v29 = vld [vmem:[%s5566_s3 + $0x10] sm:$0xff]  ;;  %vm759_vm1 = vcmask 261120  }
  0x26   :  { %161 = vmatpush.msra.mxu0 %v154_v15  ;;  %vm4198_vm5 = vmand %vm255_vm2, %vm259_vm3  ;;  %v142_v30 = vld [vmem:[%s5566_s3 + $0x8] sm:$0xff]  ;;  %v141_v31 = vld [vmem:[%s5566_s3] sm:$0xff]  ;;  %v194_v47 = vmul.f32 %v3720_v44, %v193_v46  ;;  %s5551_s3 = smov 96   ;;  %vm762_vm2 = vcmask 392192  }
  0x27   :  { %v157_v35 = vld [vmem:[%s5571_s4] sm:$0xff]  ;;  %v158_v39 = vld [vmem:[%s5571_s4 + $0x8] sm:$0xff]  ;;  %v278_v60 = vld [vmem:[%s5572_s26 + $0x70] sm:$0xff]  ;;  %s4026_s4 = smov 32  }
  0x28   :  { %162 = vmatpush.msra.mxu0 %v153_v17  ;;  %v195_v48 = vadd.f32 %v3720_v44, %v194_v47  ;;  %v279_v61 = vld [vmem:[%s5572_s26 + $0x78] sm:$0xff]  ;;  %300 = vmatpush.msra.mxu1 %v278_v60  ;;  %v276_v62 = vld [vmem:[%s5572_s26 + $0x60] sm:$0xff]  ;;  %v277_v63 = vld [vmem:[%s5572_s26 + $0x68] sm:$0xff] }
  0x29   :  { %133 = vperm.xlu0 %3671, %v126_v16   ;;  %323 = vmatpush.msra.mxu2 %v279_v61  ;;  %v274_v0 = vld [vmem:[%s5572_s26 + $0x50] sm:$0xff]  ;;  %v275_v1 = vld [vmem:[%s5572_s26 + $0x58] sm:$0xff]  ;;  %v272_v3 = vld [vmem:[%s5572_s26 + $0x40] sm:$0xff] }
  0x2a   :  { %163 = vmatpush.msra.mxu0 %v152_v18  ;;  %v4245_v49 = vsel %vm196_vm9, %v3720_v44, %v195_v48  ;;  %301 = vmatpush.msra.mxu1 %v276_v62  ;;  %v273_v4 = vld [vmem:[%s5572_s26 + $0x48] sm:$0xff]  ;;  %v270_v5 = vld [vmem:[%s5572_s26 + $0x30] sm:$0xff]  ;;  %v271_v6 = vld [vmem:[%s5572_s26 + $0x38] sm:$0xff] }
  0x2b   :  { %324 = vmatpush.msra.mxu2 %v277_v63  ;;  %v268_v7 = vld [vmem:[%s5572_s26 + $0x20] sm:$0xff]  ;;  %v269_v8 = vld [vmem:[%s5572_s26 + $0x28] sm:$0xff]  ;;  %v266_v9 = vld [vmem:[%s5572_s26 + $0x10] sm:$0xff] }
  0x2c   :  { %164 = vmatpush.msra.mxu0 %v151_v21  ;;  %302 = vmatpush.msra.mxu1 %v274_v0  ;;  %v267_v10 = vld [vmem:[%s5572_s26 + $0x18] sm:$0xff]  ;;  %v264_v11 = vld [vmem:[%s5572_s26] sm:$0xff]  ;;  %v265_v12 = vld [vmem:[%s5572_s26 + $0x8] sm:$0xff] }
  0x2d   :  { %325 = vmatpush.msra.mxu2 %v275_v1  ;;  %v280_v43 = vld [vmem:[%s5575_s29] sm:$0x3] }
  0x2e   :  { %165 = vmatpush.msra.mxu0 %v150_v22  ;;  %303 = vmatpush.msra.mxu1 %v272_v3  ;;  %v282_v44 = vperm.slane %v280_v43, 0 }
  0x2f   :  { %326 = vmatpush.msra.mxu2 %v273_v4 }
  0x30   :  { %166 = vmatpush.msra.mxu0 %v149_v23  ;;  %304 = vmatpush.msra.mxu1 %v270_v5 }
  0x31   :  { %327 = vmatpush.msra.mxu2 %v271_v6 }
  0x32   :  { %167 = vmatpush.msra.mxu0 %v148_v24  ;;  %305 = vmatpush.msra.mxu1 %v268_v7 }
  0x33   :  { %328 = vmatpush.msra.mxu2 %v269_v8 }
  0x34   :  { %168 = vmatpush.msra.mxu0 %v147_v25  ;;  %306 = vmatpush.msra.mxu1 %v266_v9 }
  0x35   :  { %329 = vmatpush.msra.mxu2 %v267_v10 }
  0x36   :  { %169 = vmatpush.msra.mxu0 %v146_v26  ;;  %307 = vmatpush.msra.mxu1 %v264_v11 }
  0x37   :  { %330 = vmatpush.msra.mxu2 %v265_v12 }
  0x38   :  { %170 = vmatpush.msra.mxu0 %v145_v27 }
  0x3a   :  { %171 = vmatpush.msra.mxu0 %v144_v28 }
  0x3c   :  { %172 = vmatpush.msra.mxu0 %v143_v29  ;;  %v3702_v29 = vld [vmem:[%s5573_s28] ss:$0 sm:$0xff] }
  0x3e   :  { %173 = vmatpush.msra.mxu0 %v142_v30 }
  0x40   :  { %174 = vmatpush.msra.mxu0 %v141_v31 }
  0x93   :  { %v131_v32 = vpop.permute.xlu0 %130 }
  0x94   :  { %vm135_vm6 = vcmp.eq.s32.totalorder %v4166_v2, %v131_v32 }
  0x95   :  { %3481 = vmatmul.msk.f32.vlgmr.msra.gmra.mxu0 %vm135_vm6, %v4019_v33 }
  0x9b   :  { %v134_v34 = vpop.permute.xlu0 %133 }
  0x9c   :  { %vm136_vm7 = vcmp.eq.s32.totalorder %v4166_v2, %v134_v34 }
  0x9d   :  { %3482 = vmatmul.msk.f32.gmra.mxu0 %vm136_vm7, %v4019_v33  ;;  %v3703_v33 = vld [vmem:[%s5574_s27] ss:$0 sm:$0xff]  ;;  %s5578_s27 = smov 96  }
 0x112   :  { %v176_v36 = vpop.f32.mrf.mxu0 }
 0x113   :  { %v177_v37 = vadd.f32 %v176_v36, %v157_v35 }
 0x115   :  { %v185_v38 = vsel %vm184_vm8, %v177_v37, 0.0 }
 0x116   :  { %186 = vadd.xlane.f32.xlu1 %v185_v38 }
 0x11a   :  { %v179_v40 = vpop.f32.mrf.mxu0 }
 0x11b   :  { %v180_v41 = vadd.f32 %v179_v40, %v158_v39 }
 0x11d   :  { %v188_v42 = vsel %vm184_vm8, %v180_v41, 0.0 }
 0x11e   :  { %189 = vadd.xlane.f32.xlu1 %v188_v42 }
 0x189   :  { %v187_v50 = vpop.xlane.xlu1 %186 }
 0x18a   :  { %v198_v51 = vmul.f32 %v4245_v49, %v187_v50 }
 0x18c   :  { %v4248_v52 = vsub.f32 %v177_v37, %v198_v51 }
 0x18e   :  { %v202_v53 = vmul.f32 %v4248_v52, %v4248_v52 }
 0x190   :  { %v204_v54 = vsel %vm184_vm8, %v202_v53, 0.0  ;;  %v283_v53 = vperm.slane %v280_v43, 1 }
 0x191   :  { %205 = vadd.xlane.f32.xlu2 %v204_v54  ;;  %v190_v55 = vpop.xlane.xlu1 %189 }
 0x192   :  { %v199_v56 = vmul.f32 %v4245_v49, %v190_v55 }
 0x194   :  { %v4254_v57 = vsub.f32 %v180_v41, %v199_v56 }
 0x196   :  { %v203_v58 = vmul.f32 %v4254_v57, %v4254_v57 }
 0x198   :  { %v207_v59 = vsel %vm184_vm8, %v203_v58, 0.0 }
 0x199   :  { %208 = vadd.xlane.f32.xlu2 %v207_v59 }
 0x204   :  { %v206_v13 = vpop.xlane.xlu2 %205 }
 0x205   :  { %v210_v14 = vmul.f32 %v206_v13, %v4245_v49 }
 0x207   :  { %v212_v15 = vadd.f32 1e-12, %v210_v14 }
 0x209   :  { %3721 = vrsqrt.f32 %v212_v15  ;;  %vm220_vm11 = vweird.f32 %v212_v15 }
 0x20c   :  { %v209_v16 = vpop.xlane.xlu2 %208 }
 0x20d   :  { %v211_v17 = vmul.f32 %v209_v16, %v4245_v49 }
 0x20f   :  { %v3722_v18 = vpop.eup %3721  ;;  %v213_v21 = vadd.f32 1e-12, %v211_v17 }
 0x210   :  { %v215_v22 = vmul.f32 %v3722_v18, %v212_v15  ;;  %vm221_vm10 = vweird.f32 %v3722_v18 }
 0x211   :  { %3723 = vrsqrt.f32 %v213_v21  ;;  %vm222_vm12 = vmor %vm220_vm11, %vm221_vm10  ;;  %vm230_vm14 = vweird.f32 %v213_v21 }
 0x212   :  { %v216_v23 = vmul.f32 %v3722_v18, %v215_v22 }
 0x214   :  { %v217_v24 = vmul.f32 0.5, %v216_v23 }
 0x216   :  { %v218_v25 = vsub.f32 1.5, %v217_v24 }
 0x217   :  { %v3724_v26 = vpop.eup %3723 }
 0x218   :  { %v219_v27 = vmul.f32 %v3722_v18, %v218_v25  ;;  %v225_v28 = vmul.f32 %v3724_v26, %v213_v21  ;;  %vm231_vm13 = vweird.f32 %v3724_v26 }
 0x219   :  { %vm232_vm15 = vmor %vm230_vm14, %vm231_vm13 }
 0x21a   :  { %v226_v30 = vmul.f32 %v3724_v26, %v225_v28  ;;  %v223_v31 = vsel %vm222_vm12, %v3722_v18, %v219_v27 }
 0x21b   :  { %v234_v32 = vmul.f32 %v223_v31, %v4248_v52 }
 0x21c   :  { %v227_v34 = vmul.f32 0.5, %v226_v30 }
 0x21d   :  { %v239_v35 = vmul.f32 %v3702_v29, %v234_v32 }
 0x21e   :  { %v228_v36 = vsub.f32 1.5, %v227_v34 }
 0x21f   :  { %v4316_v37 = vadd.f32 %v3703_v33, %v239_v35 }
 0x220   :  { %v229_v38 = vmul.f32 %v3724_v26, %v228_v36 }
 0x221   :  { %3483 = vmatmul.msk.f32.vlgmr.msra.gmra.mxu1 %vm184_vm8, %v4316_v37  ;;  %3485 = vmatmul.msk.f32.vlgmr.msra.gmra.mxu2 %vm184_vm8, %v4316_v37 }
 0x222   :  { %v233_v39 = vsel %vm232_vm15, %v3724_v26, %v229_v38 }
 0x223   :  { %v235_v40 = vmul.f32 %v233_v39, %v4254_v57  ;;  %v4022_v57 = vmov -10000.0  }
 0x224   :  { %v4354_v58 = vsel %vm4194_vm4, 0.0, %v4022_v57  ;;  %v4360_v63 = vsel %vm4198_vm5, 0.0, %v4022_v57 }
 0x225   :  { %v240_v41 = vmul.f32 %v3702_v29, %v235_v40 }
 0x227   :  { %v4323_v42 = vadd.f32 %v3703_v33, %v240_v41 }
 0x229   :  { %3484 = vmatmul.msk.f32.gmra.mxu1 %vm184_vm8, %v4323_v42  ;;  %3486 = vmatmul.msk.f32.gmra.mxu2 %vm184_vm8, %v4323_v42 }
 0x29e   :  { %v309_v45 = vpop.f32.mrf.mxu1 }
 0x29f   :  { %v4332_v46 = vadd.f32 %v309_v45, %v282_v44 }
 0x2a1   :  { %340 = vrot.lane.b32.xlu1 %v4332_v46, %s4021_s0 }
 0x2a4   :  { %v332_v50 = vpop.f32.mrf.mxu2 }
 0x2a5   :  { %v4345_v56 = vadd.f32 %v332_v50, %v283_v53 }
 0x2a6   :  { %v312_v47 = vpop.f32.mrf.mxu1 }
 0x2a7   :  { %v4336_v48 = vadd.f32 %v312_v47, %v282_v44 }
 0x2a9   :  { %342 = vrot.lane.b32.xlu0 %v4336_v48, %s4021_s0 }
 0x2ac   :  { %v335_v52 = vpop.f32.mrf.mxu2 }
 0x2ad   :  { %v4341_v54 = vadd.f32 %v335_v52, %v283_v53 }
 0x2af   :  { %v3672_v52 = vpack.i.bf16 %v4345_v56, %v4341_v54 }
 0x313   :  { %v341_v55 = vpop.permute.xlu1 %340 }
 0x31b   :  { %v343_v51 = vpop.permute.xlu0 %342 }
 0x31c   :  { %3487 = vmatpush.xpose.msk.msra.mxu3 %vm344_vm0, %v343_v51 }
 0x320   :  { %3488 = vmatpush.xpose.msk.msra.mxu3 %vm344_vm0, %v341_v55 }
 0x323   :  { %3489 = vmatmul.msk.f32.vlgmr.msra.gmra.mxu3 %vm344_vm0, %v4332_v46 }
 0x324   :  { %422 = vmatpush.msrb.mxu3 %v4341_v54 }
 0x326   :  { %423 = vmatpush.msrb.mxu3 %v4345_v56 }
 0x32b   :  { %3490 = vmatmul.msk.f32.gmra.mxu3 %vm344_vm0, %v4336_v48 }
 0x3a6   :  { %v370_v59 = vpop.f32.mrf.mxu3 }
 0x3a7   :  { %v376_v60 = vmul.f32 0.25, %v370_v59 }
 0x3a9   :  { %v378_v61 = vadd.f32 %v376_v60, %v4354_v58 }
 0x3ab   :  { %v380_v62 = vsel %vm344_vm0, %v378_v61, -inf }
 0x3ac   :  { %381 = vmax.xlane.f32.xlu2 %v380_v62 }
 0x3ae   :  { %v373_v0 = vpop.f32.mrf.mxu3 }
 0x3af   :  { %v377_v1 = vmul.f32 0.25, %v373_v0 }
 0x3b1   :  { %v379_v3 = vadd.f32 %v377_v1, %v4360_v63 }
 0x3b3   :  { %v383_v4 = vsel %vm344_vm0, %v379_v3, -inf }
 0x3b4   :  { %384 = vmax.xlane.f32.xlu0 %v383_v4 }
 0x3c4   :  { %437 = vrot.lane.b32.xlu2 %v4336_v48, %s4023_s7 }
 0x3c8   :  { %433 = vrot.lane.b32.xlu0 %v4336_v48, %s4024_s25 }
 0x3cc   :  { %435 = vrot.lane.b32.xlu2 %v4332_v46, %s4023_s7 }
 0x3d0   :  { %637 = vrot.lane.b32.xlu0 %v4332_v46, %s4013_s30 }
 0x3d4   :  { %431 = vrot.lane.b32.xlu2 %v4332_v46, %s4024_s25 }
 0x3d8   :  { %633 = vrot.lane.b32.xlu0 %v4332_v46, %s5553_s8 }
 0x3dc   :  { %539 = vrot.lane.b32.xlu2 %v4336_v48, %s4026_s4 }
 0x3e0   :  { %635 = vrot.lane.b32.xlu0 %v4336_v48, %s5553_s8 }
 0x3e4   :  { %639 = vrot.lane.b32.xlu2 %v4336_v48, %s4013_s30 }
 0x41f   :  { %v382_v19 = vpop.xlane.xlu2 %381 }
 0x420   :  { %v386_v20 = vsub.f32 %v378_v61, %v382_v19 }
 0x422   :  { %v388_v5 = vmul.f32 1.442695, %v386_v20 }
 0x424   :  { %3725 = vpow2.f32 %v388_v5 }
 0x427   :  { %v438_v6 = vpop.permute.xlu2 %437  ;;  %v385_v7 = vpop.xlane.xlu0 %384 }
 0x428   :  { %v387_v8 = vsub.f32 %v379_v3, %v385_v7  ;;  %3493 = vmatpush.xpose.msk.msrb.mxu1 %vm344_vm0, %v438_v6 }
 0x42a   :  { %v3726_v9 = vpop.eup %3725  ;;  %v390_v10 = vmul.f32 1.442695, %v387_v8 }
 0x42b   :  { %v392_v11 = vsel %vm344_vm0, %v3726_v9, 0.0 }
 0x42c   :  { %3727 = vpow2.f32 %v390_v10  ;;  %393 = vadd.xlane.f32.xlu2 %v392_v11 }
 0x42f   :  { %v436_v12 = vpop.permute.xlu2 %435 }
 0x430   :  { %3494 = vmatpush.xpose.msk.msrb.mxu1 %vm344_vm0, %v436_v12 }
 0x432   :  { %v3728_v13 = vpop.eup %3727 }
 0x433   :  { %v395_v14 = vsel %vm344_vm0, %v3728_v13, 0.0 }
 0x434   :  { %396 = vadd.xlane.f32.xlu1 %v395_v14 }
 0x437   :  { %v432_v15 = vpop.permute.xlu2 %431 }
 0x438   :  { %3495 = vmatmul.msk.f32.vlgmr.msrb.gmra.mxu1 %vm344_vm0, %v432_v15 }
 0x43a   :  { %v434_v16 = vpop.permute.xlu0 %433 }
 0x43f   :  { %v540_v17 = vpop.permute.xlu2 %539 }
 0x440   :  { %3496 = vmatmul.msk.f32.gmra.mxu1 %vm344_vm0, %v434_v16  ;;  %3499 = vmatpush.xpose.msk.msra.mxu3 %vm344_vm0, %v540_v17 }
 0x442   :  { %v638_v18 = vpop.permute.xlu0 %637 }
 0x444   :  { %533 = vrot.lane.b32.xlu2 %v4332_v46, %s5551_s3 }
 0x447   :  { %v640_v21 = vpop.permute.xlu2 %639 }
 0x448   :  { %3505 = vmatpush.xpose.msk.msra.mxu1 %vm344_vm0, %v640_v21 }
 0x44a   :  { %v634_v22 = vpop.permute.xlu0 %633 }
 0x44c   :  { %535 = vrot.lane.b32.xlu2 %v4336_v48, %s5551_s3  ;;  %3506 = vmatpush.xpose.msk.msra.mxu1 %vm344_vm0, %v638_v18 }
 0x44d   :  { %537 = vrot.lane.b32.xlu1 %v4332_v46, %s4026_s4 }
 0x44f   :  { %3507 = vmatmul.msk.f32.vlgmr.msra.gmra.mxu1 %vm344_vm0, %v634_v22 }
 0x452   :  { %v636_v23 = vpop.permute.xlu0 %635 }
 0x457   :  { %3508 = vmatmul.msk.f32.gmra.mxu1 %vm344_vm0, %v636_v23 }
 0x49f   :  { %v394_v24 = vpop.xlane.xlu2 %393 }
 0x4a0   :  { %3729 = vrcp.f32 %v394_v24 }
 0x4a6   :  { %v3730_v25 = vpop.eup %3729 }
 0x4a7   :  { %v397_v26 = vpop.xlane.xlu1 %396  ;;  %v400_v27 = vmul.f32 %v3730_v25, %v3726_v9  ;;  %v534_v38 = vpop.permute.xlu2 %533 }
 0x4a8   :  { %3731 = vrcp.f32 %v397_v26 }
 0x4a9   :  { %3491 = vmatmul.msk.f32.vlgmr.msrb.gmra.mxu3 %vm344_vm0, %v400_v27 }
 0x4ae   :  { %v3732_v28 = vpop.eup %3731 }
 0x4af   :  { %v401_v29 = vmul.f32 %v3732_v28, %v3728_v13  ;;  %v536_v41 = vpop.permute.xlu2 %535 }
 0x4b1   :  { %3492 = vmatmul.msk.f32.gmra.mxu3 %vm344_vm0, %v401_v29 }
 0x4b5   :  { %v464_v30 = vpop.f32.mrf.mxu1 }
 0x4b6   :  { %v470_v31 = vmul.f32 0.25, %v464_v30 }
 0x4b8   :  { %v472_v32 = vadd.f32 %v470_v31, %v4354_v58 }
 0x4ba   :  { %v474_v33 = vsel %vm344_vm0, %v472_v32, -inf }
 0x4bb   :  { %475 = vmax.xlane.f32.xlu2 %v474_v33 }
 0x4bd   :  { %v467_v34 = vpop.f32.mrf.mxu1 }
 0x4be   :  { %v471_v35 = vmul.f32 0.25, %v467_v34 }
 0x4bf   :  { %v538_v36 = vpop.permute.xlu1 %537 }
 0x4c0   :  { %3500 = vmatpush.xpose.msk.msra.mxu3 %vm344_vm0, %v538_v36  ;;  %v473_v39 = vadd.f32 %v471_v35, %v4360_v63 }
 0x4c2   :  { %v477_v40 = vsel %vm344_vm0, %v473_v39, -inf }
 0x4c3   :  { %3501 = vmatmul.msk.f32.vlgmr.msra.gmra.mxu3 %vm344_vm0, %v534_v38  ;;  %478 = vmax.xlane.f32.xlu1 %v477_v40 }
 0x4cb   :  { %3502 = vmatmul.msk.f32.gmra.mxu3 %vm344_vm0, %v536_v41 }
 0x4cc   :  { %v666_v43 = vpop.f32.mrf.mxu1 }
 0x4cd   :  { %v672_v44 = vmul.f32 0.25, %v666_v43 }
 0x4cf   :  { %v674_v45 = vadd.f32 %v672_v44, %v4354_v58 }
 0x4d1   :  { %v676_v46 = vsel %vm344_vm0, %v674_v45, -inf }
 0x4d2   :  { %677 = vmax.xlane.f32.xlu0 %v676_v46 }
 0x4d4   :  { %v669_v47 = vpop.f32.mrf.mxu1 }
 0x4d5   :  { %v673_v48 = vmul.f32 0.25, %v669_v47 }
 0x4d7   :  { %v675_v50 = vadd.f32 %v673_v48, %v4360_v63 }
 0x4d9   :  { %v679_v51 = vsel %vm344_vm0, %v675_v50, -inf }
 0x4da   :  { %680 = vmax.xlane.f32.xlu1 %v679_v51 }
 0x4f3   :  { %3673 = vrot.lane.b32.xlu1 %v3672_v52, %s4024_s25 }
 0x4fb   :  { %3683 = vrot.lane.b32.xlu1 %v3672_v52, %s5551_s3 }
 0x52c   :  { %v4416_v53 = vpop.f32.mrf.mxu3 }
 0x52e   :  { %v476_v57 = vpop.xlane.xlu2 %475 }
 0x52f   :  { %v480_v59 = vsub.f32 %v472_v32, %v476_v57 }
 0x531   :  { %v482_v60 = vmul.f32 1.442695, %v480_v59 }
 0x533   :  { %3733 = vpow2.f32 %v482_v60 }
 0x534   :  { %v4418_v55 = vpop.f32.mrf.mxu3 }
 0x536   :  { %v479_v61 = vpop.xlane.xlu1 %478 }
 0x537   :  { %v481_v3 = vsub.f32 %v473_v39, %v479_v61 }
 0x539   :  { %v484_v19 = vmul.f32 1.442695, %v481_v3  ;;  %v3734_v8 = vpop.eup %3733 }
 0x53a   :  { %v486_v11 = vsel %vm344_vm0, %v3734_v8, 0.0 }
 0x53b   :  { %3735 = vpow2.f32 %v484_v19 }
 0x541   :  { %v3736_v14 = vpop.eup %3735 }
 0x542   :  { %v489_v16 = vsel %vm344_vm0, %v3736_v14, 0.0 }
 0x545   :  { %v678_v0 = vpop.xlane.xlu0 %677 }
 0x546   :  { %v566_v62 = vpop.f32.mrf.mxu3  ;;  %v682_v54 = vsub.f32 %v674_v45, %v678_v0 }
 0x547   :  { %v572_v1 = vmul.f32 0.25, %v566_v62 }
 0x548   :  { %v684_v20 = vmul.f32 1.442695, %v682_v54 }
 0x549   :  { %v574_v4 = vadd.f32 %v572_v1, %v4354_v58 }
 0x54a   :  { %3737 = vpow2.f32 %v684_v20 }
 0x54b   :  { %v576_v56 = vsel %vm344_vm0, %v574_v4, -inf }
 0x54c   :  { %577 = vmax.xlane.f32.xlu2 %v576_v56 }
 0x54d   :  { %v681_v6 = vpop.xlane.xlu1 %680 }
 0x54e   :  { %v569_v5 = vpop.f32.mrf.mxu3  ;;  %v683_v10 = vsub.f32 %v675_v50, %v681_v6 }
 0x54f   :  { %v573_v7 = vmul.f32 0.25, %v569_v5 }
 0x550   :  { %v686_v13 = vmul.f32 1.442695, %v683_v10  ;;  %v3738_v15 = vpop.eup %3737  ;;  %v769_v10 = vld [vmem:[%s5576_s5 + $0x20] sm:$0xff] }
 0x551   :  { %v575_v9 = vadd.f32 %v573_v7, %v4360_v63  ;;  %v688_v17 = vsel %vm344_vm0, %v3738_v15, 0.0  ;;  %v772_v7 = vld [vmem:[%s5576_s5 + $0x38] sm:$0xff] }
 0x552   :  { %3739 = vpow2.f32 %v686_v13  ;;  %791 = vmatpush.msrb.mxu3 %v772_v7  ;;  %v766_v13 = vld [vmem:[%s5576_s5 + $0x8] sm:$0xff] }
 0x553   :  { %v579_v12 = vsel %vm344_vm0, %v575_v9, -inf }
 0x554   :  { %487 = vadd.xlane.f32.xlu2 %v486_v11  ;;  %580 = vmax.xlane.f32.xlu0 %v579_v12  ;;  %v768_v11 = vld [vmem:[%s5576_s5 + $0x18] sm:$0xff]  ;;  %v767_v12 = vld [vmem:[%s5576_s5 + $0x10] sm:$0xff] }
 0x558   :  { %v3740_v18 = vpop.eup %3739 }
 0x559   :  { %v691_v21 = vsel %vm344_vm0, %v3740_v18, 0.0 }
 0x55c   :  { %490 = vadd.xlane.f32.xlu0 %v489_v16  ;;  %689 = vadd.xlane.f32.xlu2 %v688_v17 }
 0x564   :  { %692 = vadd.xlane.f32.xlu0 %v691_v21 }
 0x565   :  { %v3674_v22 = vpop.permute.xlu1 %3673 }
 0x566   :  { %v3675_v23 = vunpack.i.l.bf16 %v3674_v22  ;;  %v3676_v24 = vunpack.i.h.bf16 %v3674_v22 }
 0x568   :  { %524 = vmatpush.msrb.mxu2 %v3675_v23 }
 0x56a   :  { %525 = vmatpush.msrb.mxu2 %v3676_v24 }
 0x56d   :  { %v3684_v25 = vpop.permute.xlu1 %3683 }
 0x56e   :  { %v3685_v26 = vunpack.i.l.bf16 %v3684_v25  ;;  %v3686_v27 = vunpack.i.h.bf16 %v3684_v25 }
 0x570   :  { %624 = vmatpush.msrb.mxu0 %v3685_v26 }
 0x572   :  { %625 = vmatpush.msrb.mxu0 %v3686_v27 }
 0x574   :  { %3678 = vrot.lane.b32.xlu2 %v3672_v52, %s5553_s8  ;;  %s3468_s8 = sshll.u32 %s5544_s24, 4  ;;  %s3469_s8 = int_to_ptr.hbm [resolvable:$true] %s3468_s8 }
 0x5bf   :  { %v578_v28 = vpop.xlane.xlu2 %577 }
 0x5c0   :  { %v582_v29 = vsub.f32 %v574_v4, %v578_v28 }
 0x5c2   :  { %v584_v30 = vmul.f32 1.442695, %v582_v29 }
 0x5c4   :  { %3741 = vpow2.f32 %v584_v30 }
 0x5c7   :  { %v488_v31 = vpop.xlane.xlu2 %487  ;;  %v581_v32 = vpop.xlane.xlu0 %580 }
 0x5c8   :  { %3743 = vrcp.f32 %v488_v31  ;;  %v583_v33 = vsub.f32 %v575_v9, %v581_v32  ;;  %v770_v9 = vld [vmem:[%s5576_s5 + $0x28] sm:$0xff] }
 0x5ca   :  { %v3742_v34 = vpop.eup %3741  ;;  %v586_v35 = vmul.f32 1.442695, %v583_v33 }
 0x5cb   :  { %v588_v36 = vsel %vm344_vm0, %v3742_v34, 0.0 }
 0x5cc   :  { %3745 = vpow2.f32 %v586_v35  ;;  %589 = vadd.xlane.f32.xlu0 %v588_v36 }
 0x5ce   :  { %v3744_v38 = vpop.eup %3743 }
 0x5cf   :  { %v690_v39 = vpop.xlane.xlu2 %689  ;;  %v491_v40 = vpop.xlane.xlu0 %490  ;;  %v494_v41 = vmul.f32 %v3744_v38, %v3734_v8  ;;  %v771_v8 = vld [vmem:[%s5576_s5 + $0x30] sm:$0xff] }
 0x5d0   :  { %3747 = vrcp.f32 %v491_v40  ;;  %792 = vmatpush.msrb.mxu3 %v771_v8 }
 0x5d1   :  { %3497 = vmatmul.msk.f32.vlgmr.msrb.gmra.mxu2 %vm344_vm0, %v494_v41  ;;  %3749 = vrcp.f32 %v690_v39 }
 0x5d2   :  { %v3746_v43 = vpop.eup %3745  ;;  %793 = vmatpush.msrb.mxu3 %v770_v9 }
 0x5d3   :  { %v591_v44 = vsel %vm344_vm0, %v3746_v43, 0.0 }
 0x5d4   :  { %592 = vadd.xlane.f32.xlu0 %v591_v44  ;;  %794 = vmatpush.msrb.mxu3 %v769_v10 }
 0x5d6   :  { %v3748_v45 = vpop.eup %3747  ;;  %795 = vmatpush.msrb.mxu3 %v768_v11  ;;  %v3705_v11 = vld [vmem:[%s5530_s10] ss:$0 sm:$0xff] }
 0x5d7   :  { %v3679_v46 = vpop.permute.xlu2 %3678  ;;  %v495_v48 = vmul.f32 %v3748_v45, %v3736_v14  ;;  %v693_v51 = vpop.xlane.xlu0 %692  ;;  %v765_v14 = vld [vmem:[%s5576_s5] sm:$0xff] }
 0x5d8   :  { %v3680_v47 = vunpack.i.l.bf16 %v3679_v46  ;;  %v3681_v50 = vunpack.i.h.bf16 %v3679_v46  ;;  %v3750_v52 = vpop.eup %3749  ;;  %3751 = vrcp.f32 %v693_v51  ;;  %796 = vmatpush.msrb.mxu3 %v767_v12  ;;  %v867_v51 = vld [vmem:[#allocation2 + $0x18] sm:$0xff] }
 0x5d9   :  { %3498 = vmatmul.msk.f32.gmra.mxu2 %vm344_vm0, %v495_v48  ;;  %v696_v57 = vmul.f32 %v3750_v52, %v3738_v15  ;;  %v869_v48 = vld [vmem:[#allocation2 + $0x28] sm:$0xff]  ;;  %v866_v52 = vld [vmem:[#allocation2 + $0x10] sm:$0xff] }
 0x5da   :  { %724 = vmatpush.msra.mxu2 %v3680_v47  ;;  %797 = vmatpush.msrb.mxu3 %v766_v13  ;;  %v870_v47 = vld [vmem:[#allocation2 + $0x30] sm:$0xff] }
 0x5dc   :  { %725 = vmatpush.msra.mxu2 %v3681_v50  ;;  %798 = vmatpush.msrb.mxu3 %v765_v14  ;;  %v868_v50 = vld [vmem:[#allocation2 + $0x20] sm:$0xff] }
 0x5de   :  { %v3752_v59 = vpop.eup %3751 }
 0x5df   :  { %v697_v60 = vmul.f32 %v3752_v59, %v3740_v18  ;;  %v864_v59 = vld [vmem:[#allocation2] sm:$0xff] }
 0x5e1   :  { %3509 = vmatmul.msk.f32.vlgmr.msra.gmra.mxu2 %vm344_vm0, %v696_v57  ;;  %v865_v57 = vld [vmem:[#allocation2 + $0x8] sm:$0xff] }
 0x5e9   :  { %3510 = vmatmul.msk.f32.gmra.mxu2 %vm344_vm0, %v697_v60 }
 0x63f   :  { %v590_v61 = vpop.xlane.xlu0 %589 }
 0x640   :  { %3753 = vrcp.f32 %v590_v61 }
 0x646   :  { %v3754_v62 = vpop.eup %3753 }
 0x647   :  { %v593_v0 = vpop.xlane.xlu0 %592  ;;  %v596_v1 = vmul.f32 %v3754_v62, %v3742_v34 }
 0x648   :  { %3755 = vrcp.f32 %v593_v0  ;;  %v938_v0 = vld [vmem:[%s5534_s14 + $0x78] sm:$0xff] }
 0x649   :  { %3503 = vmatmul.msk.f32.vlgmr.msrb.gmra.mxu0 %vm344_vm0, %v596_v1  ;;  %v937_v1 = vld [vmem:[%s5534_s14 + $0x70] sm:$0xff]  ;;  %943 = vmatpush.msrb.mxu1 %v938_v0 }
 0x64b   :  { %944 = vmatpush.msrb.mxu1 %v937_v1 }
 0x64e   :  { %v3756_v3 = vpop.eup %3755 }
 0x64f   :  { %v597_v4 = vmul.f32 %v3756_v3, %v3746_v43  ;;  %v936_v3 = vld [vmem:[%s5534_s14 + $0x68] sm:$0xff] }
 0x650   :  { %945 = vmatpush.msrb.mxu1 %v936_v3 }
 0x651   :  { %3504 = vmatmul.msk.f32.gmra.mxu0 %vm344_vm0, %v597_v4 }
 0x654   :  { %v527_v54 = vpop.f32.mrf.mxu2 }
 0x655   :  { %735 = vrot.lane.b32.xlu1 %v527_v54, %s4013_s30 }
 0x65c   :  { %v530_v56 = vpop.f32.mrf.mxu2 }
 0x65d   :  { %737 = vrot.lane.b32.xlu1 %v530_v56, %s4013_s30 }
 0x664   :  { %v727_v19 = vpop.f32.mrf.mxu2 }
 0x665   :  { %751 = vrot.lane.b32.xlu2 %v727_v19, %s4023_s7 }
 0x66c   :  { %v730_v20 = vpop.f32.mrf.mxu2 }
 0x66d   :  { %753 = vrot.lane.b32.xlu1 %v730_v20, %s4023_s7 }
 0x6bf   :  { %v752_v16 = vpop.permute.xlu2 %751 }
 0x6c6   :  { %v627_v5 = vpop.f32.mrf.mxu0 }
 0x6c7   :  { %743 = vrot.lane.b32.xlu0 %v627_v5, %s4026_s4  ;;  %v736_v15 = vpop.permute.xlu1 %735 }
 0x6c8   :  { %v757_v17 = vsel %vm344_vm0, %v4416_v53, %v736_v15  ;;  %v3704_v53 = vld [vmem:[%s5529_s9] ss:$0 sm:$0xff] }
 0x6c9   :  { %v3706_v15 = vld [vmem:[%s5531_s11] ss:$0 sm:$0xff] }
 0x6ce   :  { %v630_v6 = vpop.f32.mrf.mxu0 }
 0x6cf   :  { %745 = vrot.lane.b32.xlu2 %v630_v6, %s4026_s4  ;;  %v738_v21 = vpop.permute.xlu1 %737 }
 0x6d0   :  { %v758_v25 = vsel %vm344_vm0, %v4418_v55, %v738_v21 }
 0x6df   :  { %v754_v27 = vpop.permute.xlu1 %753 }
 0x729   :  { %v746_v24 = vpop.permute.xlu2 %745 }
 0x72a   :  { %v761_v26 = vsel %vm759_vm1, %v758_v25, %v746_v24 }
 0x72b   :  { %v764_v28 = vsel %vm762_vm2, %v761_v26, %v754_v27  ;;  %v935_v27 = vld [vmem:[%s5534_s14 + $0x60] sm:$0xff] }
 0x72c   :  { %946 = vmatpush.msrb.mxu1 %v935_v27  ;;  %v3526_v27 = vld [vmem:[%s5572_s26 + $0xd8] sm:$0xff] }
 0x739   :  { %v744_v18 = vpop.permute.xlu0 %743 }
 0x73a   :  { %v760_v22 = vsel %vm759_vm1, %v757_v17, %v744_v18 }
 0x73b   :  { %v763_v23 = vsel %vm762_vm2, %v760_v22, %v752_v16 }
 0x73c   :  { %3511 = vmatmul.msk.f32.vlgmr.msrb.gmra.mxu3 %vm184_vm8, %v763_v23 }
 0x744   :  { %3512 = vmatmul.msk.f32.gmra.mxu3 %vm184_vm8, %v764_v28  ;;  %v934_v28 = vld [vmem:[%s5534_s14 + $0x58] sm:$0xff] }
 0x745   :  { %947 = vmatpush.msrb.mxu1 %v934_v28  ;;  %v3523_v28 = vld [vmem:[%s5572_s26 + $0xc0] sm:$0xff] }
 0x7bf   :  { %v800_v29 = vpop.f32.mrf.mxu3 }
 0x7c0   :  { %v801_v30 = vadd.f32 %v3704_v53, %v800_v29  ;;  %v932_v29 = vld [vmem:[%s5534_s14 + $0x48] sm:$0xff] }
 0x7c2   :  { %v806_v31 = vadd.f32 %v801_v30, %v4316_v37  ;;  %v931_v30 = vld [vmem:[%s5534_s14 + $0x40] sm:$0xff] }
 0x7c4   :  { %v810_v32 = vsel %vm184_vm8, %v806_v31, 0.0 }
 0x7c5   :  { %811 = vadd.xlane.f32.xlu2 %v810_v32  ;;  %v929_v32 = vld [vmem:[%s5534_s14 + $0x30] sm:$0xff] }
 0x7c7   :  { %v803_v33 = vpop.f32.mrf.mxu3 }
 0x7c8   :  { %v804_v55 = vadd.f32 %v3704_v53, %v803_v33  ;;  %v933_v53 = vld [vmem:[%s5534_s14 + $0x50] sm:$0xff]  ;;  %v928_v33 = vld [vmem:[%s5534_s14 + $0x28] sm:$0xff] }
 0x7c9   :  { %948 = vmatpush.msrb.mxu1 %v933_v53  ;;  %v3524_v53 = vld [vmem:[%s5572_s26 + $0xc8] sm:$0xff] }
 0x7ca   :  { %v807_v34 = vadd.f32 %v804_v55, %v4323_v42  ;;  %v871_v42 = vld [vmem:[#allocation2 + $0x38] sm:$0xff]  ;;  %v927_v55 = vld [vmem:[%s5534_s14 + $0x20] sm:$0xff] }
 0x7cb   :  { %890 = vmatpush.msra.mxu0 %v871_v42  ;;  %949 = vmatpush.msrb.mxu1 %v932_v29  ;;  %v3521_v29 = vld [vmem:[%s5572_s26 + $0xb0] sm:$0xff] }
 0x7cc   :  { %v813_v35 = vsel %vm184_vm8, %v807_v34, 0.0 }
 0x7cd   :  { %814 = vadd.xlane.f32.xlu0 %v813_v35  ;;  %891 = vmatpush.msra.mxu0 %v870_v47  ;;  %v925_v35 = vld [vmem:[%s5534_s14 + $0x10] sm:$0xff] }
 0x7ce   :  { %950 = vmatpush.msrb.mxu1 %v931_v30  ;;  %v3522_v30 = vld [vmem:[%s5572_s26 + $0xb8] sm:$0xff] }
 0x7cf   :  { %892 = vmatpush.msra.mxu0 %v869_v48 }
 0x7d1   :  { %893 = vmatpush.msra.mxu0 %v868_v50 }
 0x7d3   :  { %894 = vmatpush.msra.mxu0 %v867_v51 }
 0x7d5   :  { %895 = vmatpush.msra.mxu0 %v866_v52 }
 0x7d7   :  { %896 = vmatpush.msra.mxu0 %v865_v57 }
 0x7d9   :  { %897 = vmatpush.msra.mxu0 %v864_v59 }
 0x838   :  { %v812_v36 = vpop.xlane.xlu2 %811 }
 0x839   :  { %v816_v38 = vmul.f32 %v812_v36, %v4245_v49  ;;  %v924_v36 = vld [vmem:[%s5534_s14 + $0x8] sm:$0xff] }
 0x83b   :  { %v818_v39 = vsub.f32 %v806_v31, %v816_v38  ;;  %v930_v31 = vld [vmem:[%s5534_s14 + $0x38] sm:$0xff]  ;;  %v923_v38 = vld [vmem:[%s5534_s14] sm:$0xff] }
 0x83c   :  { %951 = vmatpush.msrb.mxu1 %v930_v31  ;;  %v3519_v31 = vld [vmem:[%s5572_s26 + $0xa0] sm:$0xff] }
 0x83d   :  { %v820_v40 = vmul.f32 %v818_v39, %v818_v39 }
 0x83e   :  { %952 = vmatpush.msrb.mxu1 %v929_v32  ;;  %v3520_v32 = vld [vmem:[%s5572_s26 + $0xa8] sm:$0xff] }
 0x83f   :  { %v822_v41 = vsel %vm184_vm8, %v820_v40, 0.0 }
 0x840   :  { %v815_v43 = vpop.xlane.xlu0 %814  ;;  %823 = vadd.xlane.f32.xlu1 %v822_v41  ;;  %953 = vmatpush.msrb.mxu1 %v928_v33  ;;  %v3517_v33 = vld [vmem:[%s5572_s26 + $0x90] sm:$0xff] }
 0x841   :  { %v817_v37 = vmul.f32 %v815_v43, %v4245_v49 }
 0x842   :  { %954 = vmatpush.msrb.mxu1 %v927_v55  ;;  %v3518_v55 = vld [vmem:[%s5572_s26 + $0x98] sm:$0xff] }
 0x843   :  { %v819_v44 = vsub.f32 %v807_v34, %v817_v37  ;;  %v926_v34 = vld [vmem:[%s5534_s14 + $0x18] sm:$0xff] }
 0x844   :  { %955 = vmatpush.msrb.mxu1 %v926_v34  ;;  %v3515_v34 = vld [vmem:[%s5572_s26 + $0x80] sm:$0xff] }
 0x845   :  { %v821_v45 = vmul.f32 %v819_v44, %v819_v44 }
 0x846   :  { %956 = vmatpush.msrb.mxu1 %v925_v35  ;;  %v3516_v35 = vld [vmem:[%s5572_s26 + $0x88] sm:$0xff] }
 0x847   :  { %v825_v46 = vsel %vm184_vm8, %v821_v45, 0.0 }
 0x848   :  { %826 = vadd.xlane.f32.xlu2 %v825_v46  ;;  %957 = vmatpush.msrb.mxu1 %v924_v36 }
 0x84a   :  { %958 = vmatpush.msrb.mxu1 %v923_v38 }
 0x8b3   :  { %v824_v60 = vpop.xlane.xlu1 %823 }
 0x8b4   :  { %v828_v61 = vmul.f32 %v824_v60, %v4245_v49 }
 0x8b6   :  { %v830_v62 = vadd.f32 1e-12, %v828_v61 }
 0x8b8   :  { %3757 = vrsqrt.f32 %v830_v62  ;;  %vm838_vm4 = vweird.f32 %v830_v62 }
 0x8bb   :  { %v827_v4 = vpop.xlane.xlu2 %826 }
 0x8bc   :  { %v829_v54 = vmul.f32 %v827_v4, %v4245_v49 }
 0x8be   :  { %v3758_v56 = vpop.eup %3757  ;;  %v831_v19 = vadd.f32 1e-12, %v829_v54  ;;  %v3708_v54 = vld [vmem:[%s5535_s15] ss:$0 sm:$0xff] }
 0x8bf   :  { %v833_v20 = vmul.f32 %v3758_v56, %v830_v62  ;;  %vm839_vm3 = vweird.f32 %v3758_v56 }
 0x8c0   :  { %3759 = vrsqrt.f32 %v831_v19  ;;  %vm840_vm5 = vmor %vm838_vm4, %vm839_vm3  ;;  %vm848_vm7 = vweird.f32 %v831_v19 }
 0x8c1   :  { %v834_v5 = vmul.f32 %v3758_v56, %v833_v20 }
 0x8c3   :  { %v835_v6 = vmul.f32 0.5, %v834_v5 }
 0x8c5   :  { %v836_v7 = vsub.f32 1.5, %v835_v6 }
 0x8c6   :  { %v3760_v8 = vpop.eup %3759 }
 0x8c7   :  { %v837_v9 = vmul.f32 %v3758_v56, %v836_v7  ;;  %v843_v10 = vmul.f32 %v3760_v8, %v831_v19  ;;  %vm849_vm6 = vweird.f32 %v3760_v8 }
 0x8c8   :  { %vm850_vm9 = vmor %vm848_vm7, %vm849_vm6 }
 0x8c9   :  { %v841_v12 = vsel %vm840_vm5, %v3758_v56, %v837_v9  ;;  %v844_v13 = vmul.f32 %v3760_v8, %v843_v10 }
 0x8ca   :  { %v852_v14 = vmul.f32 %v841_v12, %v818_v39  ;;  %v3707_v39 = vld [vmem:[%s5533_s13] ss:$0 sm:$0xff] }
 0x8cb   :  { %v845_v16 = vmul.f32 0.5, %v844_v13 }
 0x8cc   :  { %v857_v17 = vmul.f32 %v3705_v11, %v852_v14 }
 0x8cd   :  { %v846_v18 = vsub.f32 1.5, %v845_v16 }
 0x8ce   :  { %v4505_v21 = vadd.f32 %v3706_v15, %v857_v17 }
 0x8cf   :  { %v847_v22 = vmul.f32 %v3760_v8, %v846_v18 }
 0x8d0   :  { %3513 = vmatmul.msk.f32.vlgmr.msra.gmra.mxu0 %vm184_vm8, %v4505_v21 }
 0x8d1   :  { %v851_v23 = vsel %vm850_vm9, %v3760_v8, %v847_v22  ;;  %v3529_v22 = vld [vmem:[%s5572_s26 + $0xf0] sm:$0xff] }
 0x8d2   :  { %v853_v24 = vmul.f32 %v851_v23, %v819_v44  ;;  %v3530_v23 = vld [vmem:[%s5572_s26 + $0xf8] sm:$0xff]  ;;  %1062 = vmatpush.msrb.mxu2 %v3529_v22 }
 0x8d3   :  { %1085 = vmatpush.msra.mxu3 %v3530_v23 }
 0x8d4   :  { %v858_v25 = vmul.f32 %v3705_v11, %v853_v24  ;;  %v3527_v24 = vld [vmem:[%s5572_s26 + $0xe0] sm:$0xff] }
 0x8d5   :  { %1063 = vmatpush.msrb.mxu2 %v3527_v24 }
 0x8d6   :  { %v4509_v26 = vadd.f32 %v3706_v15, %v858_v25  ;;  %v3528_v25 = vld [vmem:[%s5572_s26 + $0xe8] sm:$0xff] }
 0x8d7   :  { %1086 = vmatpush.msra.mxu3 %v3528_v25 }
 0x8d8   :  { %3514 = vmatmul.msk.f32.gmra.mxu0 %vm184_vm8, %v4509_v26 }
 0x8d9   :  { %1087 = vmatpush.msra.mxu3 %v3526_v27 }
 0x8db   :  { %1088 = vmatpush.msra.mxu3 %v3524_v53 }
 0x8dd   :  { %1089 = vmatpush.msra.mxu3 %v3522_v30 }
 0x8df   :  { %1090 = vmatpush.msra.mxu3 %v3520_v32 }
 0x8e1   :  { %1091 = vmatpush.msra.mxu3 %v3518_v55 }
 0x8e3   :  { %1092 = vmatpush.msra.mxu3 %v3516_v35 }
 0x94d   :  { %v899_v40 = vpop.f32.mrf.mxu0 }
 0x94e   :  { %v900_v41 = vadd.f32 %v3707_v39, %v899_v40 }
 0x950   :  { %v905_v43 = vmul.f32 %v900_v41, %v900_v41 }
 0x952   :  { %v907_v37 = vmul.f32 %v905_v43, %v900_v41 }
 0x954   :  { %v909_v44 = vmul.f32 0.044715, %v907_v37 }
 0x955   :  { %v902_v45 = vpop.f32.mrf.mxu0 }
 0x956   :  { %v911_v46 = vadd.f32 %v909_v44, %v900_v41  ;;  %v903_v42 = vadd.f32 %v3707_v39, %v902_v45 }
 0x958   :  { %v913_v47 = vmul.f32 0.7978846, %v911_v46  ;;  %v906_v48 = vmul.f32 %v903_v42, %v903_v42 }
 0x95a   :  { %3761 = vtanh.f32 %v913_v47  ;;  %v908_v50 = vmul.f32 %v906_v48, %v903_v42 }
 0x95c   :  { %v910_v51 = vmul.f32 0.044715, %v908_v50 }
 0x95e   :  { %v912_v52 = vadd.f32 %v910_v51, %v903_v42  ;;  %v3709_v51 = vld [vmem:[%s5536_s16] ss:$0 sm:$0xff] }
 0x960   :  { %v3762_v57 = vpop.eup %3761  ;;  %v914_v59 = vmul.f32 0.7978846, %v912_v52 }
 0x961   :  { %v917_v60 = vadd.f32 1.0, %v3762_v57 }
 0x962   :  { %3763 = vtanh.f32 %v914_v59 }
 0x963   :  { %v919_v61 = vmul.f32 0.5, %v917_v60  ;;  %v3710_v60 = vld [vmem:[%s5537_s17] ss:$0 sm:$0xff] }
 0x965   :  { %v921_v62 = vmul.f32 %v919_v61, %v900_v41 }
 0x967   :  { %959 = vmatmul.f32.vlgmr.msrb.gmra.mxu1 %v921_v62 }
 0x968   :  { %v3764_v0 = vpop.eup %3763 }
 0x969   :  { %v918_v1 = vadd.f32 1.0, %v3764_v0 }
 0x96b   :  { %v920_v3 = vmul.f32 0.5, %v918_v1 }
 0x96d   :  { %v922_v4 = vmul.f32 %v920_v3, %v903_v42 }
 0x96f   :  { %962 = vmatmul.f32.gmra.mxu1 %v922_v4 }
 0x9e4   :  { %v960_v56 = vpop.f32.mrf.mxu1 }
 0x9e5   :  { %v961_v19 = vadd.f32 %v3708_v54, %v960_v56 }
 0x9e7   :  { %v966_v20 = vadd.f32 %v961_v19, %v4505_v21 }
 0x9e9   :  { %v970_v5 = vsel %vm184_vm8, %v966_v20, 0.0 }
 0x9ea   :  { %971 = vadd.xlane.f32.xlu0 %v970_v5 }
 0x9ec   :  { %v963_v6 = vpop.f32.mrf.mxu1 }
 0x9ed   :  { %v964_v7 = vadd.f32 %v3708_v54, %v963_v6 }
 0x9ef   :  { %v967_v8 = vadd.f32 %v964_v7, %v4509_v26  ;;  %v3525_v26 = vld [vmem:[%s5572_s26 + $0xd0] sm:$0xff] }
 0x9f0   :  { %1064 = vmatpush.msrb.mxu2 %v3525_v26 }
 0x9f1   :  { %v973_v9 = vsel %vm184_vm8, %v967_v8, 0.0 }
 0x9f2   :  { %974 = vadd.xlane.f32.xlu1 %v973_v9  ;;  %1065 = vmatpush.msrb.mxu2 %v3523_v28 }
 0x9f4   :  { %1066 = vmatpush.msrb.mxu2 %v3521_v29 }
 0x9f6   :  { %1067 = vmatpush.msrb.mxu2 %v3519_v31 }
 0x9f8   :  { %1068 = vmatpush.msrb.mxu2 %v3517_v33 }
 0x9fa   :  { %1069 = vmatpush.msrb.mxu2 %v3515_v34 }
 0xa5d   :  { %v972_v10 = vpop.xlane.xlu0 %971 }
 0xa5e   :  { %v976_v11 = vmul.f32 %v972_v10, %v4245_v49 }
 0xa60   :  { %v4563_v12 = vsub.f32 %v966_v20, %v976_v11  ;;  %v3531_v20 = vld [vmem:[%s5575_s29 + $0x2] sm:$0x3]  ;;  %s5577_s29 = smov 80  }
 0xa61   :  { %v1044_v5 = vperm.slane %v3531_v20, 0 }
 0xa62   :  { %v980_v13 = vmul.f32 %v4563_v12, %v4563_v12 }
 0xa64   :  { %v982_v14 = vsel %vm184_vm8, %v980_v13, 0.0 }
 0xa65   :  { %983 = vadd.xlane.f32.xlu2 %v982_v14  ;;  %v975_v15 = vpop.xlane.xlu1 %974 }
 0xa66   :  { %v977_v16 = vmul.f32 %v975_v15, %v4245_v49 }
 0xa68   :  { %v4569_v17 = vsub.f32 %v967_v8, %v977_v16  ;;  %v1045_v16 = vperm.slane %v3531_v20, 1 }
 0xa6a   :  { %v981_v18 = vmul.f32 %v4569_v17, %v4569_v17 }
 0xa6c   :  { %v985_v21 = vsel %vm184_vm8, %v981_v18, 0.0 }
 0xa6d   :  { %986 = vadd.xlane.f32.xlu0 %v985_v21 }
 0xad8   :  { %v984_v36 = vpop.xlane.xlu2 %983 }
 0xad9   :  { %v988_v38 = vmul.f32 %v984_v36, %v4245_v49 }
 0xadb   :  { %v990_v39 = vadd.f32 1e-12, %v988_v38 }
 0xadd   :  { %3765 = vrsqrt.f32 %v990_v39  ;;  %vm998_vm11 = vweird.f32 %v990_v39 }
 0xae0   :  { %v987_v40 = vpop.xlane.xlu0 %986 }
 0xae1   :  { %v989_v41 = vmul.f32 %v987_v40, %v4245_v49 }
 0xae3   :  { %v3766_v43 = vpop.eup %3765  ;;  %v991_v37 = vadd.f32 1e-12, %v989_v41 }
 0xae4   :  { %v993_v44 = vmul.f32 %v3766_v43, %v990_v39  ;;  %vm999_vm10 = vweird.f32 %v3766_v43 }
 0xae5   :  { %3767 = vrsqrt.f32 %v991_v37  ;;  %vm1000_vm12 = vmor %vm998_vm11, %vm999_vm10  ;;  %vm1008_vm14 = vweird.f32 %v991_v37 }
 0xae6   :  { %v994_v45 = vmul.f32 %v3766_v43, %v993_v44 }
 0xae8   :  { %v995_v46 = vmul.f32 0.5, %v994_v45 }
 0xaea   :  { %v996_v42 = vsub.f32 1.5, %v995_v46 }
 0xaeb   :  { %v3768_v47 = vpop.eup %3767 }
 0xaec   :  { %v997_v48 = vmul.f32 %v3766_v43, %v996_v42  ;;  %v1003_v50 = vmul.f32 %v3768_v47, %v991_v37  ;;  %vm1009_vm13 = vweird.f32 %v3768_v47 }
 0xaed   :  { %vm1010_vm15 = vmor %vm1008_vm14, %vm1009_vm13 }
 0xaee   :  { %v1001_v52 = vsel %vm1000_vm12, %v3766_v43, %v997_v48  ;;  %v1004_v57 = vmul.f32 %v3768_v47, %v1003_v50 }
 0xaef   :  { %v1012_v59 = vmul.f32 %v1001_v52, %v4563_v12 }
 0xaf0   :  { %v1005_v61 = vmul.f32 0.5, %v1004_v57 }
 0xaf1   :  { %v1017_v62 = vmul.f32 %v3709_v51, %v1012_v59 }
 0xaf2   :  { %v1006_v0 = vsub.f32 1.5, %v1005_v61 }
 0xaf3   :  { %v4631_v1 = vadd.f32 %v3710_v60, %v1017_v62 }
 0xaf4   :  { %v1007_v3 = vmul.f32 %v3768_v47, %v1006_v0 }
 0xaf5   :  { %3532 = vmatmul.msk.f32.vlgmr.msrb.gmra.mxu2 %vm184_vm8, %v4631_v1  ;;  %3534 = vmatmul.msk.f32.vlgmr.msra.gmra.mxu3 %vm184_vm8, %v4631_v1 }
 0xaf6   :  { %v1011_v4 = vsel %vm1010_vm15, %v3768_v47, %v1007_v3 }
 0xaf7   :  { %v1013_v54 = vmul.f32 %v1011_v4, %v4569_v17 }
 0xaf9   :  { %v1018_v56 = vmul.f32 %v3709_v51, %v1013_v54 }
 0xafb   :  { %v4638_v19 = vadd.f32 %v3710_v60, %v1018_v56 }
 0xafd   :  { %3533 = vmatmul.msk.f32.gmra.mxu2 %vm184_vm8, %v4638_v19  ;;  %3535 = vmatmul.msk.f32.gmra.mxu3 %vm184_vm8, %v4638_v19 }
 0xb78   :  { %v1071_v6 = vpop.f32.mrf.mxu2  ;;  %v1094_v11 = vpop.f32.mrf.mxu3 }
 0xb79   :  { %v1072_v7 = vadd.f32 %v1071_v6, %v1044_v5  ;;  %v4670_v21 = vadd.f32 %v1094_v11, %v1045_v16 }
 0xb7b   :  { %1102 = vrot.lane.b32.xlu0 %v1072_v7, %s4021_s0 }
 0xb80   :  { %v1074_v8 = vpop.f32.mrf.mxu2  ;;  %v1097_v14 = vpop.f32.mrf.mxu3 }
 0xb81   :  { %v1075_v9 = vadd.f32 %v1074_v8, %v1044_v5  ;;  %v4665_v17 = vadd.f32 %v1097_v14, %v1045_v16 }
 0xb83   :  { %1198 = vrot.lane.b32.xlu2 %v1075_v9, %s4023_s7  ;;  %1104 = vrot.lane.b32.xlu1 %v1075_v9, %s4021_s0 }
 0xb84   :  { %1196 = vrot.lane.b32.xlu0 %v1072_v7, %s4023_s7 }
 0xb8b   :  { %1298 = vrot.lane.b32.xlu2 %v1072_v7, %s4026_s4  ;;  %1192 = vrot.lane.b32.xlu1 %v1072_v7, %s4024_s25 }
 0xb8c   :  { %1300 = vrot.lane.b32.xlu0 %v1075_v9, %s4026_s4 }
 0xb93   :  { %1194 = vrot.lane.b32.xlu2 %v1075_v9, %s4024_s25  ;;  %1400 = vrot.lane.b32.xlu1 %v1075_v9, %s4013_s30 }
 0xb94   :  { %1398 = vrot.lane.b32.xlu0 %v1072_v7, %s4013_s30 }
 0xb9b   :  { %1394 = vrot.lane.b32.xlu2 %v1072_v7, %s5577_s29  ;;  %1294 = vrot.lane.b32.xlu1 %v1072_v7, %s5578_s27 }
 0xb9c   :  { %1296 = vrot.lane.b32.xlu0 %v1075_v9, %s5578_s27 }
 0xba3   :  { %1396 = vrot.lane.b32.xlu1 %v1075_v9, %s5577_s29 }
 0xbdd   :  { %v1199_v10 = vpop.permute.xlu2 %1198 }
 0xbde   :  { %3542 = vmatpush.xpose.msk.msrb.mxu3 %vm344_vm0, %v1199_v10 }
 0xbe5   :  { %v1299_v18 = vpop.permute.xlu2 %1298 }
 0xbed   :  { %v1103_v12 = vpop.permute.xlu0 %1102  ;;  %v1195_v24 = vpop.permute.xlu2 %1194 }
 0xbf5   :  { %v1105_v13 = vpop.permute.xlu1 %1104  ;;  %v1395_v27 = vpop.permute.xlu2 %1394 }
 0xbf6   :  { %v1197_v15 = vpop.permute.xlu0 %1196  ;;  %3536 = vmatpush.xpose.msk.msrb.mxu0 %vm344_vm0, %v1105_v13  ;;  %3650 = vmatpush.xpose.msk.msra.mxu2 %vm344_vm0, %v1105_v13 }
 0xbf7   :  { %3543 = vmatpush.xpose.msk.msrb.mxu3 %vm344_vm0, %v1197_v15 }
 0xbfa   :  { %3537 = vmatpush.xpose.msk.msrb.mxu0 %vm344_vm0, %v1103_v12  ;;  %3651 = vmatpush.xpose.msk.msra.mxu2 %vm344_vm0, %v1103_v12 }
 0xbfd   :  { %v1193_v22 = vpop.permute.xlu1 %1192  ;;  %3538 = vmatmul.msk.f32.vlgmr.msrb.gmra.mxu0 %vm344_vm0, %v1072_v7  ;;  %3539 = vmatmul.msk.f32.vlgmr.msra.gmra.mxu2 %vm344_vm0, %v1075_v9 }
 0xbfe   :  { %1183 = vmatpush.msrb.mxu2 %v4665_v17  ;;  %v1301_v23 = vpop.permute.xlu0 %1300  ;;  %3544 = vmatmul.msk.f32.vlgmr.msrb.gmra.mxu3 %vm344_vm0, %v1193_v22 }
 0xbff   :  { %3548 = vmatpush.xpose.msk.msra.mxu1 %vm344_vm0, %v1301_v23 }
 0xc00   :  { %1184 = vmatpush.msrb.mxu2 %v4670_v21 }
 0xc03   :  { %3549 = vmatpush.xpose.msk.msra.mxu1 %vm344_vm0, %v1299_v18 }
 0xc05   :  { %v1401_v25 = vpop.permute.xlu1 %1400 }
 0xc06   :  { %3545 = vmatmul.msk.f32.gmra.mxu3 %vm344_vm0, %v1195_v24  ;;  %v1399_v26 = vpop.permute.xlu0 %1398 }
 0xc07   :  { %3554 = vmatpush.xpose.msk.msra.mxu3 %vm344_vm0, %v1401_v25 }
 0xc0b   :  { %3555 = vmatpush.xpose.msk.msra.mxu3 %vm344_vm0, %v1399_v26 }
 0xc0d   :  { %v1295_v28 = vpop.permute.xlu1 %1294 }
 0xc0e   :  { %3550 = vmatmul.msk.f32.vlgmr.msra.gmra.mxu1 %vm344_vm0, %v1295_v28  ;;  %3556 = vmatmul.msk.f32.vlgmr.msra.gmra.mxu3 %vm344_vm0, %v1395_v27  ;;  %v1297_v53 = vpop.permute.xlu0 %1296  ;;  %v3687_v28 = vpack.i.bf16 %v4670_v21, %v4665_v17 }
 0xc15   :  { %v1397_v29 = vpop.permute.xlu1 %1396 }
 0xc16   :  { %3551 = vmatmul.msk.f32.gmra.mxu1 %vm344_vm0, %v1297_v53  ;;  %3557 = vmatmul.msk.f32.gmra.mxu3 %vm344_vm0, %v1397_v29 }
 0xc7a   :  { %v1131_v30 = vpop.f32.mrf.mxu0 }
 0xc7b   :  { %v1137_v31 = vmul.f32 0.25, %v1131_v30 }
 0xc7d   :  { %v1139_v32 = vadd.f32 %v1137_v31, %v4354_v58 }
 0xc7f   :  { %v1141_v33 = vsel %vm344_vm0, %v1139_v32, -inf }
 0xc80   :  { %v1134_v55 = vpop.f32.mrf.mxu2  ;;  %1142 = vmax.xlane.f32.xlu2 %v1141_v33 }
 0xc81   :  { %v1138_v34 = vmul.f32 0.25, %v1134_v55  ;;  %v1225_v35 = vpop.f32.mrf.mxu3 }
 0xc82   :  { %v1231_v36 = vmul.f32 0.25, %v1225_v35 }
 0xc83   :  { %v1140_v38 = vadd.f32 %v1138_v34, %v4360_v63 }
 0xc84   :  { %v1233_v39 = vadd.f32 %v1231_v36, %v4354_v58 }
 0xc85   :  { %v1144_v40 = vsel %vm344_vm0, %v1140_v38, -inf }
 0xc86   :  { %1145 = vmax.xlane.f32.xlu1 %v1144_v40  ;;  %v1235_v41 = vsel %vm344_vm0, %v1233_v39, -inf }
 0xc87   :  { %1236 = vmax.xlane.f32.xlu0 %v1235_v41 }
 0xc89   :  { %v1228_v43 = vpop.f32.mrf.mxu3 }
 0xc8a   :  { %v1232_v46 = vmul.f32 0.25, %v1228_v43 }
 0xc8b   :  { %v1327_v37 = vpop.f32.mrf.mxu1 }
 0xc8c   :  { %v1333_v44 = vmul.f32 0.25, %v1327_v37  ;;  %v1234_v57 = vadd.f32 %v1232_v46, %v4360_v63 }
 0xc8e   :  { %v1335_v45 = vadd.f32 %v1333_v44, %v4354_v58  ;;  %v1238_v61 = vsel %vm344_vm0, %v1234_v57, -inf }
 0xc90   :  { %v1337_v42 = vsel %vm344_vm0, %v1335_v45, -inf }
 0xc91   :  { %1338 = vmax.xlane.f32.xlu2 %v1337_v42  ;;  %v1427_v47 = vpop.f32.mrf.mxu3 }
 0xc92   :  { %v1433_v48 = vmul.f32 0.25, %v1427_v47 }
 0xc93   :  { %v1330_v50 = vpop.f32.mrf.mxu1 }
 0xc94   :  { %v1334_v51 = vmul.f32 0.25, %v1330_v50  ;;  %v1435_v52 = vadd.f32 %v1433_v48, %v4354_v58 }
 0xc96   :  { %v1437_v59 = vsel %vm344_vm0, %v1435_v52, -inf  ;;  %v1336_v60 = vadd.f32 %v1334_v51, %v4360_v63 }
 0xc97   :  { %1438 = vmax.xlane.f32.xlu0 %v1437_v59 }
 0xc98   :  { %v1340_v62 = vsel %vm344_vm0, %v1336_v60, -inf }
 0xc99   :  { %1239 = vmax.xlane.f32.xlu2 %v1238_v61  ;;  %v1430_v0 = vpop.f32.mrf.mxu3  ;;  %1341 = vmax.xlane.f32.xlu1 %v1340_v62 }
 0xc9a   :  { %v1434_v3 = vmul.f32 0.25, %v1430_v0 }
 0xc9c   :  { %v1436_v4 = vadd.f32 %v1434_v3, %v4360_v63 }
 0xc9e   :  { %v1440_v54 = vsel %vm344_vm0, %v1436_v4, -inf }
 0xca1   :  { %1441 = vmax.xlane.f32.xlu2 %v1440_v54 }
 0xcf3   :  { %v1143_v58 = vpop.xlane.xlu2 %1142 }
 0xcf4   :  { %v1147_v56 = vsub.f32 %v1139_v32, %v1143_v58 }
 0xcf6   :  { %v1149_v20 = vmul.f32 1.442695, %v1147_v56 }
 0xcf8   :  { %3769 = vpow2.f32 %v1149_v20 }
 0xcf9   :  { %v1146_v10 = vpop.xlane.xlu1 %1145 }
 0xcfa   :  { %v1237_v5 = vpop.xlane.xlu0 %1236  ;;  %v1148_v14 = vsub.f32 %v1140_v38, %v1146_v10 }
 0xcfb   :  { %v1241_v6 = vsub.f32 %v1233_v39, %v1237_v5 }
 0xcfc   :  { %v1151_v16 = vmul.f32 1.442695, %v1148_v14 }
 0xcfd   :  { %v1243_v7 = vmul.f32 1.442695, %v1241_v6 }
 0xcfe   :  { %v3770_v8 = vpop.eup %3769 }
 0xcff   :  { %3771 = vpow2.f32 %v1243_v7  ;;  %v1153_v9 = vsel %vm344_vm0, %v3770_v8, 0.0 }
 0xd00   :  { %1154 = vadd.xlane.f32.xlu0 %v1153_v9 }
 0xd04   :  { %v1339_v11 = vpop.xlane.xlu2 %1338 }
 0xd05   :  { %v3772_v12 = vpop.eup %3771  ;;  %v1343_v13 = vsub.f32 %v1335_v45, %v1339_v11 }
 0xd06   :  { %v1247_v63 = vsel %vm344_vm0, %v3772_v12, 0.0 }
 0xd07   :  { %v1345_v15 = vmul.f32 1.442695, %v1343_v13  ;;  %1248 = vadd.xlane.f32.xlu1 %v1247_v63 }
 0xd09   :  { %3773 = vpow2.f32 %v1345_v15 }
 0xd0a   :  { %v1439_v18 = vpop.xlane.xlu0 %1438  ;;  %3775 = vpow2.f32 %v1151_v16 }
 0xd0b   :  { %v1443_v25 = vsub.f32 %v1435_v52, %v1439_v18 }
 0xd0c   :  { %v1240_v22 = vpop.xlane.xlu2 %1239  ;;  %v1342_v34 = vpop.xlane.xlu1 %1341 }
 0xd0d   :  { %v1242_v23 = vsub.f32 %v1234_v57, %v1240_v22  ;;  %v1445_v53 = vmul.f32 1.442695, %v1443_v25  ;;  %v1344_v35 = vsub.f32 %v1336_v60, %v1342_v34 }
 0xd0f   :  { %v4703_v24 = vpop.eup %3773  ;;  %v1245_v26 = vmul.f32 1.442695, %v1242_v23  ;;  %v1347_v36 = vmul.f32 1.442695, %v1344_v35 }
 0xd10   :  { %v1349_v27 = vsel %vm344_vm0, %v4703_v24, 0.0  ;;  %v3776_v29 = vpop.eup %3775 }
 0xd11   :  { %3777 = vpow2.f32 %v1245_v26  ;;  %1350 = vadd.xlane.f32.xlu2 %v1349_v27  ;;  %v1156_v31 = vsel %vm344_vm0, %v3776_v29, 0.0  ;;  %v3567_v26 = vld [vmem:[%s5576_s5 + $0x78] sm:$0xff]  ;;  %v3566_v27 = vld [vmem:[%s5576_s5 + $0x70] sm:$0xff] }
 0xd12   :  { %3779 = vpow2.f32 %v1445_v53  ;;  %1552 = vmatpush.msrb.mxu1 %v3567_v26  ;;  %v3565_v53 = vld [vmem:[%s5576_s5 + $0x68] sm:$0xff] }
 0xd13   :  { %3781 = vpow2.f32 %v1347_v36 }
 0xd14   :  { %3688 = vrot.lane.b32.xlu0 %v3687_v28, %s4024_s25  ;;  %v1442_v38 = vpop.xlane.xlu2 %1441  ;;  %1553 = vmatpush.msrb.mxu1 %v3566_v27  ;;  %v3591_v27 = vld [vmem:[%s5534_s14 + $0xf8] sm:$0xff] }
 0xd15   :  { %v1444_v39 = vsub.f32 %v1436_v4, %v1442_v38  ;;  %1710 = vmatpush.msrb.mxu3 %v3591_v27 }
 0xd16   :  { %1554 = vmatpush.msrb.mxu1 %v3565_v53  ;;  %v3589_v53 = vld [vmem:[%s5534_s14 + $0xe8] sm:$0xff] }
 0xd17   :  { %v3778_v30 = vpop.eup %3777  ;;  %v1447_v40 = vmul.f32 1.442695, %v1444_v39 }
 0xd18   :  { %v1250_v32 = vsel %vm344_vm0, %v3778_v30, 0.0  ;;  %v3780_v33 = vpop.eup %3779 }
 0xd19   :  { %1157 = vadd.xlane.f32.xlu2 %v1156_v31  ;;  %1251 = vadd.xlane.f32.xlu1 %v1250_v32  ;;  %v1449_v55 = vsel %vm344_vm0, %v3780_v33, 0.0  ;;  %v3782_v17 = vpop.eup %3781  ;;  %3783 = vpow2.f32 %v1447_v40  ;;  %v3562_v31 = vld [vmem:[%s5576_s5 + $0x50] sm:$0xff]  ;;  %v3561_v32 = vld [vmem:[%s5576_s5 + $0x48] sm:$0xff] }
 0xd1a   :  { %v1352_v21 = vsel %vm344_vm0, %v3782_v17, 0.0 }
 0xd1f   :  { %v3784_v41 = vpop.eup %3783 }
 0xd20   :  { %v1452_v43 = vsel %vm344_vm0, %v3784_v41, 0.0 }
 0xd21   :  { %1450 = vadd.xlane.f32.xlu2 %v1449_v55 }
 0xd32   :  { %3693 = vrot.lane.b32.xlu1 %v3687_v28, %s5578_s27 }
 0xd39   :  { %3698 = vrot.lane.b32.xlu2 %v3687_v28, %s5577_s29 }
 0xd3e   :  { %1353 = vadd.xlane.f32.xlu0 %v1352_v21 }
 0xd5c   :  { %1453 = vadd.xlane.f32.xlu1 %v1452_v43 }
 0xd73   :  { %v1155_v37 = vpop.xlane.xlu0 %1154 }
 0xd74   :  { %3785 = vrcp.f32 %v1155_v37 }
 0xd7a   :  { %v3786_v44 = vpop.eup %3785  ;;  %v1249_v46 = vpop.xlane.xlu1 %1248 }
 0xd7b   :  { %v1161_v45 = vmul.f32 %v3786_v44, %v3770_v8  ;;  %3787 = vrcp.f32 %v1249_v46  ;;  %v3711_v44 = vld [vmem:[%s5529_s9 + $0x1] ss:$0 sm:$0xff]  ;;  %s4029_s9 = smov [#allocation8]  }
 0xd7d   :  { %3540 = vmatmul.msk.f32.vlgmr.msrb.gmra.mxu2 %vm344_vm0, %v1161_v45 }
 0xd81   :  { %v3788_v48 = vpop.eup %3787 }
 0xd82   :  { %v1255_v52 = vmul.f32 %v3788_v48, %v3772_v12 }
 0xd84   :  { %v1351_v42 = vpop.xlane.xlu2 %1350 }
 0xd86   :  { %v3689_v47 = vpop.permute.xlu0 %3688 }
 0xd87   :  { %v3690_v50 = vunpack.i.l.bf16 %v3689_v47  ;;  %v3691_v51 = vunpack.i.h.bf16 %v3689_v47 }
 0xd89   :  { %1285 = vmatpush.msra.mxu0 %v3690_v50 }
 0xd8b   :  { %1286 = vmatpush.msra.mxu0 %v3691_v51 }
 0xd8c   :  { %v1158_v57 = vpop.xlane.xlu2 %1157  ;;  %v1252_v59 = vpop.xlane.xlu1 %1251  ;;  %3546 = vmatmul.msk.f32.vlgmr.msra.gmra.mxu0 %vm344_vm0, %v1255_v52 }
 0xd8d   :  { %3789 = vrcp.f32 %v1158_v57 }
 0xd8e   :  { %3791 = vrcp.f32 %v1252_v59 }
 0xd93   :  { %v3790_v60 = vpop.eup %3789 }
 0xd94   :  { %v3792_v61 = vpop.eup %3791  ;;  %v1451_v62 = vpop.xlane.xlu2 %1450  ;;  %v1162_v0 = vmul.f32 %v3790_v60, %v3776_v29  ;;  %v3564_v29 = vld [vmem:[%s5576_s5 + $0x60] sm:$0xff] }
 0xd95   :  { %v1256_v3 = vmul.f32 %v3792_v61, %v3778_v30  ;;  %3793 = vrcp.f32 %v1451_v62  ;;  %v3563_v30 = vld [vmem:[%s5576_s5 + $0x58] sm:$0xff]  ;;  %1555 = vmatpush.msrb.mxu1 %v3564_v29 }
 0xd96   :  { %3541 = vmatmul.msk.f32.gmra.mxu2 %vm344_vm0, %v1162_v0  ;;  %3795 = vrcp.f32 %v1351_v42 }
 0xd97   :  { %3547 = vmatmul.msk.f32.gmra.mxu0 %vm344_vm0, %v1256_v3  ;;  %1556 = vmatpush.msrb.mxu1 %v3563_v30 }
 0xd99   :  { %1557 = vmatpush.msrb.mxu1 %v3562_v31 }
 0xd9b   :  { %v3794_v54 = vpop.eup %3793  ;;  %1558 = vmatpush.msrb.mxu1 %v3561_v32 }
 0xd9c   :  { %v3699_v4 = vpop.permute.xlu2 %3698  ;;  %v1457_v20 = vmul.f32 %v3794_v54, %v3780_v33  ;;  %v3796_v6 = vpop.eup %3795  ;;  %v3560_v33 = vld [vmem:[%s5576_s5 + $0x40] sm:$0xff] }
 0xd9d   :  { %v3700_v58 = vunpack.i.l.bf16 %v3699_v4  ;;  %v3701_v56 = vunpack.i.h.bf16 %v3699_v4  ;;  %v1357_v9 = vmul.f32 %v3796_v6, %v4703_v24  ;;  %1559 = vmatpush.msrb.mxu1 %v3560_v33  ;;  %v1630_v6 = vld [vmem:[#allocation2 + $0x50] sm:$0xff] }
 0xd9f   :  { %1485 = vmatpush.msrb.mxu0 %v3700_v58  ;;  %v1634_v58 = vld [vmem:[#allocation2 + $0x70] sm:$0xff] }
 0xda1   :  { %1486 = vmatpush.msrb.mxu0 %v3701_v56  ;;  %v1633_v56 = vld [vmem:[#allocation2 + $0x68] sm:$0xff] }
 0xda2   :  { %3558 = vmatmul.msk.f32.vlgmr.msrb.gmra.mxu0 %vm344_vm0, %v1457_v20  ;;  %v1632_v20 = vld [vmem:[#allocation2 + $0x60] sm:$0xff] }
 0xda4   :  { %v3694_v5 = vpop.permute.xlu1 %3693 }
 0xda5   :  { %v3695_v7 = vunpack.i.l.bf16 %v3694_v5  ;;  %v3696_v8 = vunpack.i.h.bf16 %v3694_v5  ;;  %v1631_v5 = vld [vmem:[#allocation2 + $0x58] sm:$0xff] }
 0xda7   :  { %1385 = vmatpush.msra.mxu2 %v3695_v7  ;;  %v1629_v7 = vld [vmem:[#allocation2 + $0x48] sm:$0xff] }
 0xda9   :  { %1386 = vmatpush.msra.mxu2 %v3696_v8  ;;  %v1628_v8 = vld [vmem:[#allocation2 + $0x40] sm:$0xff] }
 0xdaa   :  { %3552 = vmatmul.msk.f32.vlgmr.msra.gmra.mxu2 %vm344_vm0, %v1357_v9 }
 0xdb1   :  { %v1354_v10 = vpop.xlane.xlu0 %1353 }
 0xdb2   :  { %3797 = vrcp.f32 %v1354_v10 }
 0xdb8   :  { %v3798_v11 = vpop.eup %3797 }
 0xdb9   :  { %v1358_v12 = vmul.f32 %v3798_v11, %v3782_v17 }
 0xdbb   :  { %3553 = vmatmul.msk.f32.gmra.mxu2 %vm344_vm0, %v1358_v12 }
 0xdcf   :  { %v1454_v13 = vpop.xlane.xlu1 %1453 }
 0xdd0   :  { %3799 = vrcp.f32 %v1454_v13 }
 0xdd6   :  { %v3800_v63 = vpop.eup %3799 }
 0xdd7   :  { %v1458_v14 = vmul.f32 %v3800_v63, %v3784_v41 }
 0xdd9   :  { %3559 = vmatmul.msk.f32.gmra.mxu0 %vm344_vm0, %v1458_v14 }
 0xe00   :  { %v1186_v18 = vpop.f32.mrf.mxu2 }
 0xe09   :  { %v1288_v15 = vpop.f32.mrf.mxu0 }
 0xe0a   :  { %1496 = vrot.lane.b32.xlu2 %v1288_v15, %s4013_s30 }
 0xe14   :  { %v1291_v16 = vpop.f32.mrf.mxu0 }
 0xe19   :  { %v1189_v23 = vpop.f32.mrf.mxu2 }
 0xe1f   :  { %v1488_v22 = vpop.f32.mrf.mxu0 }
 0xe20   :  { %1512 = vrot.lane.b32.xlu0 %v1488_v22, %s4023_s7 }
 0xe2d   :  { %v1388_v24 = vpop.f32.mrf.mxu2 }
 0xe2e   :  { %1504 = vrot.lane.b32.xlu2 %v1388_v24, %s4026_s4  ;;  %v3713_v24 = vld [vmem:[%s5531_s11 + $0x1] ss:$0 sm:$0xff] }
 0xe36   :  { %1498 = vrot.lane.b32.xlu2 %v1291_v16, %s4013_s30 }
 0xe3e   :  { %v1391_v25 = vpop.f32.mrf.mxu2 }
 0xe3f   :  { %1506 = vrot.lane.b32.xlu2 %v1391_v25, %s4026_s4 }
 0xe56   :  { %v1491_v28 = vpop.f32.mrf.mxu0 }
 0xe57   :  { %1514 = vrot.lane.b32.xlu1 %v1491_v28, %s4023_s7  ;;  %v3590_v28 = vld [vmem:[%s5534_s14 + $0xf0] sm:$0xff] }
 0xe58   :  { %1711 = vmatpush.msrb.mxu3 %v3590_v28 }
 0xe5a   :  { %1712 = vmatpush.msrb.mxu3 %v3589_v53 }
 0xe64   :  { %v1497_v55 = vpop.permute.xlu2 %1496 }
 0xe65   :  { %v1518_v35 = vsel %vm344_vm0, %v1186_v18, %v1497_v55  ;;  %v3712_v18 = vld [vmem:[%s5530_s10 + $0x1] ss:$0 sm:$0xff] }
 0xe88   :  { %v1505_v34 = vpop.permute.xlu2 %1504 }
 0xe89   :  { %v1520_v36 = vsel %vm759_vm1, %v1518_v35, %v1505_v34 }
 0xe90   :  { %v1499_v38 = vpop.permute.xlu2 %1498 }
 0xe91   :  { %v1519_v40 = vsel %vm344_vm0, %v1189_v23, %v1499_v38 }
 0xe92   :  { %v1513_v17 = vpop.permute.xlu0 %1512 }
 0xe93   :  { %v1522_v21 = vsel %vm762_vm2, %v1520_v36, %v1513_v17 }
 0xe94   :  { %3569 = vmatmul.msk.f32.vlgmr.msrb.gmra.mxu1 %vm184_vm8, %v1522_v21 }
 0xe99   :  { %v1507_v39 = vpop.permute.xlu2 %1506 }
 0xe9a   :  { %v1521_v41 = vsel %vm759_vm1, %v1519_v40, %v1507_v39  ;;  %v3588_v40 = vld [vmem:[%s5534_s14 + $0xe0] sm:$0xff] }
 0xe9b   :  { %1713 = vmatpush.msrb.mxu3 %v3588_v40  ;;  %v1808_v40 = vld [vmem:[#allocation5 + $0x48] sm:$0xff] }
 0xec9   :  { %v1515_v43 = vpop.permute.xlu1 %1514 }
 0xeca   :  { %v1523_v37 = vsel %vm762_vm2, %v1521_v41, %v1515_v43  ;;  %v3587_v41 = vld [vmem:[%s5534_s14 + $0xd8] sm:$0xff]  ;;  %v3586_v43 = vld [vmem:[%s5534_s14 + $0xd0] sm:$0xff] }
 0xecb   :  { %3570 = vmatmul.msk.f32.gmra.mxu1 %vm184_vm8, %v1523_v37  ;;  %1714 = vmatpush.msrb.mxu3 %v3587_v41  ;;  %v3585_v37 = vld [vmem:[%s5534_s14 + $0xc8] sm:$0xff]  ;;  %v1805_v41 = vld [vmem:[#allocation5 + $0x30] sm:$0xff] }
 0xecd   :  { %1715 = vmatpush.msrb.mxu3 %v3586_v43  ;;  %v1806_v43 = vld [vmem:[#allocation5 + $0x38] sm:$0xff] }
 0xecf   :  { %1716 = vmatpush.msrb.mxu3 %v3585_v37  ;;  %v1803_v37 = vld [vmem:[#allocation5 + $0x20] sm:$0xff] }
 0xf11   :  { %v1561_v45 = vpop.f32.mrf.mxu1 }
 0xf12   :  { %v1562_v46 = vadd.f32 %v3711_v44, %v1561_v45  ;;  %v3583_v45 = vld [vmem:[%s5534_s14 + $0xb8] sm:$0xff] }
 0xf14   :  { %v1567_v42 = vadd.f32 %v1562_v46, %v4631_v1  ;;  %v3582_v46 = vld [vmem:[%s5534_s14 + $0xb0] sm:$0xff] }
 0xf16   :  { %v1573_v47 = vsel %vm184_vm8, %v1567_v42, 0.0 }
 0xf17   :  { %1574 = vadd.xlane.f32.xlu2 %v1573_v47  ;;  %v3580_v47 = vld [vmem:[%s5534_s14 + $0xa0] sm:$0xff] }
 0xf48   :  { %v1564_v48 = vpop.f32.mrf.mxu1 }
 0xf49   :  { %v1565_v50 = vadd.f32 %v3711_v44, %v1564_v48  ;;  %v3584_v44 = vld [vmem:[%s5534_s14 + $0xc0] sm:$0xff]  ;;  %v3579_v48 = vld [vmem:[%s5534_s14 + $0x98] sm:$0xff] }
 0xf4a   :  { %1717 = vmatpush.msrb.mxu3 %v3584_v44  ;;  %v1804_v44 = vld [vmem:[#allocation5 + $0x28] sm:$0xff] }
 0xf4b   :  { %v1568_v51 = vadd.f32 %v1565_v50, %v4638_v19  ;;  %v1635_v19 = vld [vmem:[#allocation2 + $0x78] sm:$0xff]  ;;  %v3578_v50 = vld [vmem:[%s5534_s14 + $0x90] sm:$0xff] }
 0xf4c   :  { %1655 = vmatpush.msrb.mxu2 %v1635_v19  ;;  %1718 = vmatpush.msrb.mxu3 %v3583_v45  ;;  %v1801_v45 = vld [vmem:[#allocation5 + $0x10] sm:$0xff] }
 0xf4d   :  { %v1576_v52 = vsel %vm184_vm8, %v1568_v51, 0.0 }
 0xf4e   :  { %1577 = vadd.xlane.f32.xlu0 %v1576_v52  ;;  %1656 = vmatpush.msrb.mxu2 %v1634_v58  ;;  %v3576_v52 = vld [vmem:[%s5534_s14 + $0x80] sm:$0xff] }
 0xf4f   :  { %1719 = vmatpush.msrb.mxu3 %v3582_v46  ;;  %v1802_v46 = vld [vmem:[#allocation5 + $0x18] sm:$0xff] }
 0xf50   :  { %1657 = vmatpush.msrb.mxu2 %v1633_v56 }
 0xf52   :  { %1658 = vmatpush.msrb.mxu2 %v1632_v20 }
 0xf54   :  { %1659 = vmatpush.msrb.mxu2 %v1631_v5 }
 0xf56   :  { %1660 = vmatpush.msrb.mxu2 %v1630_v6 }
 0xf58   :  { %1661 = vmatpush.msrb.mxu2 %v1629_v7 }
 0xf5a   :  { %1662 = vmatpush.msrb.mxu2 %v1628_v8 }
 0xf8a   :  { %v1575_v57 = vpop.xlane.xlu2 %1574 }
 0xf8b   :  { %v1579_v59 = vmul.f32 %v1575_v57, %v4245_v49  ;;  %v3714_v57 = vld [vmem:[%s5533_s13 + $0x1] ss:$0 sm:$0xff] }
 0xf8d   :  { %v1581_v60 = vsub.f32 %v1567_v42, %v1579_v59  ;;  %v3581_v42 = vld [vmem:[%s5534_s14 + $0xa8] sm:$0xff] }
 0xf8e   :  { %1720 = vmatpush.msrb.mxu3 %v3581_v42  ;;  %v1799_v42 = vld [vmem:[#allocation5] sm:$0xff] }
 0xf8f   :  { %v1583_v61 = vmul.f32 %v1581_v60, %v1581_v60 }
 0xf90   :  { %1721 = vmatpush.msrb.mxu3 %v3580_v47  ;;  %v1800_v47 = vld [vmem:[#allocation5 + $0x8] sm:$0xff] }
 0xf91   :  { %v1585_v62 = vsel %vm184_vm8, %v1583_v61, 0.0 }
 0xf92   :  { %1586 = vadd.xlane.f32.xlu1 %v1585_v62  ;;  %1722 = vmatpush.msrb.mxu3 %v3579_v48 }
 0xf94   :  { %1723 = vmatpush.msrb.mxu3 %v3578_v50 }
 0xfc1   :  { %v1578_v0 = vpop.xlane.xlu0 %1577 }
 0xfc2   :  { %v1580_v1 = vmul.f32 %v1578_v0, %v4245_v49 }
 0xfc4   :  { %v1582_v3 = vsub.f32 %v1568_v51, %v1580_v1  ;;  %v3577_v51 = vld [vmem:[%s5534_s14 + $0x88] sm:$0xff] }
 0xfc5   :  { %1724 = vmatpush.msrb.mxu3 %v3577_v51 }
 0xfc6   :  { %v1584_v4 = vmul.f32 %v1582_v3, %v1582_v3 }
 0xfc7   :  { %1725 = vmatpush.msrb.mxu3 %v3576_v52 }
 0xfc8   :  { %v1588_v54 = vsel %vm184_vm8, %v1584_v4, 0.0 }
 0xfc9   :  { %1589 = vadd.xlane.f32.xlu2 %v1588_v54 }
0x1005   :  { %v1587_v9 = vpop.xlane.xlu1 %1586 }
0x1006   :  { %v1591_v10 = vmul.f32 %v1587_v9, %v4245_v49 }
0x1008   :  { %v1593_v11 = vadd.f32 1e-12, %v1591_v10 }
0x100a   :  { %3801 = vrsqrt.f32 %v1593_v11  ;;  %vm1601_vm1 = vweird.f32 %v1593_v11 }
0x1010   :  { %v3802_v12 = vpop.eup %3801 }
0x1011   :  { %v1596_v13 = vmul.f32 %v3802_v12, %v1593_v11  ;;  %vm1602_vm0 = vweird.f32 %v3802_v12 }
0x1012   :  { %vm1603_vm2 = vmor %vm1601_vm1, %vm1602_vm0 }
0x1013   :  { %v1597_v63 = vmul.f32 %v3802_v12, %v1596_v13 }
0x1015   :  { %v1598_v14 = vmul.f32 0.5, %v1597_v63  ;;  %v3715_v63 = vld [vmem:[%s5535_s15 + $0x1] ss:$0 sm:$0xff] }
0x1017   :  { %v1599_v15 = vsub.f32 1.5, %v1598_v14 }
0x1019   :  { %v1600_v16 = vmul.f32 %v3802_v12, %v1599_v15 }
0x101b   :  { %v1604_v22 = vsel %vm1603_vm2, %v3802_v12, %v1600_v16 }
0x101c   :  { %v1615_v23 = vmul.f32 %v1604_v22, %v1581_v60 }
0x101e   :  { %v1620_v25 = vmul.f32 %v3712_v18, %v1615_v23 }
0x1020   :  { %v4782_v26 = vadd.f32 %v3713_v24, %v1620_v25 }
0x1022   :  { %3574 = vmatmul.msk.f32.vlgmr.msrb.gmra.mxu2 %vm184_vm8, %v4782_v26 }
0x103c   :  { %v1590_v29 = vpop.xlane.xlu2 %1589 }
0x103d   :  { %v1592_v30 = vmul.f32 %v1590_v29, %v4245_v49 }
0x103f   :  { %v1594_v31 = vadd.f32 1e-12, %v1592_v30 }
0x1041   :  { %3803 = vrsqrt.f32 %v1594_v31  ;;  %vm1611_vm4 = vweird.f32 %v1594_v31 }
0x1047   :  { %v3804_v32 = vpop.eup %3803 }
0x1048   :  { %v1606_v33 = vmul.f32 %v3804_v32, %v1594_v31  ;;  %vm1612_vm3 = vweird.f32 %v3804_v32 }
0x1049   :  { %vm1613_vm5 = vmor %vm1611_vm4, %vm1612_vm3 }
0x104a   :  { %v1607_v55 = vmul.f32 %v3804_v32, %v1606_v33 }
0x104c   :  { %v1608_v34 = vmul.f32 0.5, %v1607_v55 }
0x104e   :  { %v1609_v35 = vsub.f32 1.5, %v1608_v34  ;;  %v1813_v34 = vld [vmem:[#allocation5 + $0x70] sm:$0xff] }
0x104f   :  { %1835 = vmatpush.msra.mxu0 %v1813_v34 }
0x1050   :  { %v1610_v36 = vmul.f32 %v3804_v32, %v1609_v35  ;;  %v1814_v35 = vld [vmem:[#allocation5 + $0x78] sm:$0xff] }
0x1051   :  { %1858 = vmatpush.msra.mxu1 %v1814_v35  ;;  %v1793_v35 = vadd.s32 128, %v4166_v2 }
0x1052   :  { %v1614_v17 = vsel %vm1613_vm5, %v3804_v32, %v1610_v36  ;;  %v1811_v36 = vld [vmem:[#allocation5 + $0x60] sm:$0xff] }
0x1053   :  { %v1616_v21 = vmul.f32 %v1614_v17, %v1582_v3  ;;  %v1812_v17 = vld [vmem:[#allocation5 + $0x68] sm:$0xff]  ;;  %1836 = vmatpush.msra.mxu0 %v1811_v36 }
0x1054   :  { %1859 = vmatpush.msra.mxu1 %v1812_v17 }
0x1055   :  { %v1621_v38 = vmul.f32 %v3712_v18, %v1616_v21  ;;  %v1809_v21 = vld [vmem:[#allocation5 + $0x50] sm:$0xff] }
0x1056   :  { %1837 = vmatpush.msra.mxu0 %v1809_v21  ;;  %v1889_v21 = vld [vmem:[%s5541_s21] sm:$0x3] }
0x1057   :  { %v4796_v39 = vadd.f32 %v3713_v24, %v1621_v38  ;;  %v1810_v38 = vld [vmem:[#allocation5 + $0x58] sm:$0xff] }
0x1058   :  { %1860 = vmatpush.msra.mxu1 %v1810_v38  ;;  %v1795_v38 = vand.u32 32, %v1793_v35 }
0x1059   :  { %3575 = vmatmul.msk.f32.gmra.mxu2 %vm184_vm8, %v4796_v39 }
0x105a   :  { %1861 = vmatpush.msra.mxu1 %v1808_v40  ;;  %v1794_v40 = vand.u32 32, %v4166_v2  ;;  %vm5002_vm13 = vcmp.eq.s32.totalorder %v1795_v38, 0 }
0x105c   :  { %1862 = vmatpush.msra.mxu1 %v1806_v43  ;;  %v5000_v43 = vperm.slane %v1889_v21, 0  ;;  %vm5006_vm14 = vcmp.eq.s32.totalorder %v1794_v40, 0 }
0x105e   :  { %1863 = vmatpush.msra.mxu1 %v1804_v44 }
0x1060   :  { %1864 = vmatpush.msra.mxu1 %v1802_v46 }
0x1062   :  { %1865 = vmatpush.msra.mxu1 %v1800_v47 }
0x10a5   :  { %v1664_v59 = vpop.f32.mrf.mxu2 }
0x10a6   :  { %v1665_v60 = vadd.f32 %v3714_v57, %v1664_v59 }
0x10a8   :  { %v1670_v61 = vmul.f32 %v1665_v60, %v1665_v60 }
0x10aa   :  { %v1672_v62 = vmul.f32 %v1670_v61, %v1665_v60 }
0x10ac   :  { %v1674_v0 = vmul.f32 0.044715, %v1672_v62 }
0x10ae   :  { %v1676_v1 = vadd.f32 %v1674_v0, %v1665_v60  ;;  %v4861_v0 = vld [vmem:[%s5536_s16 + $0x1] ss:$0 sm:$0xff]  ;;  %s3466_s16 = sshll.u32 %s4029_s9, 4  ;;  %s3467_s16 = int_to_ptr.vmem [resolvable:$true] %s3466_s16 }
0x10b0   :  { %v1678_v3 = vmul.f32 0.7978846, %v1676_v1 }
0x10b2   :  { %3805 = vtanh.f32 %v1678_v3 }
0x10b8   :  { %v3806_v4 = vpop.eup %3805 }
0x10b9   :  { %v1682_v54 = vadd.f32 1.0, %v3806_v4  ;;  %v4866_v4 = vld [vmem:[%s5537_s17 + $0x1] ss:$0 sm:$0xff] }
0x10bb   :  { %v1684_v19 = vmul.f32 0.5, %v1682_v54 }
0x10bd   :  { %v1686_v58 = vmul.f32 %v1684_v19, %v1665_v60 }
0x10bf   :  { %1726 = vmatmul.f32.vlgmr.msrb.gmra.mxu3 %v1686_v58  ;;  %v4872_v58 = vld [vmem:[#allocation7 + $0x70] sm:$0xff] }
0x10c0   :  { %1918 = vmatpush.msra.mxu2 %v4872_v58  ;;  %2000 = vmatpush.msrb.mxu1 %v4872_v58 }
0x10c1   :  { %2085 = vmatpush.msra.mxu3 %v4872_v58 }
0x10dc   :  { %v1667_v56 = vpop.f32.mrf.mxu2 }
0x10dd   :  { %v1668_v20 = vadd.f32 %v3714_v57, %v1667_v56  ;;  %v4876_v56 = vld [vmem:[#allocation7 + $0x60] sm:$0xff] }
0x10de   :  { %1919 = vmatpush.msra.mxu2 %v4876_v56  ;;  %2001 = vmatpush.msrb.mxu1 %v4876_v56 }
0x10df   :  { %v1671_v5 = vmul.f32 %v1668_v20, %v1668_v20  ;;  %2086 = vmatpush.msra.mxu3 %v4876_v56 }
0x10e1   :  { %v1673_v6 = vmul.f32 %v1671_v5, %v1668_v20  ;;  %v4886_v5 = vld [vmem:[#allocation7 + $0x40] sm:$0xff] }
0x10e3   :  { %v1675_v7 = vmul.f32 0.044715, %v1673_v6  ;;  %v4891_v6 = vld [vmem:[#allocation7 + $0x30] sm:$0xff] }
0x10e5   :  { %v1677_v8 = vadd.f32 %v1675_v7, %v1668_v20  ;;  %v4896_v7 = vld [vmem:[#allocation7 + $0x20] sm:$0xff] }
0x10e7   :  { %v1679_v9 = vmul.f32 0.7978846, %v1677_v8  ;;  %v4900_v8 = vld [vmem:[#allocation7 + $0x10] sm:$0xff] }
0x10e9   :  { %3807 = vtanh.f32 %v1679_v9  ;;  %v4903_v9 = vld [vmem:[#allocation7] sm:$0xff] }
0x10ef   :  { %v3808_v10 = vpop.eup %3807 }
0x10f0   :  { %v1683_v11 = vadd.f32 1.0, %v3808_v10  ;;  %v4028_v10 = vmov 0.0  }
0x10f2   :  { %v1685_v12 = vmul.f32 0.5, %v1683_v11  ;;  %v4915_v11 = vld [vmem:[#allocation7 + $0x78] sm:$0xff] }
0x10f4   :  { %v1687_v13 = vmul.f32 %v1685_v12, %v1668_v20  ;;  %v4881_v20 = vld [vmem:[#allocation7 + $0x50] sm:$0xff]  ;;  %v4917_v12 = vld [vmem:[#allocation7 + $0x68] sm:$0xff] }
0x10f5   :  { %1920 = vmatpush.msra.mxu2 %v4881_v20  ;;  %2002 = vmatpush.msrb.mxu1 %v4881_v20 }
0x10f6   :  { %1729 = vmatmul.f32.gmra.mxu3 %v1687_v13  ;;  %v4921_v13 = vld [vmem:[#allocation7 + $0x58] sm:$0xff] }
0x10f7   :  { %2087 = vmatpush.msra.mxu3 %v4881_v20  ;;  %1921 = vmatpush.msra.mxu2 %v4886_v5 }
0x10f8   :  { %2003 = vmatpush.msrb.mxu1 %v4886_v5 }
0x10f9   :  { %2088 = vmatpush.msra.mxu3 %v4886_v5  ;;  %1922 = vmatpush.msra.mxu2 %v4891_v6 }
0x10fa   :  { %2004 = vmatpush.msrb.mxu1 %v4891_v6 }
0x10fb   :  { %2089 = vmatpush.msra.mxu3 %v4891_v6  ;;  %1923 = vmatpush.msra.mxu2 %v4896_v7 }
0x10fc   :  { %2005 = vmatpush.msrb.mxu1 %v4896_v7 }
0x10fd   :  { %2090 = vmatpush.msra.mxu3 %v4896_v7  ;;  %1924 = vmatpush.msra.mxu2 %v4900_v8 }
0x10fe   :  { %2006 = vmatpush.msrb.mxu1 %v4900_v8 }
0x10ff   :  { %2091 = vmatpush.msra.mxu3 %v4900_v8  ;;  %1925 = vmatpush.msra.mxu2 %v4903_v9 }
0x1100   :  { %2007 = vmatpush.msrb.mxu1 %v4903_v9  ;;  %1926 = vmatmul.f32.vlgmr.msra.gmra.mxu2 %v4028_v10 }
0x1101   :  { %2092 = vmatpush.msra.mxu3 %v4903_v9  ;;  %2020 = vmatpush.msrb.mxu2 %v4915_v11 }
0x1103   :  { %2263 = vmatpush.msrb.mxu3 %v4872_v58  ;;  %2021 = vmatpush.msrb.mxu2 %v4917_v12 }
0x1105   :  { %2264 = vmatpush.msrb.mxu3 %v4876_v56  ;;  %2022 = vmatpush.msrb.mxu2 %v4921_v13 }
0x1107   :  { %2265 = vmatpush.msrb.mxu3 %v4881_v20 }
0x1109   :  { %2266 = vmatpush.msrb.mxu3 %v4886_v5 }
0x110b   :  { %2267 = vmatpush.msrb.mxu3 %v4891_v6 }
0x110d   :  { %2268 = vmatpush.msrb.mxu3 %v4896_v7 }
0x110f   :  { %2269 = vmatpush.msrb.mxu3 %v4900_v8 }
0x1111   :  { %2270 = vmatpush.msrb.mxu3 %v4903_v9 }
0x1142   :  { %v1727_v14 = vpop.f32.mrf.mxu3 }
0x1143   :  { %v1728_v15 = vadd.f32 %v3715_v63, %v1727_v14 }
0x1145   :  { %v1733_v16 = vadd.f32 %v1728_v15, %v4782_v26  ;;  %v4928_v15 = vld [vmem:[#allocation7 + $0x48] sm:$0xff] }
0x1146   :  { %2023 = vmatpush.msrb.mxu2 %v4928_v15 }
0x1147   :  { %v1739_v18 = vsel %vm184_vm8, %v1733_v16, 0.0 }
0x1148   :  { %1740 = vadd.xlane.f32.xlu0 %v1739_v18  ;;  %v4934_v18 = vld [vmem:[#allocation7 + $0x38] sm:$0xff] }
0x1149   :  { %2024 = vmatpush.msrb.mxu2 %v4934_v18 }
0x1179   :  { %v1730_v22 = vpop.f32.mrf.mxu3 }
0x117a   :  { %v1731_v23 = vadd.f32 %v3715_v63, %v1730_v22  ;;  %v4946_v22 = vld [vmem:[#allocation7 + $0x18] sm:$0xff] }
0x117c   :  { %v1734_v24 = vadd.f32 %v1731_v23, %v4796_v39  ;;  %v1807_v39 = vld [vmem:[#allocation5 + $0x40] sm:$0xff]  ;;  %v4952_v23 = vld [vmem:[#allocation7 + $0x8] sm:$0xff] }
0x117d   :  { %1838 = vmatpush.msra.mxu0 %v1807_v39 }
0x117e   :  { %v1742_v25 = vsel %vm184_vm8, %v1734_v24, 0.0 }
0x117f   :  { %1743 = vadd.xlane.f32.xlu2 %v1742_v25  ;;  %1839 = vmatpush.msra.mxu0 %v1805_v41 }
0x1181   :  { %1840 = vmatpush.msra.mxu0 %v1803_v37 }
0x1183   :  { %1841 = vmatpush.msra.mxu0 %v1801_v45  ;;  %v1927_v37 = vpop.f32.mrf.mxu2 }
0x1185   :  { %1842 = vmatpush.msra.mxu0 %v1799_v42 }
0x1187   :  { %1938 = vmatpush.msrb.mxu0 %v4915_v11 }
0x1189   :  { %1939 = vmatpush.msrb.mxu0 %v4917_v12 }
0x118b   :  { %1940 = vmatpush.msrb.mxu0 %v4921_v13 }
0x118d   :  { %1941 = vmatpush.msrb.mxu0 %v4928_v15 }
0x118f   :  { %1942 = vmatpush.msrb.mxu0 %v4934_v18 }
0x11bb   :  { %v1741_v27 = vpop.xlane.xlu0 %1740 }
0x11bc   :  { %v1745_v28 = vmul.f32 %v1741_v27, %v4245_v49 }
0x11be   :  { %v1747_v53 = vsub.f32 %v1733_v16, %v1745_v28 }
0x11c0   :  { %v1749_v29 = vmul.f32 %v1747_v53, %v1747_v53 }
0x11c2   :  { %v1751_v30 = vsel %vm184_vm8, %v1749_v29, 0.0 }
0x11c3   :  { %1752 = vadd.xlane.f32.xlu0 %v1751_v30 }
0x11f2   :  { %v1744_v31 = vpop.xlane.xlu2 %1743 }
0x11f3   :  { %v1746_v26 = vmul.f32 %v1744_v31, %v4245_v49 }
0x11f5   :  { %v4852_v32 = vsub.f32 %v1734_v24, %v1746_v26 }
0x11f7   :  { %v1750_v33 = vmul.f32 %v4852_v32, %v4852_v32 }
0x11f9   :  { %v1754_v55 = vsel %vm184_vm8, %v1750_v33, 0.0 }
0x11fa   :  { %1755 = vadd.xlane.f32.xlu2 %v1754_v55 }
0x1236   :  { %v1753_v48 = vpop.xlane.xlu0 %1752 }
0x1237   :  { %v1757_v50 = vmul.f32 %v1753_v48, %v4245_v49 }
0x1239   :  { %v1759_v51 = vadd.f32 1e-12, %v1757_v50 }
0x123b   :  { %3809 = vrsqrt.f32 %v1759_v51  ;;  %vm1767_vm7 = vweird.f32 %v1759_v51 }
0x1241   :  { %v3810_v52 = vpop.eup %3809 }
0x1242   :  { %v1762_v57 = vmul.f32 %v3810_v52, %v1759_v51  ;;  %vm1768_vm6 = vweird.f32 %v3810_v52 }
0x1243   :  { %vm1769_vm9 = vmor %vm1767_vm7, %vm1768_vm6 }
0x1244   :  { %v1763_v59 = vmul.f32 %v3810_v52, %v1762_v57 }
0x1246   :  { %v1764_v60 = vmul.f32 0.5, %v1763_v59 }
0x1248   :  { %v1765_v61 = vsub.f32 1.5, %v1764_v60 }
0x124a   :  { %v1766_v62 = vmul.f32 %v3810_v52, %v1765_v61 }
0x124c   :  { %v1770_v1 = vsel %vm1769_vm9, %v3810_v52, %v1766_v62  ;;  %v1928_v52 = vadd.f32 %v1927_v37, %v5000_v43 }
0x124d   :  { %v1781_v3 = vmul.f32 %v1770_v1, %v1747_v53 }
0x124f   :  { %v1786_v54 = vmul.f32 %v4861_v0, %v1781_v3 }
0x1251   :  { %v1791_v19 = vadd.f32 %v4866_v4, %v1786_v54 }
0x1253   :  { %3595 = vmatmul.msk.f32.vlgmr.msra.gmra.mxu0 %vm184_vm8, %v1791_v19  ;;  %3597 = vmatmul.msk.f32.vlgmr.msra.gmra.mxu1 %vm184_vm8, %v1791_v19 }
0x1254   :  { %2170 = vmatpush.msra.mxu1 %v4872_v58 }
0x1256   :  { %2171 = vmatpush.msra.mxu1 %v4876_v56 }
0x1258   :  { %2172 = vmatpush.msra.mxu1 %v4881_v20 }
0x125a   :  { %2173 = vmatpush.msra.mxu1 %v4886_v5 }
0x125c   :  { %2174 = vmatpush.msra.mxu1 %v4891_v6 }
0x125e   :  { %2175 = vmatpush.msra.mxu1 %v4896_v7 }
0x1260   :  { %2176 = vmatpush.msra.mxu1 %v4900_v8 }
0x1262   :  { %2177 = vmatpush.msra.mxu1 %v4903_v9 }
0x126d   :  { %v1756_v63 = vpop.xlane.xlu2 %1755 }
0x126e   :  { %v1758_v14 = vmul.f32 %v1756_v63, %v4245_v49  ;;  %v4940_v49 = vld [vmem:[#allocation7 + $0x28] sm:$0xff] }
0x126f   :  { %1943 = vmatpush.msrb.mxu0 %v4940_v49  ;;  %2025 = vmatpush.msrb.mxu2 %v4940_v49 }
0x1270   :  { %v1760_v16 = vadd.f32 1e-12, %v1758_v14 }
0x1271   :  { %1944 = vmatpush.msrb.mxu0 %v4946_v22  ;;  %2026 = vmatpush.msrb.mxu2 %v4946_v22 }
0x1272   :  { %3811 = vrsqrt.f32 %v1760_v16  ;;  %vm1777_vm11 = vweird.f32 %v1760_v16 }
0x1273   :  { %1945 = vmatpush.msrb.mxu0 %v4952_v23  ;;  %2027 = vmatpush.msrb.mxu2 %v4952_v23 }
0x1275   :  { %2105 = vmatpush.msra.mxu0 %v4915_v11  ;;  %2190 = vmatpush.msra.mxu2 %v4915_v11 }
0x1277   :  { %2106 = vmatpush.msra.mxu0 %v4917_v12  ;;  %2191 = vmatpush.msra.mxu2 %v4917_v12 }
0x1278   :  { %v3812_v24 = vpop.eup %3811 }
0x1279   :  { %v1772_v25 = vmul.f32 %v3812_v24, %v1760_v16  ;;  %2107 = vmatpush.msra.mxu0 %v4921_v13  ;;  %2192 = vmatpush.msra.mxu2 %v4921_v13  ;;  %vm1778_vm10 = vweird.f32 %v3812_v24 }
0x127a   :  { %vm1779_vm12 = vmor %vm1777_vm11, %vm1778_vm10 }
0x127b   :  { %v1773_v27 = vmul.f32 %v3812_v24, %v1772_v25  ;;  %2108 = vmatpush.msra.mxu0 %v4928_v15  ;;  %2193 = vmatpush.msra.mxu2 %v4928_v15 }
0x127d   :  { %v1774_v28 = vmul.f32 0.5, %v1773_v27  ;;  %2109 = vmatpush.msra.mxu0 %v4934_v18  ;;  %2194 = vmatpush.msra.mxu2 %v4934_v18 }
0x127f   :  { %v1775_v53 = vsub.f32 1.5, %v1774_v28  ;;  %2110 = vmatpush.msra.mxu0 %v4940_v49  ;;  %2195 = vmatpush.msra.mxu2 %v4940_v49 }
0x1281   :  { %v1776_v29 = vmul.f32 %v3812_v24, %v1775_v53  ;;  %2111 = vmatpush.msra.mxu0 %v4946_v22  ;;  %2196 = vmatpush.msra.mxu2 %v4946_v22  ;;  %v5040_v53 = vperm.slane %v1889_v21, 1 }
0x1283   :  { %v1780_v30 = vsel %vm1779_vm12, %v3812_v24, %v1776_v29  ;;  %2112 = vmatpush.msra.mxu0 %v4952_v23  ;;  %2197 = vmatpush.msra.mxu2 %v4952_v23 }
0x1284   :  { %v1782_v31 = vmul.f32 %v1780_v30, %v4852_v32  ;;  %v1815_v32 = vld [vmem:[%s5539_s19] sm:$0x3] }
0x1285   :  { %v1818_v36 = vperm.slane %v1815_v32, 1  ;;  %v1817_v17 = vperm.slane %v1815_v32, 0 }
0x1286   :  { %v1787_v26 = vmul.f32 %v4861_v0, %v1782_v31 }
0x1288   :  { %v1792_v33 = vadd.f32 %v4866_v4, %v1787_v26 }
0x128a   :  { %3596 = vmatmul.msk.f32.gmra.mxu0 %vm184_vm8, %v1792_v33  ;;  %3598 = vmatmul.msk.f32.gmra.mxu1 %vm184_vm8, %v1792_v33 }
0x1292   :  { %1946 = vmatmul.f32.vlgmr.msrb.gmra.mxu0 %v4028_v10 }
0x1293   :  { %2283 = vmatpush.msrb.mxu0 %v4915_v11 }
0x1295   :  { %2284 = vmatpush.msrb.mxu0 %v4917_v12 }
0x1297   :  { %2285 = vmatpush.msrb.mxu0 %v4921_v13 }
0x1299   :  { %2286 = vmatpush.msrb.mxu0 %v4928_v15 }
0x129b   :  { %2287 = vmatpush.msrb.mxu0 %v4934_v18 }
0x129d   :  { %2288 = vmatpush.msrb.mxu0 %v4940_v49 }
0x129f   :  { %2289 = vmatpush.msrb.mxu0 %v4946_v22 }
0x12a1   :  { %2290 = vmatpush.msrb.mxu0 %v4952_v23 }
0x12d0   :  { %v1844_v55 = vpop.f32.mrf.mxu0  ;;  %v1867_v34 = vpop.f32.mrf.mxu1 }
0x12d1   :  { %v1868_v39 = vadd.f32 %v1867_v34, %v1818_v36  ;;  %v1845_v41 = vadd.f32 %v1844_v55, %v1817_v17 }
0x12d3   :  { %v2244_v42 = vrot.slane %v1868_v39, 6  ;;  %v2328_v51 = vrot.slane %v1868_v39, 2  ;;  %v2243_v57 = vrot.slane %v1845_v41, 6  ;;  %v2327_v59 = vrot.slane %v1845_v41, 2 }
0x1307   :  { %v1847_v44 = vpop.f32.mrf.mxu0  ;;  %v1870_v46 = vpop.f32.mrf.mxu1 }
0x1308   :  { %v1848_v47 = vadd.f32 %v1847_v44, %v1817_v17  ;;  %v1871_v48 = vadd.f32 %v1870_v46, %v1818_v36 }
0x130a   :  { %v1982_v60 = vrot.slane %v1871_v48, 2  ;;  %v5013_v61 = vsel %vm5002_vm13, %v1871_v48, %v2244_v42  ;;  %v1896_v62 = vrot.slane %v1848_v47, 6  ;;  %v1981_v0 = vrot.slane %v1848_v47, 2 }
0x130b   :  { %v5017_v1 = vsel %vm5006_vm14, %v1848_v47, %v2243_v57  ;;  %v5021_v3 = vsel %vm5006_vm14, %v1848_v47, %v2327_v59  ;;  %v5025_v4 = vsel %vm5002_vm13, %v1871_v48, %v2328_v51  ;;  %v1897_v34 = vrot.slane %v1871_v48, 6 }
0x130c   :  { %v5029_v54 = vsel %vm5006_vm14, %v1845_v41, %v1896_v62  ;;  %v5033_v19 = vsel %vm5002_vm13, %v1868_v39, %v1982_v60  ;;  %v5038_v14 = vsel %vm5006_vm14, %v1845_v41, %v1981_v0 }
0x130d   :  { %v1950_v63 = vadd.f32 %v1928_v52, %v5029_v54  ;;  %v5045_v21 = vsel %vm5002_vm13, %v1868_v39, %v1897_v34 }
0x130f   :  { %v3599_v16 = vmul.f32 -1.442695, %v1950_v63  ;;  %v1947_v30 = vpop.f32.mrf.mxu0 }
0x1310   :  { %v1948_v32 = vadd.f32 %v1947_v30, %v5040_v53 }
0x1311   :  { %3813 = vpow2.f32 %v3599_v16 }
0x1317   :  { %v3814_v24 = vpop.eup %3813 }
0x1318   :  { %v1954_v25 = vadd.f32 1.0, %v3814_v24 }
0x131a   :  { %3815 = vrcp.f32 %v1954_v25  ;;  %v1966_v31 = vand.u32 2147483648, %v1954_v25  ;;  %v1964_v33 = vand.u32 2147483647, %v1954_v25  ;;  %vm1960_vm0 = vweird.f32 %v1954_v25 }
0x131c   :  { %v1967_v35 = vor.u32 1.1754944e-38, %v1966_v31  ;;  %vm1965_vm2 = vcmp.eq.f32.partialorder %v1964_v33, 8.507059e+37 }
0x1320   :  { %v3816_v27 = vpop.eup %3815 }
0x1321   :  { %v1956_v28 = vmul.f32 %v3816_v27, %v1954_v25  ;;  %vm1961_vm15 = vweird.f32 %v3816_v27 }
0x1322   :  { %vm1962_vm1 = vmor %vm1960_vm0, %vm1961_vm15 }
0x1323   :  { %v1957_v29 = vsub.f32 1.0, %v1956_v28 }
0x1325   :  { %v1958_v26 = vmul.f32 %v3816_v27, %v1957_v29 }
0x1327   :  { %v1959_v55 = vadd.f32 %v3816_v27, %v1958_v26 }
0x1329   :  { %v1963_v36 = vsel %vm1962_vm1, %v3816_v27, %v1959_v55 }
0x132a   :  { %v1968_v17 = vsel %vm1965_vm2, %v1967_v35, %v1963_v36 }
0x132b   :  { %v1970_v38 = vmul.f32 %v1968_v17, %v1948_v32  ;;  %v1973_v37 = vsub.f32 1.0, %v1968_v17  ;;  %v1979_v46 = vmul.f32 0.0, %v1968_v17 }
0x132d   :  { %v1971_v40 = vadd.f32 %v1970_v38, %v5045_v21 }
0x132f   :  { %3817 = vtanh.f32 %v1971_v40 }
0x1335   :  { %v3818_v41 = vpop.eup %3817 }
0x1336   :  { %1975 = vrot.lane.b32.xlu0 %v3818_v41, %s4021_s0 }
0x13a8   :  { %v1976_v44 = vpop.permute.xlu0 %1975 }
0x13a9   :  { %v1978_v42 = vmul.f32 %v1976_v44, %v1973_v37 }
0x13ab   :  { %v1980_v47 = vadd.f32 %v1979_v46, %v1978_v42 }
0x13ad   :  { %1988 = vrot.lane.b32.xlu1 %v1980_v47, %s4021_s0  ;;  %v2067_v26 = vrot.slane %v1980_v47, 6 }
0x141f   :  { %v5050_v48 = vpop.permute.xlu1 %1988 }
0x1420   :  { %3600 = vmatmul.msk.f32.vlgmr.msrb.gmra.mxu1 %vm184_vm8, %v5050_v48  ;;  %3601 = vmatmul.msk.f32.vlgmr.msrb.gmra.mxu2 %vm184_vm8, %v5050_v48 }
0x1421   :  { %2346 = vmatpush.msrb.mxu1 %v4872_v58  ;;  %2366 = vmatpush.msrb.mxu2 %v4915_v11 }
0x1423   :  { %2347 = vmatpush.msrb.mxu1 %v4876_v56  ;;  %2367 = vmatpush.msrb.mxu2 %v4917_v12 }
0x1425   :  { %2348 = vmatpush.msrb.mxu1 %v4881_v20  ;;  %2368 = vmatpush.msrb.mxu2 %v4921_v13 }
0x1427   :  { %2349 = vmatpush.msrb.mxu1 %v4886_v5  ;;  %2369 = vmatpush.msrb.mxu2 %v4928_v15 }
0x1429   :  { %2350 = vmatpush.msrb.mxu1 %v4891_v6  ;;  %2370 = vmatpush.msrb.mxu2 %v4934_v18 }
0x142b   :  { %2351 = vmatpush.msrb.mxu1 %v4896_v7  ;;  %2371 = vmatpush.msrb.mxu2 %v4940_v49 }
0x142d   :  { %2352 = vmatpush.msrb.mxu1 %v4900_v8  ;;  %2372 = vmatpush.msrb.mxu2 %v4946_v22 }
0x142f   :  { %2353 = vmatpush.msrb.mxu1 %v4903_v9  ;;  %2373 = vmatpush.msrb.mxu2 %v4952_v23 }
0x149d   :  { %v2009_v39 = vpop.f32.mrf.mxu1 }
0x149e   :  { %v2010_v51 = vadd.f32 %v2009_v39, %v5000_v43 }
0x14a0   :  { %v2033_v52 = vrot.slane %v2010_v51, 6 }
0x14a2   :  { %v2035_v57 = vadd.f32 %v2033_v52, %v5038_v14 }
0x14a3   :  { %v2029_v16 = vpop.f32.mrf.mxu2 }
0x14a4   :  { %v3602_v59 = vmul.f32 -1.442695, %v2035_v57  ;;  %v2030_v27 = vadd.f32 %v2029_v16, %v5040_v53 }
0x14a6   :  { %3819 = vpow2.f32 %v3602_v59  ;;  %v2056_v32 = vrot.slane %v2030_v27, 6 }
0x14ac   :  { %v3820_v60 = vpop.eup %3819 }
0x14ad   :  { %v2039_v62 = vadd.f32 1.0, %v3820_v60 }
0x14af   :  { %3821 = vrcp.f32 %v2039_v62  ;;  %v2051_v25 = vand.u32 2147483648, %v2039_v62  ;;  %v2049_v29 = vand.u32 2147483647, %v2039_v62  ;;  %vm2045_vm4 = vweird.f32 %v2039_v62 }
0x14b1   :  { %v2052_v31 = vor.u32 1.1754944e-38, %v2051_v25  ;;  %vm2050_vm6 = vcmp.eq.f32.partialorder %v2049_v29, 8.507059e+37 }
0x14b5   :  { %v3822_v0 = vpop.eup %3821 }
0x14b6   :  { %v2041_v63 = vmul.f32 %v3822_v0, %v2039_v62  ;;  %vm2046_vm3 = vweird.f32 %v3822_v0 }
0x14b7   :  { %vm2047_vm5 = vmor %vm2045_vm4, %vm2046_vm3 }
0x14b8   :  { %v2042_v24 = vsub.f32 1.0, %v2041_v63 }
0x14ba   :  { %v2043_v28 = vmul.f32 %v3822_v0, %v2042_v24 }
0x14bc   :  { %v2044_v30 = vadd.f32 %v3822_v0, %v2043_v28 }
0x14be   :  { %v2048_v33 = vsel %vm2047_vm5, %v3822_v0, %v2044_v30 }
0x14bf   :  { %v2053_v55 = vsel %vm2050_vm6, %v2052_v31, %v2048_v33 }
0x14c0   :  { %v2058_v34 = vmul.f32 %v2056_v32, %v2053_v55  ;;  %v2069_v35 = vmul.f32 %v2067_v26, %v2053_v55  ;;  %v2061_v38 = vsub.f32 1.0, %v2053_v55 }
0x14c2   :  { %v2059_v36 = vadd.f32 %v2058_v34, %v5033_v19 }
0x14c4   :  { %3823 = vtanh.f32 %v2059_v36 }
0x14ca   :  { %v3824_v17 = vpop.eup %3823 }
0x14cb   :  { %2063 = vrot.lane.b32.xlu2 %v3824_v17, %s4021_s0 }
0x1525   :  { %v2064_v40 = vpop.permute.xlu2 %2063 }
0x1526   :  { %v2066_v41 = vmul.f32 %v2064_v40, %v2061_v38 }
0x1528   :  { %v2070_v37 = vadd.f32 %v2069_v35, %v2066_v41 }
0x152a   :  { %v2072_v44 = vrot.slane %v2070_v37, 2 }
0x152c   :  { %2073 = vrot.lane.b32.xlu0 %v2072_v44, %s4021_s0 }
0x159e   :  { %v5078_v46 = vpop.permute.xlu0 %2073 }
0x159f   :  { %3603 = vmatmul.msk.f32.vlgmr.msra.gmra.mxu3 %vm184_vm8, %v5078_v46  ;;  %3604 = vmatmul.msk.f32.vlgmr.msra.gmra.mxu0 %vm184_vm8, %v5078_v46 }
0x15a0   :  { %2431 = vmatpush.msra.mxu3 %v4872_v58  ;;  %2451 = vmatpush.msra.mxu0 %v4915_v11 }
0x15a2   :  { %2432 = vmatpush.msra.mxu3 %v4876_v56  ;;  %2452 = vmatpush.msra.mxu0 %v4917_v12 }
0x15a4   :  { %2433 = vmatpush.msra.mxu3 %v4881_v20  ;;  %2453 = vmatpush.msra.mxu0 %v4921_v13 }
0x15a6   :  { %2434 = vmatpush.msra.mxu3 %v4886_v5  ;;  %2454 = vmatpush.msra.mxu0 %v4928_v15 }
0x15a8   :  { %2435 = vmatpush.msra.mxu3 %v4891_v6  ;;  %2455 = vmatpush.msra.mxu0 %v4934_v18 }
0x15aa   :  { %2436 = vmatpush.msra.mxu3 %v4896_v7  ;;  %2456 = vmatpush.msra.mxu0 %v4940_v49 }
0x15ac   :  { %2437 = vmatpush.msra.mxu3 %v4900_v8  ;;  %2457 = vmatpush.msra.mxu0 %v4946_v22 }
0x15ae   :  { %2438 = vmatpush.msra.mxu3 %v4903_v9  ;;  %2458 = vmatpush.msra.mxu0 %v4952_v23 }
0x161c   :  { %v2114_v0 = vpop.f32.mrf.mxu0 }
0x161d   :  { %v2115_v24 = vadd.f32 %v2114_v0, %v5040_v53 }
0x161f   :  { %v2141_v30 = vrot.slane %v2115_v24, 4 }
0x1622   :  { %v2094_v42 = vpop.f32.mrf.mxu3 }
0x1623   :  { %v2095_v47 = vadd.f32 %v2094_v42, %v5000_v43 }
0x1625   :  { %v2118_v39 = vrot.slane %v2095_v47, 4 }
0x1627   :  { %v2120_v51 = vadd.f32 %v2118_v39, %v5029_v54  ;;  %v2152_v54 = vrot.slane %v2070_v37, 6 }
0x1629   :  { %v3605_v52 = vmul.f32 -1.442695, %v2120_v51 }
0x162b   :  { %3825 = vpow2.f32 %v3605_v52 }
0x1631   :  { %v3826_v57 = vpop.eup %3825 }
0x1632   :  { %v2124_v59 = vadd.f32 1.0, %v3826_v57 }
0x1634   :  { %3827 = vrcp.f32 %v2124_v59  ;;  %v2136_v16 = vand.u32 2147483648, %v2124_v59  ;;  %v2134_v27 = vand.u32 2147483647, %v2124_v59  ;;  %vm2130_vm9 = vweird.f32 %v2124_v59 }
0x1636   :  { %v2137_v29 = vor.u32 1.1754944e-38, %v2136_v16  ;;  %vm2135_vm11 = vcmp.eq.f32.partialorder %v2134_v27, 8.507059e+37 }
0x163a   :  { %v3828_v60 = vpop.eup %3827 }
0x163b   :  { %v2126_v62 = vmul.f32 %v3828_v60, %v2124_v59  ;;  %vm2131_vm7 = vweird.f32 %v3828_v60 }
0x163c   :  { %vm2132_vm10 = vmor %vm2130_vm9, %vm2131_vm7 }
0x163d   :  { %v2127_v63 = vsub.f32 1.0, %v2126_v62 }
0x163f   :  { %v2128_v25 = vmul.f32 %v3828_v60, %v2127_v63 }
0x1641   :  { %v2129_v28 = vadd.f32 %v3828_v60, %v2128_v25 }
0x1643   :  { %v2133_v31 = vsel %vm2132_vm10, %v3828_v60, %v2129_v28 }
0x1644   :  { %v2138_v26 = vsel %vm2135_vm11, %v2137_v29, %v2133_v31 }
0x1645   :  { %v2143_v33 = vmul.f32 %v2141_v30, %v2138_v26  ;;  %v2154_v32 = vmul.f32 %v2152_v54, %v2138_v26  ;;  %v2146_v35 = vsub.f32 1.0, %v2138_v26 }
0x1647   :  { %v2144_v55 = vadd.f32 %v2143_v33, %v5045_v21 }
0x1649   :  { %3829 = vtanh.f32 %v2144_v55 }
0x164f   :  { %v3830_v34 = vpop.eup %3829 }
0x1650   :  { %2148 = vrot.lane.b32.xlu1 %v3830_v34, %s4021_s0 }
0x16c2   :  { %v2149_v36 = vpop.permute.xlu1 %2148 }
0x16c3   :  { %v2151_v17 = vmul.f32 %v2149_v36, %v2146_v35 }
0x16c5   :  { %v2155_v38 = vadd.f32 %v2154_v32, %v2151_v17 }
0x16c7   :  { %v2157_v40 = vrot.slane %v2155_v38, 4 }
0x16c9   :  { %2158 = vrot.lane.b32.xlu0 %v2157_v40, %s4021_s0 }
0x173b   :  { %v5106_v41 = vpop.permute.xlu0 %2158 }
0x173c   :  { %3606 = vmatmul.msk.f32.vlgmr.msra.gmra.mxu1 %vm184_vm8, %v5106_v41  ;;  %3607 = vmatmul.msk.f32.vlgmr.msra.gmra.mxu2 %vm184_vm8, %v5106_v41 }
0x173d   :  { %2516 = vmatpush.msra.mxu1 %v4872_v58  ;;  %2536 = vmatpush.msra.mxu2 %v4915_v11 }
0x173f   :  { %2517 = vmatpush.msra.mxu1 %v4876_v56  ;;  %2537 = vmatpush.msra.mxu2 %v4917_v12 }
0x1741   :  { %2518 = vmatpush.msra.mxu1 %v4881_v20  ;;  %2538 = vmatpush.msra.mxu2 %v4921_v13 }
0x1743   :  { %2519 = vmatpush.msra.mxu1 %v4886_v5  ;;  %2539 = vmatpush.msra.mxu2 %v4928_v15 }
0x1745   :  { %2520 = vmatpush.msra.mxu1 %v4891_v6  ;;  %2540 = vmatpush.msra.mxu2 %v4934_v18 }
0x1747   :  { %2521 = vmatpush.msra.mxu1 %v4896_v7  ;;  %2541 = vmatpush.msra.mxu2 %v4940_v49 }
0x1749   :  { %2522 = vmatpush.msra.mxu1 %v4900_v8  ;;  %2542 = vmatpush.msra.mxu2 %v4946_v22 }
0x174b   :  { %2523 = vmatpush.msra.mxu1 %v4903_v9  ;;  %2543 = vmatpush.msra.mxu2 %v4952_v23 }
0x17b9   :  { %v2179_v58 = vpop.f32.mrf.mxu1 }
0x17ba   :  { %v2180_v56 = vadd.f32 %v2179_v58, %v5000_v43 }
0x17bc   :  { %v2203_v20 = vrot.slane %v2180_v56, 2 }
0x17be   :  { %v2205_v5 = vadd.f32 %v2203_v20, %v5038_v14  ;;  %v2237_v14 = vrot.slane %v2155_v38, 6 }
0x17bf   :  { %v2199_v8 = vpop.f32.mrf.mxu2 }
0x17c0   :  { %v3608_v6 = vmul.f32 -1.442695, %v2205_v5  ;;  %v2200_v9 = vadd.f32 %v2199_v8, %v5040_v53 }
0x17c2   :  { %3831 = vpow2.f32 %v3608_v6  ;;  %v2226_v44 = vrot.slane %v2200_v9, 2 }
0x17c8   :  { %v3832_v11 = vpop.eup %3831 }
0x17c9   :  { %v2209_v7 = vadd.f32 1.0, %v3832_v11 }
0x17cb   :  { %3833 = vrcp.f32 %v2209_v7  ;;  %v2221_v18 = vand.u32 2147483648, %v2209_v7  ;;  %v2219_v22 = vand.u32 2147483647, %v2209_v7  ;;  %vm2215_vm15 = vweird.f32 %v2209_v7 }
0x17cd   :  { %v2222_v21 = vor.u32 1.1754944e-38, %v2221_v18  ;;  %vm2220_vm1 = vcmp.eq.f32.partialorder %v2219_v22, 8.507059e+37 }
0x17d1   :  { %v3834_v12 = vpop.eup %3833 }
0x17d2   :  { %v2211_v13 = vmul.f32 %v3834_v12, %v2209_v7  ;;  %vm2216_vm12 = vweird.f32 %v3834_v12 }
0x17d3   :  { %vm2217_vm0 = vmor %vm2215_vm15, %vm2216_vm12 }
0x17d4   :  { %v2212_v15 = vsub.f32 1.0, %v2211_v13 }
0x17d6   :  { %v2213_v49 = vmul.f32 %v3834_v12, %v2212_v15 }
0x17d8   :  { %v2214_v23 = vadd.f32 %v3834_v12, %v2213_v49 }
0x17da   :  { %v2218_v37 = vsel %vm2217_vm0, %v3834_v12, %v2214_v23 }
0x17db   :  { %v2223_v42 = vsel %vm2220_vm1, %v2222_v21, %v2218_v37 }
0x17dc   :  { %v2228_v47 = vmul.f32 %v2226_v44, %v2223_v42  ;;  %v2239_v39 = vmul.f32 %v2237_v14, %v2223_v42  ;;  %v2231_v57 = vsub.f32 1.0, %v2223_v42 }
0x17de   :  { %v2229_v51 = vadd.f32 %v2228_v47, %v5033_v19 }
0x17e0   :  { %3835 = vtanh.f32 %v2229_v51 }
0x17e6   :  { %v3836_v52 = vpop.eup %3835 }
0x17e7   :  { %2233 = vrot.lane.b32.xlu2 %v3836_v52, %s4021_s0 }
0x1841   :  { %v2234_v59 = vpop.permute.xlu2 %2233 }
0x1842   :  { %v2236_v60 = vmul.f32 %v2234_v59, %v2231_v57 }
0x1844   :  { %v2240_v62 = vadd.f32 %v2239_v39, %v2236_v60 }
0x1846   :  { %v2250_v0 = vrot.slane %v2240_v62, 6 }
0x1848   :  { %2251 = vrot.lane.b32.xlu1 %v2250_v0, %s4021_s0 }
0x18ba   :  { %v5134_v63 = vpop.permute.xlu1 %2251 }
0x18bb   :  { %3609 = vmatmul.msk.f32.vlgmr.msrb.gmra.mxu3 %vm184_vm8, %v5134_v63  ;;  %3610 = vmatmul.msk.f32.vlgmr.msrb.gmra.mxu0 %vm184_vm8, %v5134_v63 }
0x1938   :  { %v2292_v32 = vpop.f32.mrf.mxu0 }
0x1939   :  { %v2293_v35 = vadd.f32 %v2292_v32, %v5040_v53 }
0x193e   :  { %v2272_v19 = vpop.f32.mrf.mxu3 }
0x193f   :  { %v2273_v16 = vadd.f32 %v2272_v19, %v5000_v43 }
0x1941   :  { %v2295_v24 = vadd.f32 %v2273_v16, %v5017_v1 }
0x1943   :  { %v3611_v25 = vmul.f32 -1.442695, %v2295_v24 }
0x1945   :  { %3837 = vpow2.f32 %v3611_v25 }
0x194b   :  { %v3838_v27 = vpop.eup %3837 }
0x194c   :  { %v2299_v28 = vadd.f32 1.0, %v3838_v27 }
0x194e   :  { %3839 = vrcp.f32 %v2299_v28  ;;  %v2311_v31 = vand.u32 2147483648, %v2299_v28  ;;  %v2309_v33 = vand.u32 2147483647, %v2299_v28  ;;  %vm2305_vm3 = vweird.f32 %v2299_v28 }
0x1950   :  { %v2312_v34 = vor.u32 1.1754944e-38, %v2311_v31  ;;  %vm2310_vm5 = vcmp.eq.f32.partialorder %v2309_v33, 8.507059e+37 }
0x1954   :  { %v3840_v29 = vpop.eup %3839 }
0x1955   :  { %v2301_v54 = vmul.f32 %v3840_v29, %v2299_v28  ;;  %vm2306_vm2 = vweird.f32 %v3840_v29 }
0x1956   :  { %vm2307_vm4 = vmor %vm2305_vm3, %vm2306_vm2 }
0x1957   :  { %v2302_v30 = vsub.f32 1.0, %v2301_v54 }
0x1959   :  { %v2303_v26 = vmul.f32 %v3840_v29, %v2302_v30 }
0x195b   :  { %v2304_v55 = vadd.f32 %v3840_v29, %v2303_v26 }
0x195d   :  { %v2308_v36 = vsel %vm2307_vm4, %v3840_v29, %v2304_v55 }
0x195e   :  { %v2313_v17 = vsel %vm2310_vm5, %v2312_v34, %v2308_v36  ;;  %vm1798_vm5 = vcmp.lt.s32.totalorder %v4166_v2, 32  ;;  %v3621_v2 = vld [vmem:[%s5539_s19 + $0x2] sm:$0x3] }
0x195f   :  { %v2315_v38 = vmul.f32 %v2313_v17, %v2293_v35  ;;  %v2318_v56 = vsub.f32 1.0, %v2313_v17  ;;  %v2325_v5 = vmul.f32 %v2313_v17, %v2250_v0 }
0x1961   :  { %v2316_v40 = vadd.f32 %v2315_v38, %v5013_v61 }
0x1963   :  { %3841 = vtanh.f32 %v2316_v40 }
0x1969   :  { %v3842_v58 = vpop.eup %3841 }
0x196a   :  { %2320 = vrot.lane.b32.xlu0 %v3842_v58, %s4021_s0 }
0x19dc   :  { %v2321_v20 = vpop.permute.xlu0 %2320 }
0x19dd   :  { %v2323_v6 = vmul.f32 %v2321_v20, %v2318_v56 }
0x19df   :  { %v2326_v11 = vadd.f32 %v2325_v5, %v2323_v6 }
0x19e1   :  { %2334 = vrot.lane.b32.xlu2 %v2326_v11, %s4021_s0  ;;  %v2413_v52 = vrot.slane %v2326_v11, 6 }
0x1a3b   :  { %v5146_v7 = vpop.permute.xlu2 %2334 }
0x1a3c   :  { %3612 = vmatmul.msk.f32.vlgmr.msrb.gmra.mxu1 %vm184_vm8, %v5146_v7  ;;  %3613 = vmatmul.msk.f32.vlgmr.msrb.gmra.mxu2 %vm184_vm8, %v5146_v7 }
0x1ab9   :  { %v2355_v12 = vpop.f32.mrf.mxu1 }
0x1aba   :  { %v2356_v13 = vadd.f32 %v2355_v12, %v5000_v43 }
0x1abc   :  { %v2379_v8 = vrot.slane %v2356_v13, 6 }
0x1abe   :  { %v2381_v15 = vadd.f32 %v2379_v8, %v5021_v3 }
0x1abf   :  { %v2375_v21 = vpop.f32.mrf.mxu2 }
0x1ac0   :  { %v3614_v18 = vmul.f32 -1.442695, %v2381_v15  ;;  %v2376_v44 = vadd.f32 %v2375_v21, %v5040_v53 }
0x1ac2   :  { %3843 = vpow2.f32 %v3614_v18  ;;  %v2402_v59 = vrot.slane %v2376_v44, 6 }
0x1ac8   :  { %v3844_v9 = vpop.eup %3843 }
0x1ac9   :  { %v2385_v49 = vadd.f32 1.0, %v3844_v9 }
0x1acb   :  { %3845 = vrcp.f32 %v2385_v49  ;;  %v2397_v37 = vand.u32 2147483648, %v2385_v49  ;;  %v2395_v47 = vand.u32 2147483647, %v2385_v49  ;;  %vm2391_vm7 = vweird.f32 %v2385_v49 }
0x1acd   :  { %v2398_v51 = vor.u32 1.1754944e-38, %v2397_v37  ;;  %vm2396_vm10 = vcmp.eq.f32.partialorder %v2395_v47, 8.507059e+37 }
0x1ad1   :  { %v3846_v22 = vpop.eup %3845 }
0x1ad2   :  { %v2387_v23 = vmul.f32 %v3846_v22, %v2385_v49  ;;  %vm2392_vm6 = vweird.f32 %v3846_v22 }
0x1ad3   :  { %vm2393_vm9 = vmor %vm2391_vm7, %vm2392_vm6  ;;  %vm2627_vm6 = vcmask 1041408   ;;  %vm2631_vm7 = vcmask 1045504  }
0x1ad4   :  { %v2388_v14 = vsub.f32 1.0, %v2387_v23 }
0x1ad6   :  { %v2389_v42 = vmul.f32 %v3846_v22, %v2388_v14 }
0x1ad8   :  { %v2390_v39 = vadd.f32 %v3846_v22, %v2389_v42 }
0x1ada   :  { %v2394_v57 = vsel %vm2393_vm9, %v3846_v22, %v2390_v39  ;;  %vm2629_vm9 = vcmask 1043456  }
0x1adb   :  { %v2399_v60 = vsel %vm2396_vm10, %v2398_v51, %v2394_v57 }
0x1adc   :  { %v2404_v62 = vmul.f32 %v2402_v59, %v2399_v60  ;;  %v2415_v0 = vmul.f32 %v2413_v52, %v2399_v60  ;;  %v2407_v24 = vsub.f32 1.0, %v2399_v60 }
0x1ade   :  { %v2405_v19 = vadd.f32 %v2404_v62, %v5025_v4 }
0x1ae0   :  { %3847 = vtanh.f32 %v2405_v19 }
0x1ae6   :  { %v3848_v16 = vpop.eup %3847 }
0x1ae7   :  { %2409 = vrot.lane.b32.xlu1 %v3848_v16, %s4021_s0 }
0x1b59   :  { %v2410_v25 = vpop.permute.xlu1 %2409 }
0x1b5a   :  { %v2412_v27 = vmul.f32 %v2410_v25, %v2407_v24 }
0x1b5c   :  { %v2416_v28 = vadd.f32 %v2415_v0, %v2412_v27 }
0x1b5e   :  { %v2418_v29 = vrot.slane %v2416_v28, 2 }
0x1b60   :  { %2419 = vrot.lane.b32.xlu0 %v2418_v29, %s4021_s0 }
0x1bd2   :  { %v5158_v54 = vpop.permute.xlu0 %2419 }
0x1bd3   :  { %3615 = vmatmul.msk.f32.vlgmr.msra.gmra.mxu3 %vm184_vm8, %v5158_v54  ;;  %3616 = vmatmul.msk.f32.vlgmr.msra.gmra.mxu0 %vm184_vm8, %v5158_v54 }
0x1c50   :  { %v2460_v17 = vpop.f32.mrf.mxu0 }
0x1c51   :  { %v2461_v58 = vadd.f32 %v2460_v17, %v5040_v53  ;;  %v2645_v17 = vld [vmem:[#allocation5 + $0xc0] sm:$0xff] }
0x1c53   :  { %v2487_v11 = vrot.slane %v2461_v58, 4  ;;  %v2641_v58 = vld [vmem:[#allocation5 + $0xa0] sm:$0xff] }
0x1c56   :  { %v2440_v30 = vpop.f32.mrf.mxu3 }
0x1c57   :  { %v2441_v31 = vadd.f32 %v2440_v30, %v5000_v43 }
0x1c59   :  { %v2464_v26 = vrot.slane %v2441_v31, 4 }
0x1c5b   :  { %v2466_v33 = vadd.f32 %v2464_v26, %v5017_v1  ;;  %v2498_v1 = vrot.slane %v2416_v28, 6 }
0x1c5d   :  { %v3617_v32 = vmul.f32 -1.442695, %v2466_v33 }
0x1c5f   :  { %3849 = vpow2.f32 %v3617_v32  ;;  %v2652_v32 = vld [vmem:[#allocation5 + $0xf8] sm:$0xff] }
0x1c60   :  { %2697 = vmatpush.msrb.mxu0 %v2652_v32  ;;  %v2656_v32 = vperm.slane %v3621_v2, 0 }
0x1c65   :  { %v3850_v55 = vpop.eup %3849 }
0x1c66   :  { %v2470_v34 = vadd.f32 1.0, %v3850_v55  ;;  %v2649_v55 = vld [vmem:[#allocation5 + $0xe0] sm:$0xff] }
0x1c68   :  { %3851 = vrcp.f32 %v2470_v34  ;;  %v2482_v40 = vand.u32 2147483648, %v2470_v34  ;;  %v2480_v20 = vand.u32 2147483647, %v2470_v34  ;;  %vm2476_vm12 = vweird.f32 %v2470_v34 }
0x1c6a   :  { %v2483_v6 = vor.u32 1.1754944e-38, %v2482_v40  ;;  %vm2481_vm0 = vcmp.eq.f32.partialorder %v2480_v20, 8.507059e+37  ;;  %v2643_v40 = vld [vmem:[#allocation5 + $0xb0] sm:$0xff] }
0x1c6e   :  { %v3852_v35 = vpop.eup %3851 }
0x1c6f   :  { %v2472_v36 = vmul.f32 %v3852_v35, %v2470_v34  ;;  %vm2477_vm11 = vweird.f32 %v3852_v35  ;;  %v2650_v34 = vld [vmem:[#allocation5 + $0xe8] sm:$0xff] }
0x1c70   :  { %vm2478_vm15 = vmor %vm2476_vm12, %vm2477_vm11  ;;  %2698 = vmatpush.msrb.mxu0 %v2650_v34 }
0x1c71   :  { %v2473_v38 = vsub.f32 1.0, %v2472_v36  ;;  %v2648_v36 = vld [vmem:[#allocation5 + $0xd8] sm:$0xff] }
0x1c72   :  { %2699 = vmatpush.msrb.mxu0 %v2648_v36 }
0x1c73   :  { %v2474_v56 = vmul.f32 %v3852_v35, %v2473_v38  ;;  %v2646_v38 = vld [vmem:[#allocation5 + $0xc8] sm:$0xff] }
0x1c74   :  { %2700 = vmatpush.msrb.mxu0 %v2646_v38 }
0x1c75   :  { %v2475_v5 = vadd.f32 %v3852_v35, %v2474_v56  ;;  %v2642_v56 = vld [vmem:[#allocation5 + $0xa8] sm:$0xff] }
0x1c77   :  { %v2479_v12 = vsel %vm2478_vm15, %v3852_v35, %v2475_v5  ;;  %v2647_v35 = vld [vmem:[#allocation5 + $0xd0] sm:$0xff] }
0x1c78   :  { %v2484_v13 = vsel %vm2481_vm0, %v2483_v6, %v2479_v12  ;;  %v2639_v12 = vld [vmem:[#allocation5 + $0x90] sm:$0xff] }
0x1c79   :  { %v2489_v8 = vmul.f32 %v2487_v11, %v2484_v13  ;;  %v2500_v15 = vmul.f32 %v2498_v1, %v2484_v13  ;;  %v2492_v49 = vsub.f32 1.0, %v2484_v13  ;;  %v2640_v13 = vld [vmem:[#allocation5 + $0x98] sm:$0xff] }
0x1c7b   :  { %v2490_v18 = vadd.f32 %v2489_v8, %v5013_v61  ;;  %v2637_v8 = vld [vmem:[#allocation5 + $0x80] sm:$0xff] }
0x1c7d   :  { %3853 = vtanh.f32 %v2490_v18  ;;  %v5182_v18 = vld [vmem:[#allocation7 + $0xf0] sm:$0xff] }
0x1c7e   :  { %2752 = vmatpush.msrb.mxu1 %v5182_v18 }
0x1c83   :  { %v3854_v9 = vpop.eup %3853 }
0x1c84   :  { %2494 = vrot.lane.b32.xlu2 %v3854_v9, %s4021_s0  ;;  %v5184_v9 = vld [vmem:[#allocation7 + $0xe0] sm:$0xff] }
0x1c85   :  { %2753 = vmatpush.msrb.mxu1 %v5184_v9 }
0x1cde   :  { %v2495_v22 = vpop.permute.xlu2 %2494 }
0x1cdf   :  { %v2497_v23 = vmul.f32 %v2495_v22, %v2492_v49  ;;  %v5188_v49 = vld [vmem:[#allocation7 + $0xd0] sm:$0xff]  ;;  %v5194_v22 = vld [vmem:[#allocation7 + $0xc0] sm:$0xff] }
0x1ce0   :  { %2754 = vmatpush.msrb.mxu1 %v5188_v49 }
0x1ce1   :  { %v2501_v21 = vadd.f32 %v2500_v15, %v2497_v23  ;;  %v2638_v15 = vld [vmem:[#allocation5 + $0x88] sm:$0xff]  ;;  %v5196_v23 = vld [vmem:[#allocation7 + $0xb0] sm:$0xff] }
0x1ce2   :  { %2755 = vmatpush.msrb.mxu1 %v5194_v22 }
0x1ce3   :  { %v2503_v14 = vrot.slane %v2501_v21, 4 }
0x1ce4   :  { %2756 = vmatpush.msrb.mxu1 %v5196_v23 }
0x1ce5   :  { %2504 = vrot.lane.b32.xlu1 %v2503_v14, %s4021_s0  ;;  %v5202_v14 = vld [vmem:[#allocation7 + $0xa0] sm:$0xff] }
0x1ce6   :  { %2757 = vmatpush.msrb.mxu1 %v5202_v14 }
0x1d57   :  { %v5170_v37 = vpop.permute.xlu1 %2504 }
0x1d58   :  { %3618 = vmatmul.msk.f32.vlgmr.msra.gmra.mxu1 %vm184_vm8, %v5170_v37  ;;  %3619 = vmatmul.msk.f32.vlgmr.msra.gmra.mxu2 %vm184_vm8, %v5170_v37 }
0x1dd5   :  { %v2525_v61 = vpop.f32.mrf.mxu1 }
0x1dd6   :  { %v2526_v44 = vadd.f32 %v2525_v61, %v5000_v43  ;;  %v5205_v61 = vld [vmem:[#allocation7 + $0xe8] sm:$0xff] }
0x1dd8   :  { %v2549_v42 = vrot.slane %v2526_v44, 2  ;;  %v5209_v44 = vld [vmem:[#allocation7 + $0xd8] sm:$0xff] }
0x1dda   :  { %v2551_v47 = vadd.f32 %v2549_v42, %v5021_v3  ;;  %v2583_v3 = vrot.slane %v2501_v21, 6  ;;  %v5199_v21 = vld [vmem:[#allocation7 + $0xf8] sm:$0xff]  ;;  %v5212_v42 = vld [vmem:[#allocation7 + $0x90] sm:$0xff] }
0x1ddb   :  { %v2545_v60 = vpop.f32.mrf.mxu2  ;;  %2772 = vmatpush.msrb.mxu2 %v5199_v21  ;;  %2758 = vmatpush.msrb.mxu1 %v5212_v42 }
0x1ddc   :  { %v3620_v39 = vmul.f32 -1.442695, %v2551_v47  ;;  %v2546_v19 = vadd.f32 %v2545_v60, %v5040_v53  ;;  %v2651_v53 = vld [vmem:[#allocation5 + $0xf0] sm:$0xff]  ;;  %v5217_v47 = vld [vmem:[#allocation7 + $0xc8] sm:$0xff]  ;;  %v2598_v60 = vsel %vm1798_vm5, %v5078_v46, %v5170_v37 }
0x1ddd   :  { %2674 = vmatpush.msrb.mxu3 %v2651_v53  ;;  %2773 = vmatpush.msrb.mxu2 %v5205_v61 }
0x1dde   :  { %3855 = vpow2.f32 %v3620_v39  ;;  %v2572_v28 = vrot.slane %v2546_v19, 2  ;;  %v5220_v39 = vld [vmem:[#allocation7 + $0x80] sm:$0xff]  ;;  %v2610_v19 = vrot.slane %v2598_v60, 6 }
0x1ddf   :  { %2675 = vmatpush.msrb.mxu3 %v2649_v55  ;;  %2774 = vmatpush.msrb.mxu2 %v5209_v44 }
0x1de0   :  { %2759 = vmatpush.msrb.mxu1 %v5220_v39 }
0x1de1   :  { %2676 = vmatpush.msrb.mxu3 %v2647_v35  ;;  %2775 = vmatpush.msrb.mxu2 %v5217_v47 }
0x1de2   :  { %2760 = vmatmul.f32.vlgmr.msrb.gmra.mxu1 %v4028_v10 }
0x1de3   :  { %2677 = vmatpush.msrb.mxu3 %v2645_v17  ;;  %2919 = vmatpush.msra.mxu1 %v5182_v18  ;;  %v3626_v17 = vld [vmem:[%s5541_s21 + $0x2] sm:$0x3] }
0x1de4   :  { %v3856_v51 = vpop.eup %3855 }
0x1de5   :  { %v2555_v52 = vadd.f32 1.0, %v3856_v51  ;;  %2678 = vmatpush.msrb.mxu3 %v2643_v40  ;;  %v5225_v51 = vld [vmem:[#allocation7 + $0xb8] sm:$0xff]  ;;  %2920 = vmatpush.msra.mxu1 %v5184_v9 }
0x1de6   :  { %2776 = vmatpush.msrb.mxu2 %v5225_v51 }
0x1de7   :  { %3857 = vrcp.f32 %v2555_v52  ;;  %v2567_v0 = vand.u32 2147483648, %v2555_v52  ;;  %v2565_v24 = vand.u32 2147483647, %v2555_v52  ;;  %vm2561_vm2 = vweird.f32 %v2555_v52  ;;  %2679 = vmatpush.msrb.mxu3 %v2641_v58  ;;  %2921 = vmatpush.msra.mxu1 %v5188_v49 }
0x1de9   :  { %v2568_v43 = vor.u32 1.1754944e-38, %v2567_v0  ;;  %vm2566_vm4 = vcmp.eq.f32.partialorder %v2565_v24, 8.507059e+37  ;;  %2680 = vmatpush.msrb.mxu3 %v2639_v12  ;;  %v2604_v0 = vsel %vm1798_vm5, %v5134_v63, %v5146_v7  ;;  %2922 = vmatpush.msra.mxu1 %v5194_v22 }
0x1deb   :  { %2681 = vmatpush.msrb.mxu3 %v2637_v8  ;;  %2923 = vmatpush.msra.mxu1 %v5196_v23 }
0x1ded   :  { %v3858_v57 = vpop.eup %3857  ;;  %2834 = vmatpush.msra.mxu3 %v5182_v18  ;;  %2924 = vmatpush.msra.mxu1 %v5202_v14 }
0x1dee   :  { %v2557_v59 = vmul.f32 %v3858_v57, %v2555_v52  ;;  %vm2562_vm1 = vweird.f32 %v3858_v57  ;;  %v5231_v52 = vld [vmem:[#allocation7 + $0xa8] sm:$0xff] }
0x1def   :  { %vm2563_vm3 = vmor %vm2561_vm2, %vm2562_vm1  ;;  %2835 = vmatpush.msra.mxu3 %v5184_v9  ;;  %2777 = vmatpush.msrb.mxu2 %v5231_v52 }
0x1df0   :  { %v2558_v62 = vsub.f32 1.0, %v2557_v59  ;;  %v5241_v59 = vld [vmem:[#allocation7 + $0x88] sm:$0xff]  ;;  %2925 = vmatpush.msra.mxu1 %v5212_v42 }
0x1df1   :  { %2836 = vmatpush.msra.mxu3 %v5188_v49 }
0x1df2   :  { %v2559_v16 = vmul.f32 %v3858_v57, %v2558_v62  ;;  %v2601_v62 = vsel %vm1798_vm5, %v5106_v41, %v5158_v54  ;;  %2926 = vmatpush.msra.mxu1 %v5220_v39 }
0x1df3   :  { %2837 = vmatpush.msra.mxu3 %v5194_v22  ;;  %v2613_v24 = vrot.slane %v2601_v62, 4 }
0x1df4   :  { %v2560_v25 = vadd.f32 %v3858_v57, %v2559_v16  ;;  %3097 = vmatpush.msrb.mxu1 %v5182_v18 }
0x1df5   :  { %2838 = vmatpush.msra.mxu3 %v5196_v23 }
0x1df6   :  { %v2564_v27 = vsel %vm2563_vm3, %v3858_v57, %v2560_v25  ;;  %v5236_v57 = vld [vmem:[#allocation7 + $0x98] sm:$0xff]  ;;  %3098 = vmatpush.msrb.mxu1 %v5184_v9 }
0x1df7   :  { %v2569_v29 = vsel %vm2566_vm4, %v2568_v43, %v2564_v27  ;;  %2839 = vmatpush.msra.mxu3 %v5202_v14  ;;  %2778 = vmatpush.msrb.mxu2 %v5236_v57 }
0x1df8   :  { %v2574_v30 = vmul.f32 %v2572_v28, %v2569_v29  ;;  %v2585_v31 = vmul.f32 %v2583_v3, %v2569_v29  ;;  %v2577_v20 = vsub.f32 1.0, %v2569_v29  ;;  %v2606_v3 = vsel %vm1798_vm5, %v5158_v54, %v5106_v41  ;;  %3099 = vmatpush.msrb.mxu1 %v5188_v49 }
0x1df9   :  { %2840 = vmatpush.msra.mxu3 %v5212_v42  ;;  %2779 = vmatpush.msrb.mxu2 %v5241_v59  ;;  %v2607_v28 = vsel %vm1798_vm5, %v5170_v37, %v5078_v46  ;;  %v2619_v41 = vrot.slane %v2606_v3, 6 }
0x1dfa   :  { %v2575_v26 = vadd.f32 %v2574_v30, %v5025_v4  ;;  %v2644_v4 = vld [vmem:[#allocation5 + $0xb8] sm:$0xff]  ;;  %2780 = vmatmul.f32.vlgmr.msrb.gmra.mxu2 %v4028_v10  ;;  %v2616_v10 = vrot.slane %v2604_v0, 2  ;;  %v2622_v54 = vrot.slane %v2607_v28, 4  ;;  %3100 = vmatpush.msrb.mxu1 %v5194_v22 }
0x1dfb   :  { %2701 = vmatpush.msrb.mxu0 %v2644_v4  ;;  %2841 = vmatpush.msra.mxu3 %v5220_v39 }
0x1dfc   :  { %3859 = vtanh.f32 %v2575_v26  ;;  %2939 = vmatpush.msra.mxu2 %v5199_v21  ;;  %3101 = vmatpush.msrb.mxu1 %v5196_v23 }
0x1dfd   :  { %2702 = vmatpush.msrb.mxu0 %v2642_v56  ;;  %v5351_v56 = vperm.slane %v3626_v17, 0 }
0x1dfe   :  { %2940 = vmatpush.msra.mxu2 %v5205_v61  ;;  %3102 = vmatpush.msrb.mxu1 %v5202_v14 }
0x1dff   :  { %2703 = vmatpush.msrb.mxu0 %v2640_v13 }
0x1e00   :  { %2941 = vmatpush.msra.mxu2 %v5209_v44  ;;  %3103 = vmatpush.msrb.mxu1 %v5212_v42 }
0x1e01   :  { %2704 = vmatpush.msrb.mxu0 %v2638_v15 }
0x1e02   :  { %v3860_v33 = vpop.eup %3859  ;;  %2942 = vmatpush.msra.mxu2 %v5217_v47  ;;  %3104 = vmatpush.msrb.mxu1 %v5220_v39 }
0x1e03   :  { %2579 = vrot.lane.b32.xlu0 %v3860_v33, %s4021_s0  ;;  %2854 = vmatpush.msra.mxu0 %v5199_v21 }
0x1e04   :  { %2943 = vmatpush.msra.mxu2 %v5225_v51 }
0x1e05   :  { %2855 = vmatpush.msra.mxu0 %v5205_v61 }
0x1e06   :  { %2944 = vmatpush.msra.mxu2 %v5231_v52 }
0x1e07   :  { %2856 = vmatpush.msra.mxu0 %v5209_v44 }
0x1e08   :  { %2945 = vmatpush.msra.mxu2 %v5236_v57 }
0x1e09   :  { %2857 = vmatpush.msra.mxu0 %v5217_v47 }
0x1e0a   :  { %2946 = vmatpush.msra.mxu2 %v5241_v59 }
0x1e0b   :  { %2858 = vmatpush.msra.mxu0 %v5225_v51 }
0x1e0c   :  { %3117 = vmatpush.msrb.mxu2 %v5199_v21 }
0x1e0d   :  { %2859 = vmatpush.msra.mxu0 %v5231_v52 }
0x1e0e   :  { %3118 = vmatpush.msrb.mxu2 %v5205_v61 }
0x1e0f   :  { %2860 = vmatpush.msra.mxu0 %v5236_v57 }
0x1e10   :  { %3119 = vmatpush.msrb.mxu2 %v5209_v44 }
0x1e11   :  { %2861 = vmatpush.msra.mxu0 %v5241_v59 }
0x1e12   :  { %3120 = vmatpush.msrb.mxu2 %v5217_v47 }
0x1e14   :  { %3121 = vmatpush.msrb.mxu2 %v5225_v51 }
0x1e16   :  { %3122 = vmatpush.msrb.mxu2 %v5231_v52 }
0x1e18   :  { %3123 = vmatpush.msrb.mxu2 %v5236_v57 }
0x1e1a   :  { %3124 = vmatpush.msrb.mxu2 %v5241_v59 }
0x1e75   :  { %v2580_v5 = vpop.permute.xlu0 %2579 }
0x1e76   :  { %v2582_v6 = vmul.f32 %v2580_v5, %v2577_v20  ;;  %v2761_v5 = vpop.f32.mrf.mxu1 }
0x1e77   :  { %v2762_v13 = vadd.f32 %v2761_v5, %v5351_v56 }
0x1e78   :  { %v2586_v1 = vadd.f32 %v2585_v31, %v2582_v6 }
0x1e7a   :  { %v2591_v11 = vrot.slane %v2586_v1, 6 }
0x1e7c   :  { %2592 = vrot.lane.b32.xlu2 %v2591_v11, %s4021_s0 }
0x1ed6   :  { %v2593_v16 = vpop.permute.xlu2 %2592 }
0x1ed7   :  { %v2595_v25 = vsel %vm1798_vm5, %v5050_v48, %v2593_v16  ;;  %v2608_v30 = vsel %vm1798_vm5, %v2593_v16, %v5050_v48  ;;  %v2605_v48 = vsel %vm1798_vm5, %v5146_v7, %v5134_v63  ;;  %v2657_v7 = vperm.slane %v3621_v2, 1 }
0x1ed8   :  { %v2628_v43 = vsel %vm2627_vm6, %v2595_v25, %v2610_v19  ;;  %v2625_v46 = vrot.slane %v2608_v30, 2  ;;  %v2633_v37 = vsel %vm2627_vm6, %v2605_v48, %v2619_v41 }
0x1ed9   :  { %v2630_v27 = vsel %vm2629_vm9, %v2628_v43, %v2613_v24  ;;  %v2634_v31 = vsel %vm2629_vm9, %v2633_v37, %v2622_v54 }
0x1eda   :  { %v2632_v29 = vsel %vm2631_vm7, %v2630_v27, %v2616_v10  ;;  %v2635_v26 = vsel %vm2631_vm7, %v2634_v31, %v2625_v46  ;;  %v5375_v27 = vperm.slane %v3626_v17, 1 }
0x1edb   :  { %3622 = vmatmul.msk.f32.vlgmr.msrb.gmra.mxu3 %vm184_vm8, %v2632_v29  ;;  %3624 = vmatmul.msk.f32.vlgmr.msrb.gmra.mxu0 %vm184_vm8, %v2632_v29  ;;  %v2781_v29 = vpop.f32.mrf.mxu2 }
0x1edc   :  { %3004 = vmatpush.msrb.mxu3 %v5182_v18  ;;  %3024 = vmatpush.msrb.mxu0 %v5199_v21  ;;  %v2782_v50 = vadd.f32 %v2781_v29, %v5375_v27 }
0x1ede   :  { %3005 = vmatpush.msrb.mxu3 %v5184_v9  ;;  %3025 = vmatpush.msrb.mxu0 %v5205_v61 }
0x1ee0   :  { %3006 = vmatpush.msrb.mxu3 %v5188_v49  ;;  %3026 = vmatpush.msrb.mxu0 %v5209_v44 }
0x1ee2   :  { %3007 = vmatpush.msrb.mxu3 %v5194_v22  ;;  %3027 = vmatpush.msrb.mxu0 %v5217_v47 }
0x1ee3   :  { %3623 = vmatmul.msk.f32.gmra.mxu3 %vm184_vm8, %v2635_v26  ;;  %3625 = vmatmul.msk.f32.gmra.mxu0 %vm184_vm8, %v2635_v26 }
0x1ee4   :  { %3008 = vmatpush.msrb.mxu3 %v5196_v23  ;;  %3028 = vmatpush.msrb.mxu0 %v5225_v51 }
0x1ee6   :  { %3009 = vmatpush.msrb.mxu3 %v5202_v14  ;;  %3029 = vmatpush.msrb.mxu0 %v5231_v52 }
0x1ee8   :  { %3010 = vmatpush.msrb.mxu3 %v5212_v42  ;;  %3030 = vmatpush.msrb.mxu0 %v5236_v57 }
0x1eea   :  { %3011 = vmatpush.msrb.mxu3 %v5220_v39  ;;  %3031 = vmatpush.msrb.mxu0 %v5241_v59 }
0x1f58   :  { %v2706_v63 = vpop.f32.mrf.mxu0 }
0x1f59   :  { %v2707_v33 = vadd.f32 %v2706_v63, %v2657_v7 }
0x1f5b   :  { %v3078_v34 = vrot.slane %v2707_v33, 6  ;;  %v3162_v35 = vrot.slane %v2707_v33, 2 }
0x1f5e   :  { %v2683_v53 = vpop.f32.mrf.mxu3 }
0x1f5f   :  { %v2684_v38 = vadd.f32 %v2683_v53, %v2656_v32 }
0x1f60   :  { %v2709_v55 = vpop.f32.mrf.mxu0 }
0x1f61   :  { %v2710_v36 = vadd.f32 %v2709_v55, %v2657_v7  ;;  %v3077_v11 = vrot.slane %v2684_v38, 6  ;;  %v3161_v12 = vrot.slane %v2684_v38, 2 }
0x1f63   :  { %v2816_v40 = vrot.slane %v2710_v36, 2  ;;  %v5345_v4 = vsel %vm5002_vm13, %v2710_v36, %v3162_v35  ;;  %v5349_v58 = vsel %vm5002_vm13, %v2710_v36, %v3078_v34  ;;  %v2734_v48 = vrot.slane %v2710_v36, 6 }
0x1f65   :  { %v5355_v20 = vsel %vm5002_vm13, %v2707_v33, %v2816_v40  ;;  %v5380_v63 = vsel %vm5002_vm13, %v2707_v33, %v2734_v48 }
0x1f66   :  { %v2686_v6 = vpop.f32.mrf.mxu3 }
0x1f67   :  { %v2687_v1 = vadd.f32 %v2686_v6, %v2656_v32 }
0x1f69   :  { %v2733_v8 = vrot.slane %v2687_v1, 6  ;;  %v2815_v15 = vrot.slane %v2687_v1, 2  ;;  %v5360_v60 = vsel %vm5006_vm14, %v2687_v1, %v3077_v11  ;;  %v5364_v62 = vsel %vm5006_vm14, %v2687_v1, %v3161_v12 }
0x1f6b   :  { %v5368_v0 = vsel %vm5006_vm14, %v2684_v38, %v2733_v8  ;;  %v5372_v19 = vsel %vm5006_vm14, %v2684_v38, %v2815_v15 }
0x1f6c   :  { %v2784_v16 = vadd.f32 %v2762_v13, %v5368_v0 }
0x1f6e   :  { %v3627_v24 = vmul.f32 -1.442695, %v2784_v16 }
0x1f70   :  { %3861 = vpow2.f32 %v3627_v24 }
0x1f76   :  { %v3862_v25 = vpop.eup %3861 }
0x1f77   :  { %v2788_v10 = vadd.f32 1.0, %v3862_v25 }
0x1f79   :  { %3863 = vrcp.f32 %v2788_v10  ;;  %v2800_v30 = vand.u32 2147483648, %v2788_v10  ;;  %v2798_v54 = vand.u32 2147483647, %v2788_v10  ;;  %vm2794_vm14 = vweird.f32 %v2788_v10 }
0x1f7b   :  { %v2801_v37 = vor.u32 1.1754944e-38, %v2800_v30  ;;  %vm2799_vm12 = vcmp.eq.f32.partialorder %v2798_v54, 8.507059e+37 }
0x1f7f   :  { %v3864_v43 = vpop.eup %3863 }
0x1f80   :  { %v2790_v3 = vmul.f32 %v3864_v43, %v2788_v10  ;;  %vm2795_vm10 = vweird.f32 %v3864_v43 }
0x1f81   :  { %vm2796_vm11 = vmor %vm2794_vm14, %vm2795_vm10 }
0x1f82   :  { %v2791_v28 = vsub.f32 1.0, %v2790_v3 }
0x1f84   :  { %v2792_v41 = vmul.f32 %v3864_v43, %v2791_v28 }
0x1f86   :  { %v2793_v46 = vadd.f32 %v3864_v43, %v2792_v41 }
0x1f88   :  { %v2797_v31 = vsel %vm2796_vm11, %v3864_v43, %v2793_v46 }
0x1f89   :  { %v2802_v26 = vsel %vm2799_vm12, %v2801_v37, %v2797_v31 }
0x1f8a   :  { %v2804_v2 = vmul.f32 %v2802_v26, %v2782_v50  ;;  %v2807_v32 = vsub.f32 1.0, %v2802_v26  ;;  %v2813_v34 = vmul.f32 0.0, %v2802_v26 }
0x1f8c   :  { %v2805_v7 = vadd.f32 %v2804_v2, %v5380_v63 }
0x1f8e   :  { %3865 = vtanh.f32 %v2805_v7 }
0x1f94   :  { %v3866_v53 = vpop.eup %3865 }
0x1f95   :  { %2809 = vrot.lane.b32.xlu1 %v3866_v53, %s4021_s0 }
0x2007   :  { %v2810_v55 = vpop.permute.xlu1 %2809 }
0x2008   :  { %v2812_v35 = vmul.f32 %v2810_v55, %v2807_v32 }
0x200a   :  { %v2814_v36 = vadd.f32 %v2813_v34, %v2812_v35 }
0x200c   :  { %2822 = vrot.lane.b32.xlu0 %v2814_v36, %s4021_s0  ;;  %v2901_v3 = vrot.slane %v2814_v36, 6 }
0x207e   :  { %v2823_v17 = vpop.permute.xlu0 %2822 }
0x207f   :  { %3628 = vmatmul.msk.f32.vlgmr.msra.gmra.mxu3 %vm184_vm8, %v2823_v17  ;;  %3629 = vmatmul.msk.f32.vlgmr.msra.gmra.mxu0 %vm184_vm8, %v2823_v17 }
0x2080   :  { %3180 = vmatpush.msra.mxu3 %v5182_v18  ;;  %3200 = vmatpush.msra.mxu0 %v5199_v21 }
0x2082   :  { %3181 = vmatpush.msra.mxu3 %v5184_v9  ;;  %3201 = vmatpush.msra.mxu0 %v5205_v61 }
0x2084   :  { %3182 = vmatpush.msra.mxu3 %v5188_v49  ;;  %3202 = vmatpush.msra.mxu0 %v5209_v44 }
0x2086   :  { %3183 = vmatpush.msra.mxu3 %v5194_v22  ;;  %3203 = vmatpush.msra.mxu0 %v5217_v47 }
0x2088   :  { %3184 = vmatpush.msra.mxu3 %v5196_v23  ;;  %3204 = vmatpush.msra.mxu0 %v5225_v51 }
0x208a   :  { %3185 = vmatpush.msra.mxu3 %v5202_v14  ;;  %3205 = vmatpush.msra.mxu0 %v5231_v52 }
0x208c   :  { %3186 = vmatpush.msra.mxu3 %v5212_v42  ;;  %3206 = vmatpush.msra.mxu0 %v5236_v57 }
0x208e   :  { %3187 = vmatpush.msra.mxu3 %v5220_v39  ;;  %3207 = vmatpush.msra.mxu0 %v5241_v59 }
0x20fc   :  { %v2863_v13 = vpop.f32.mrf.mxu0 }
0x20fd   :  { %v2864_v16 = vadd.f32 %v2863_v13, %v5375_v27 }
0x20ff   :  { %v2890_v28 = vrot.slane %v2864_v16, 6 }
0x2102   :  { %v2843_v45 = vpop.f32.mrf.mxu3 }
0x2103   :  { %v2844_v33 = vadd.f32 %v2843_v45, %v5351_v56 }
0x2105   :  { %v2867_v38 = vrot.slane %v2844_v33, 6 }
0x2107   :  { %v2869_v40 = vadd.f32 %v2867_v38, %v5372_v19 }
0x2109   :  { %v3630_v5 = vmul.f32 -1.442695, %v2869_v40 }
0x210b   :  { %3867 = vpow2.f32 %v3630_v5 }
0x2111   :  { %v3868_v6 = vpop.eup %3867 }
0x2112   :  { %v2873_v1 = vadd.f32 1.0, %v3868_v6 }
0x2114   :  { %3869 = vrcp.f32 %v2873_v1  ;;  %v2885_v15 = vand.u32 2147483648, %v2873_v1  ;;  %v2883_v25 = vand.u32 2147483647, %v2873_v1  ;;  %vm2879_vm15 = vweird.f32 %v2873_v1 }
0x2116   :  { %v2886_v43 = vor.u32 1.1754944e-38, %v2885_v15  ;;  %vm2884_vm1 = vcmp.eq.f32.partialorder %v2883_v25, 8.507059e+37 }
0x211a   :  { %v3870_v11 = vpop.eup %3869 }
0x211b   :  { %v2875_v12 = vmul.f32 %v3870_v11, %v2873_v1  ;;  %vm2880_vm13 = vweird.f32 %v3870_v11 }
0x211c   :  { %vm2881_vm0 = vmor %vm2879_vm15, %vm2880_vm13 }
0x211d   :  { %v2876_v8 = vsub.f32 1.0, %v2875_v12 }
0x211f   :  { %v2877_v24 = vmul.f32 %v3870_v11, %v2876_v8 }
0x2121   :  { %v2878_v10 = vadd.f32 %v3870_v11, %v2877_v24 }
0x2123   :  { %v2882_v29 = vsel %vm2881_vm0, %v3870_v11, %v2878_v10 }
0x2124   :  { %v2887_v30 = vsel %vm2884_vm1, %v2886_v43, %v2882_v29 }
0x2125   :  { %v2892_v41 = vmul.f32 %v2890_v28, %v2887_v30  ;;  %v2903_v54 = vmul.f32 %v2901_v3, %v2887_v30  ;;  %v2895_v48 = vsub.f32 1.0, %v2887_v30 }
0x2127   :  { %v2893_v50 = vadd.f32 %v2892_v41, %v5355_v20 }
0x2129   :  { %3871 = vtanh.f32 %v2893_v50 }
0x212f   :  { %v3872_v46 = vpop.eup %3871 }
0x2130   :  { %2897 = vrot.lane.b32.xlu2 %v3872_v46, %s4021_s0 }
0x218a   :  { %v2898_v37 = vpop.permute.xlu2 %2897 }
0x218b   :  { %v2900_v31 = vmul.f32 %v2898_v37, %v2895_v48 }
0x218d   :  { %v2904_v26 = vadd.f32 %v2903_v54, %v2900_v31 }
0x218f   :  { %v2906_v2 = vrot.slane %v2904_v26, 2 }
0x2191   :  { %2907 = vrot.lane.b32.xlu1 %v2906_v2, %s4021_s0 }
0x2203   :  { %v2908_v7 = vpop.permute.xlu1 %2907 }
0x2204   :  { %3631 = vmatmul.msk.f32.vlgmr.msra.gmra.mxu1 %vm184_vm8, %v2908_v7  ;;  %3632 = vmatmul.msk.f32.vlgmr.msra.gmra.mxu2 %vm184_vm8, %v2908_v7 }
0x2205   :  { %3265 = vmatpush.msra.mxu1 %v5182_v18  ;;  %3285 = vmatpush.msra.mxu2 %v5199_v21 }
0x2207   :  { %3266 = vmatpush.msra.mxu1 %v5184_v9  ;;  %3286 = vmatpush.msra.mxu2 %v5205_v61 }
0x2209   :  { %3267 = vmatpush.msra.mxu1 %v5188_v49  ;;  %3287 = vmatpush.msra.mxu2 %v5209_v44 }
0x220b   :  { %3268 = vmatpush.msra.mxu1 %v5194_v22  ;;  %3288 = vmatpush.msra.mxu2 %v5217_v47 }
0x220d   :  { %3269 = vmatpush.msra.mxu1 %v5196_v23  ;;  %3289 = vmatpush.msra.mxu2 %v5225_v51 }
0x220f   :  { %3270 = vmatpush.msra.mxu1 %v5202_v14  ;;  %3290 = vmatpush.msra.mxu2 %v5231_v52 }
0x2211   :  { %3271 = vmatpush.msra.mxu1 %v5212_v42  ;;  %3291 = vmatpush.msra.mxu2 %v5236_v57 }
0x2213   :  { %3272 = vmatpush.msra.mxu1 %v5220_v39  ;;  %3292 = vmatpush.msra.mxu2 %v5241_v59 }
0x2281   :  { %v2928_v53 = vpop.f32.mrf.mxu1 }
0x2282   :  { %v2929_v32 = vadd.f32 %v2928_v53, %v5351_v56 }
0x2284   :  { %v2952_v55 = vrot.slane %v2929_v32, 4 }
0x2286   :  { %v2954_v34 = vadd.f32 %v2952_v55, %v5368_v0  ;;  %v2986_v0 = vrot.slane %v2904_v26, 6 }
0x2287   :  { %v2948_v38 = vpop.f32.mrf.mxu2 }
0x2288   :  { %v3633_v35 = vmul.f32 -1.442695, %v2954_v34  ;;  %v2949_v6 = vadd.f32 %v2948_v38, %v5375_v27 }
0x228a   :  { %3873 = vpow2.f32 %v3633_v35  ;;  %v2975_v15 = vrot.slane %v2949_v6, 4 }
0x2290   :  { %v3874_v36 = vpop.eup %3873 }
0x2291   :  { %v2958_v17 = vadd.f32 1.0, %v3874_v36 }
0x2293   :  { %3875 = vrcp.f32 %v2958_v17  ;;  %v2970_v5 = vand.u32 2147483648, %v2958_v17  ;;  %v2968_v11 = vand.u32 2147483647, %v2958_v17  ;;  %vm2964_vm3 = vweird.f32 %v2958_v17 }
0x2295   :  { %v2971_v13 = vor.u32 1.1754944e-38, %v2970_v5  ;;  %vm2969_vm5 = vcmp.eq.f32.partialorder %v2968_v11, 8.507059e+37 }
0x2299   :  { %v3876_v45 = vpop.eup %3875 }
0x229a   :  { %v2960_v33 = vmul.f32 %v3876_v45, %v2958_v17  ;;  %vm2965_vm2 = vweird.f32 %v3876_v45 }
0x229b   :  { %vm2966_vm4 = vmor %vm2964_vm3, %vm2965_vm2 }
0x229c   :  { %v2961_v40 = vsub.f32 1.0, %v2960_v33 }
0x229e   :  { %v2962_v1 = vmul.f32 %v3876_v45, %v2961_v40 }
0x22a0   :  { %v2963_v12 = vadd.f32 %v3876_v45, %v2962_v1 }
0x22a2   :  { %v2967_v8 = vsel %vm2966_vm4, %v3876_v45, %v2963_v12 }
0x22a3   :  { %v2972_v16 = vsel %vm2969_vm5, %v2971_v13, %v2967_v8 }
0x22a4   :  { %v2977_v24 = vmul.f32 %v2975_v15, %v2972_v16  ;;  %v2988_v25 = vmul.f32 %v2986_v0, %v2972_v16  ;;  %v2980_v3 = vsub.f32 1.0, %v2972_v16 }
0x22a6   :  { %v2978_v10 = vadd.f32 %v2977_v24, %v5380_v63 }
0x22a8   :  { %3877 = vtanh.f32 %v2978_v10 }
0x22ae   :  { %v3878_v43 = vpop.eup %3877 }
0x22af   :  { %2982 = vrot.lane.b32.xlu0 %v3878_v43, %s4021_s0 }
0x2321   :  { %v2983_v28 = vpop.permute.xlu0 %2982 }
0x2322   :  { %v2985_v29 = vmul.f32 %v2983_v28, %v2980_v3 }
0x2324   :  { %v2989_v30 = vadd.f32 %v2988_v25, %v2985_v29 }
0x2326   :  { %v2991_v41 = vrot.slane %v2989_v30, 4 }
0x2328   :  { %2992 = vrot.lane.b32.xlu2 %v2991_v41, %s4021_s0 }
0x2382   :  { %v2993_v54 = vpop.permute.xlu2 %2992 }
0x2383   :  { %3634 = vmatmul.msk.f32.vlgmr.msrb.gmra.mxu3 %vm184_vm8, %v2993_v54  ;;  %3635 = vmatmul.msk.f32.vlgmr.msrb.gmra.mxu0 %vm184_vm8, %v2993_v54 }
0x2384   :  { %3350 = vmatpush.msrb.mxu3 %v5182_v18  ;;  %3370 = vmatpush.msrb.mxu0 %v5199_v21 }
0x2386   :  { %3351 = vmatpush.msrb.mxu3 %v5184_v9  ;;  %3371 = vmatpush.msrb.mxu0 %v5205_v61 }
0x2388   :  { %3352 = vmatpush.msrb.mxu3 %v5188_v49  ;;  %3372 = vmatpush.msrb.mxu0 %v5209_v44 }
0x238a   :  { %3353 = vmatpush.msrb.mxu3 %v5194_v22  ;;  %3373 = vmatpush.msrb.mxu0 %v5217_v47 }
0x238c   :  { %3354 = vmatpush.msrb.mxu3 %v5196_v23  ;;  %3374 = vmatpush.msrb.mxu0 %v5225_v51 }
0x238e   :  { %3355 = vmatpush.msrb.mxu3 %v5202_v14  ;;  %3375 = vmatpush.msrb.mxu0 %v5231_v52 }
0x2390   :  { %3356 = vmatpush.msrb.mxu3 %v5212_v42  ;;  %3376 = vmatpush.msrb.mxu0 %v5236_v57 }
0x2392   :  { %3357 = vmatpush.msrb.mxu3 %v5220_v39  ;;  %3377 = vmatpush.msrb.mxu0 %v5241_v59 }
0x2400   :  { %v3033_v42 = vpop.f32.mrf.mxu0 }
0x2401   :  { %v3034_v39 = vadd.f32 %v3033_v42, %v5375_v27 }
0x2403   :  { %v3060_v50 = vrot.slane %v3034_v39, 2 }
0x2406   :  { %v3013_v18 = vpop.f32.mrf.mxu3 }
0x2407   :  { %v3014_v9 = vadd.f32 %v3013_v18, %v5351_v56 }
0x2409   :  { %v3037_v49 = vrot.slane %v3014_v9, 2 }
0x240b   :  { %v3039_v22 = vadd.f32 %v3037_v49, %v5372_v19  ;;  %v3071_v19 = vrot.slane %v2989_v30, 6 }
0x240d   :  { %v3636_v23 = vmul.f32 -1.442695, %v3039_v22 }
0x240f   :  { %3879 = vpow2.f32 %v3636_v23 }
0x2415   :  { %v3880_v21 = vpop.eup %3879 }
0x2416   :  { %v3043_v14 = vadd.f32 1.0, %v3880_v21 }
0x2418   :  { %3881 = vrcp.f32 %v3043_v14  ;;  %v3055_v51 = vand.u32 2147483648, %v3043_v14  ;;  %v3053_v57 = vand.u32 2147483647, %v3043_v14  ;;  %vm3049_vm7 = vweird.f32 %v3043_v14 }
0x241a   :  { %v3056_v63 = vor.u32 1.1754944e-38, %v3055_v51  ;;  %vm3054_vm10 = vcmp.eq.f32.partialorder %v3053_v57, 8.507059e+37 }
0x241e   :  { %v3882_v61 = vpop.eup %3881 }
0x241f   :  { %v3045_v44 = vmul.f32 %v3882_v61, %v3043_v14  ;;  %vm3050_vm6 = vweird.f32 %v3882_v61 }
0x2420   :  { %vm3051_vm9 = vmor %vm3049_vm7, %vm3050_vm6 }
0x2421   :  { %v3046_v47 = vsub.f32 1.0, %v3045_v44 }
0x2423   :  { %v3047_v52 = vmul.f32 %v3882_v61, %v3046_v47 }
0x2425   :  { %v3048_v59 = vadd.f32 %v3882_v61, %v3047_v52 }
0x2427   :  { %v3052_v46 = vsel %vm3051_vm9, %v3882_v61, %v3048_v59 }
0x2428   :  { %v3057_v48 = vsel %vm3054_vm10, %v3056_v63, %v3052_v46 }
0x2429   :  { %v3062_v37 = vmul.f32 %v3060_v50, %v3057_v48  ;;  %v3073_v31 = vmul.f32 %v3071_v19, %v3057_v48  ;;  %v3065_v7 = vsub.f32 1.0, %v3057_v48 }
0x242b   :  { %v3063_v26 = vadd.f32 %v3062_v37, %v5355_v20 }
0x242d   :  { %3883 = vtanh.f32 %v3063_v26 }
0x2433   :  { %v3884_v2 = vpop.eup %3883 }
0x2434   :  { %3067 = vrot.lane.b32.xlu1 %v3884_v2, %s4021_s0 }
0x24a6   :  { %v3068_v53 = vpop.permute.xlu1 %3067 }
0x24a7   :  { %v3070_v32 = vmul.f32 %v3068_v53, %v3065_v7 }
0x24a9   :  { %v3074_v55 = vadd.f32 %v3073_v31, %v3070_v32 }
0x24ab   :  { %v3084_v34 = vrot.slane %v3074_v55, 6 }
0x24ad   :  { %3085 = vrot.lane.b32.xlu0 %v3084_v34, %s4021_s0 }
0x251f   :  { %v3086_v35 = vpop.permute.xlu0 %3085 }
0x2520   :  { %3637 = vmatmul.msk.f32.vlgmr.msrb.gmra.mxu1 %vm184_vm8, %v3086_v35  ;;  %3638 = vmatmul.msk.f32.vlgmr.msrb.gmra.mxu2 %vm184_vm8, %v3086_v35 }
0x259d   :  { %v3106_v36 = vpop.f32.mrf.mxu1 }
0x259e   :  { %v3107_v17 = vadd.f32 %v3106_v36, %v5351_v56 }
0x25a0   :  { %v3129_v20 = vadd.f32 %v3107_v17, %v5360_v60 }
0x25a2   :  { %v3639_v45 = vmul.f32 -1.442695, %v3129_v20 }
0x25a3   :  { %v3126_v13 = vpop.f32.mrf.mxu2 }
0x25a4   :  { %3885 = vpow2.f32 %v3639_v45  ;;  %v3127_v15 = vadd.f32 %v3126_v13, %v5375_v27 }
0x25aa   :  { %v3886_v33 = vpop.eup %3885 }
0x25ab   :  { %v3133_v38 = vadd.f32 1.0, %v3886_v33 }
0x25ad   :  { %3887 = vrcp.f32 %v3133_v38  ;;  %v3145_v1 = vand.u32 2147483648, %v3133_v38  ;;  %v3143_v12 = vand.u32 2147483647, %v3133_v38  ;;  %vm3139_vm11 = vweird.f32 %v3133_v38 }
0x25af   :  { %v3146_v8 = vor.u32 1.1754944e-38, %v3145_v1  ;;  %vm3144_vm13 = vcmp.eq.f32.partialorder %v3143_v12, 8.507059e+37 }
0x25b3   :  { %v3888_v40 = vpop.eup %3887 }
0x25b4   :  { %v3135_v5 = vmul.f32 %v3888_v40, %v3133_v38  ;;  %vm3140_vm14 = vweird.f32 %v3888_v40 }
0x25b5   :  { %vm3141_vm12 = vmor %vm3139_vm11, %vm3140_vm14  ;;  %vm3459_vm11 = vcmask 17408  }
0x25b6   :  { %v3136_v6 = vsub.f32 1.0, %v3135_v5 }
0x25b8   :  { %v3137_v11 = vmul.f32 %v3888_v40, %v3136_v6 }
0x25ba   :  { %v3138_v0 = vadd.f32 %v3888_v40, %v3137_v11 }
0x25bc   :  { %v3142_v16 = vsel %vm3141_vm12, %v3888_v40, %v3138_v0 }
0x25bd   :  { %v3147_v24 = vsel %vm3144_vm13, %v3146_v8, %v3142_v16 }
0x25be   :  { %v3149_v25 = vmul.f32 %v3147_v24, %v3127_v15  ;;  %v3152_v3 = vsub.f32 1.0, %v3147_v24  ;;  %v3159_v29 = vmul.f32 %v3147_v24, %v3084_v34 }
0x25c0   :  { %v3150_v10 = vadd.f32 %v3149_v25, %v5349_v58 }
0x25c2   :  { %3889 = vtanh.f32 %v3150_v10 }
0x25c8   :  { %v3890_v43 = vpop.eup %3889 }
0x25c9   :  { %3154 = vrot.lane.b32.xlu2 %v3890_v43, %s4021_s0 }
0x2623   :  { %v3155_v28 = vpop.permute.xlu2 %3154 }
0x2624   :  { %v3157_v30 = vmul.f32 %v3155_v28, %v3152_v3 }
0x2626   :  { %v3160_v41 = vadd.f32 %v3159_v29, %v3157_v30 }
0x2628   :  { %3168 = vrot.lane.b32.xlu1 %v3160_v41, %s4021_s0  ;;  %v3247_v19 = vrot.slane %v3160_v41, 6 }
0x269a   :  { %v3169_v54 = vpop.permute.xlu1 %3168 }
0x269b   :  { %3640 = vmatmul.msk.f32.vlgmr.msra.gmra.mxu3 %vm184_vm8, %v3169_v54  ;;  %3641 = vmatmul.msk.f32.vlgmr.msra.gmra.mxu0 %vm184_vm8, %v3169_v54 }
0x2718   :  { %v3209_v42 = vpop.f32.mrf.mxu0 }
0x2719   :  { %v3210_v39 = vadd.f32 %v3209_v42, %v5375_v27 }
0x271b   :  { %v3236_v50 = vrot.slane %v3210_v39, 6 }
0x271e   :  { %v3189_v18 = vpop.f32.mrf.mxu3 }
0x271f   :  { %v3190_v9 = vadd.f32 %v3189_v18, %v5351_v56 }
0x2721   :  { %v3213_v49 = vrot.slane %v3190_v9, 6 }
0x2723   :  { %v3215_v22 = vadd.f32 %v3213_v49, %v5364_v62 }
0x2725   :  { %v3642_v23 = vmul.f32 -1.442695, %v3215_v22 }
0x2727   :  { %3891 = vpow2.f32 %v3642_v23 }
0x272d   :  { %v3892_v21 = vpop.eup %3891 }
0x272e   :  { %v3219_v14 = vadd.f32 1.0, %v3892_v21 }
0x2730   :  { %3893 = vrcp.f32 %v3219_v14  ;;  %v3231_v51 = vand.u32 2147483648, %v3219_v14  ;;  %v3229_v57 = vand.u32 2147483647, %v3219_v14  ;;  %vm3225_vm0 = vweird.f32 %v3219_v14 }
0x2732   :  { %v3232_v63 = vor.u32 1.1754944e-38, %v3231_v51  ;;  %vm3230_vm2 = vcmp.eq.f32.partialorder %v3229_v57, 8.507059e+37 }
0x2736   :  { %v3894_v61 = vpop.eup %3893 }
0x2737   :  { %v3221_v44 = vmul.f32 %v3894_v61, %v3219_v14  ;;  %vm3226_vm15 = vweird.f32 %v3894_v61 }
0x2738   :  { %vm3227_vm1 = vmor %vm3225_vm0, %vm3226_vm15 }
0x2739   :  { %v3222_v47 = vsub.f32 1.0, %v3221_v44 }
0x273b   :  { %v3223_v52 = vmul.f32 %v3894_v61, %v3222_v47 }
0x273d   :  { %v3224_v59 = vadd.f32 %v3894_v61, %v3223_v52 }
0x273f   :  { %v3228_v46 = vsel %vm3227_vm1, %v3894_v61, %v3224_v59 }
0x2740   :  { %v3233_v48 = vsel %vm3230_vm2, %v3232_v63, %v3228_v46 }
0x2741   :  { %v3238_v37 = vmul.f32 %v3236_v50, %v3233_v48  ;;  %v3249_v31 = vmul.f32 %v3247_v19, %v3233_v48  ;;  %v3241_v7 = vsub.f32 1.0, %v3233_v48 }
0x2743   :  { %v3239_v26 = vadd.f32 %v3238_v37, %v5345_v4 }
0x2745   :  { %3895 = vtanh.f32 %v3239_v26 }
0x274b   :  { %v3896_v2 = vpop.eup %3895 }
0x274c   :  { %3243 = vrot.lane.b32.xlu0 %v3896_v2, %s4021_s0 }
0x27be   :  { %v3244_v53 = vpop.permute.xlu0 %3243 }
0x27bf   :  { %v3246_v32 = vmul.f32 %v3244_v53, %v3241_v7  ;;  %v3427_v7 = vld [vmem:[%s5542_s22 + $0x30] sm:$0xff]  ;;  %v3426_v53 = vld [vmem:[%s5542_s22 + $0x28] sm:$0xff] }
0x27c1   :  { %v3250_v55 = vadd.f32 %v3249_v31, %v3246_v32  ;;  %v3424_v32 = vld [vmem:[%s5542_s22 + $0x18] sm:$0xff] }
0x27c3   :  { %v3252_v34 = vrot.slane %v3250_v55, 2 }
0x27c5   :  { %3253 = vrot.lane.b32.xlu2 %v3252_v34, %s4021_s0  ;;  %v3422_v34 = vld [vmem:[%s5542_s22 + $0x8] sm:$0xff] }
0x281f   :  { %v3254_v35 = vpop.permute.xlu2 %3253 }
0x2820   :  { %3643 = vmatmul.msk.f32.vlgmr.msra.gmra.mxu1 %vm184_vm8, %v3254_v35  ;;  %3644 = vmatmul.msk.f32.vlgmr.msra.gmra.mxu2 %vm184_vm8, %v3254_v35  ;;  %v3421_v35 = vld [vmem:[%s5542_s22] sm:$0xff] }
0x289d   :  { %v3274_v36 = vpop.f32.mrf.mxu1 }
0x289e   :  { %v3275_v17 = vadd.f32 %v3274_v36, %v5351_v56 }
0x28a0   :  { %v3298_v20 = vrot.slane %v3275_v17, 4 }
0x28a2   :  { %v3300_v45 = vadd.f32 %v3298_v20, %v5360_v60  ;;  %v3332_v60 = vrot.slane %v3250_v55, 6  ;;  %v3423_v55 = vld [vmem:[%s5542_s22 + $0x10] sm:$0xff] }
0x28a3   :  { %v3294_v1 = vpop.f32.mrf.mxu2 }
0x28a4   :  { %v3645_v33 = vmul.f32 -1.442695, %v3300_v45  ;;  %v3295_v13 = vadd.f32 %v3294_v1, %v5375_v27 }
0x28a6   :  { %3897 = vpow2.f32 %v3645_v33  ;;  %v3321_v25 = vrot.slane %v3295_v13, 4 }
0x28ac   :  { %v3898_v38 = vpop.eup %3897 }
0x28ad   :  { %v3304_v40 = vadd.f32 1.0, %v3898_v38 }
0x28af   :  { %3899 = vrcp.f32 %v3304_v40  ;;  %v3316_v12 = vand.u32 2147483648, %v3304_v40  ;;  %v3314_v8 = vand.u32 2147483647, %v3304_v40  ;;  %vm3310_vm4 = vweird.f32 %v3304_v40 }
0x28b1   :  { %v3317_v16 = vor.u32 1.1754944e-38, %v3316_v12  ;;  %vm3315_vm6 = vcmp.eq.f32.partialorder %v3314_v8, 8.507059e+37 }
0x28b5   :  { %v3900_v5 = vpop.eup %3899 }
0x28b6   :  { %v3306_v6 = vmul.f32 %v3900_v5, %v3304_v40  ;;  %vm3311_vm3 = vweird.f32 %v3900_v5  ;;  %v3718_v40 = vld [vmem:[%s5543_s23] ss:$0 sm:$0xff] }
0x28b7   :  { %vm3312_vm5 = vmor %vm3310_vm4, %vm3311_vm3 }
0x28b8   :  { %v3307_v11 = vsub.f32 1.0, %v3306_v6 }
0x28ba   :  { %v3308_v0 = vmul.f32 %v3900_v5, %v3307_v11 }
0x28bc   :  { %v3309_v15 = vadd.f32 %v3900_v5, %v3308_v0 }
0x28be   :  { %v3313_v24 = vsel %vm3312_vm5, %v3900_v5, %v3309_v15 }
0x28bf   :  { %v3318_v10 = vsel %vm3315_vm6, %v3317_v16, %v3313_v24 }
0x28c0   :  { %v3323_v43 = vmul.f32 %v3321_v25, %v3318_v10  ;;  %v3334_v3 = vmul.f32 %v3332_v60, %v3318_v10  ;;  %v3326_v30 = vsub.f32 1.0, %v3318_v10 }
0x28c2   :  { %v3324_v28 = vadd.f32 %v3323_v43, %v5349_v58 }
0x28c4   :  { %3901 = vtanh.f32 %v3324_v28 }
0x28ca   :  { %v3902_v29 = vpop.eup %3901 }
0x28cb   :  { %3328 = vrot.lane.b32.xlu1 %v3902_v29, %s4021_s0 }
0x293d   :  { %v3329_v41 = vpop.permute.xlu1 %3328 }
0x293e   :  { %v3331_v54 = vmul.f32 %v3329_v41, %v3326_v30 }
0x2940   :  { %v3335_v18 = vadd.f32 %v3334_v3, %v3331_v54 }
0x2942   :  { %v3337_v9 = vrot.slane %v3335_v18, 4 }
0x2944   :  { %3338 = vrot.lane.b32.xlu0 %v3337_v9, %s4021_s0 }
0x29b6   :  { %v3339_v49 = vpop.permute.xlu0 %3338 }
0x29b7   :  { %3646 = vmatmul.msk.f32.vlgmr.msrb.gmra.mxu3 %vm184_vm8, %v3339_v49  ;;  %3647 = vmatmul.msk.f32.vlgmr.msrb.gmra.mxu0 %vm184_vm8, %v3339_v49 }
0x2a34   :  { %v3379_v51 = vpop.f32.mrf.mxu0 }
0x2a35   :  { %v3380_v57 = vadd.f32 %v3379_v51, %v5375_v27  ;;  %v3428_v27 = vld [vmem:[%s5542_s22 + $0x38] sm:$0xff] }
0x2a36   :  { %3447 = vmatpush.msrb.mxu1 %v3428_v27 }
0x2a37   :  { %v3406_v50 = vrot.slane %v3380_v57, 2 }
0x2a38   :  { %3448 = vmatpush.msrb.mxu1 %v3427_v7 }
0x2a3a   :  { %v3359_v22 = vpop.f32.mrf.mxu3  ;;  %3449 = vmatpush.msrb.mxu1 %v3426_v53 }
0x2a3b   :  { %v3360_v23 = vadd.f32 %v3359_v22, %v5351_v56 }
0x2a3d   :  { %v3383_v58 = vrot.slane %v3360_v23, 2 }
0x2a3f   :  { %v3385_v21 = vadd.f32 %v3383_v58, %v5364_v62  ;;  %v3417_v62 = vrot.slane %v3335_v18, 6 }
0x2a41   :  { %v3648_v14 = vmul.f32 -1.442695, %v3385_v21 }
0x2a43   :  { %3903 = vpow2.f32 %v3648_v14 }
0x2a49   :  { %v3904_v61 = vpop.eup %3903 }
0x2a4a   :  { %v3389_v44 = vadd.f32 1.0, %v3904_v61 }
0x2a4c   :  { %3905 = vrcp.f32 %v3389_v44  ;;  %v3401_v52 = vand.u32 2147483648, %v3389_v44  ;;  %v3399_v63 = vand.u32 2147483647, %v3389_v44  ;;  %vm3395_vm9 = vweird.f32 %v3389_v44 }
0x2a4e   :  { %v3402_v56 = vor.u32 1.1754944e-38, %v3401_v52  ;;  %vm3400_vm14 = vcmp.eq.f32.partialorder %v3399_v63, 8.507059e+37 }
0x2a52   :  { %v3906_v42 = vpop.eup %3905 }
0x2a53   :  { %v3391_v47 = vmul.f32 %v3906_v42, %v3389_v44  ;;  %vm3396_vm7 = vweird.f32 %v3906_v42 }
0x2a54   :  { %vm3397_vm10 = vmor %vm3395_vm9, %vm3396_vm7 }
0x2a55   :  { %v3392_v39 = vsub.f32 1.0, %v3391_v47 }
0x2a57   :  { %v3393_v59 = vmul.f32 %v3906_v42, %v3392_v39 }
0x2a59   :  { %v3394_v19 = vadd.f32 %v3906_v42, %v3393_v59 }
0x2a5b   :  { %v3398_v46 = vsel %vm3397_vm10, %v3906_v42, %v3394_v19 }
0x2a5c   :  { %v3403_v48 = vsel %vm3400_vm14, %v3402_v56, %v3398_v46 }
0x2a5d   :  { %v3408_v37 = vmul.f32 %v3406_v50, %v3403_v48  ;;  %v3419_v31 = vmul.f32 %v3417_v62, %v3403_v48  ;;  %v3411_v36 = vsub.f32 1.0, %v3403_v48 }
0x2a5f   :  { %v3409_v26 = vadd.f32 %v3408_v37, %v5345_v4  ;;  %v3425_v4 = vld [vmem:[%s5542_s22 + $0x20] sm:$0xff] }
0x2a60   :  { %3450 = vmatpush.msrb.mxu1 %v3425_v4 }
0x2a61   :  { %3907 = vtanh.f32 %v3409_v26 }
0x2a62   :  { %3451 = vmatpush.msrb.mxu1 %v3424_v32 }
0x2a64   :  { %3452 = vmatpush.msrb.mxu1 %v3423_v55 }
0x2a66   :  { %3453 = vmatpush.msrb.mxu1 %v3422_v34 }
0x2a67   :  { %v3908_v2 = vpop.eup %3907 }
0x2a68   :  { %3413 = vrot.lane.b32.xlu2 %v3908_v2, %s4021_s0  ;;  %3454 = vmatpush.msrb.mxu1 %v3421_v35 }
0x2ac2   :  { %v3414_v17 = vpop.permute.xlu2 %3413 }
0x2ac3   :  { %v3416_v20 = vmul.f32 %v3414_v17, %v3411_v36 }
0x2ac5   :  { %v3420_v45 = vadd.f32 %v3419_v31, %v3416_v20 }
0x2ac7   :  { %v3434_v33 = vrot.slane %v3420_v45, 6 }
0x2ac9   :  { %3435 = vrot.lane.b32.xlu1 %v3434_v33, %s4021_s0 }
0x2b3b   :  { %v3436_v38 = vpop.permute.xlu1 %3435 }
0x2b3c   :  { %3649 = vmatmul.msk.f32.vlgmr.msrb.gmra.mxu1 %vm184_vm8, %v3436_v38 }
0x2bb9   :  { %v3456_v5 = vpop.f32.mrf.mxu1 }
0x2bba   :  { %v3457_v6 = vadd.f32 %v3718_v40, %v3456_v5 }
0x2bbc   :  { %3460 = vst.msk [vmem:[#allocation8] sm:$0x3] %vm3459_vm11, %v3457_v6 }
0x2bbd   :  { %3471 = dma.vmem_to_hbm [thread:$0]  %s3467_s16, 32, %s3469_s8, [#allocation4]  }
0x2bbe   :  { %4009 = dma.done.wait [#allocation4], 32  }
0x2bbf   :  { %4010 = vsyncadd [#allocation4], 4294967264 }
0x2bc0   :  { %3476 = vsyncpa [#allocation3], 1 }
0x2bc1   :  { %3477 = vsyncpa [#allocation6], 1 }
0x2bc2   :  { %3478 = vsyncpa [#allocation4], 1 }

</bundles_post_ra>
